<compile_context>
chip_gen: v5e
topology: v5e:2x2
jax: 0.10.0
libtpu: 0.0.40
codegen_flags: <defaults>
</compile_context>

<pallas_src>
import functools

import jax
import jax.numpy as jnp
from jax.experimental import pallas as pl
from jax.experimental.pallas import tpu as pltpu


def _dwconvt2d_kernel(x_ref, w_ref, b_ref, e0_ref, e1_ref, o_ref, *,
                      rows_per_tile, out_ch):
    # x_ref : (1, C, RH, W)      input rows of this tile, native NCHW layout
    # w_ref : (4*O, C)           fused weights, row (2*ki + kj)*O + o
    # b_ref : (O, 1)             fused bias
    # e0/e1 : (W, 2*W)           one-hot expansion: e0[w, 2w] = 1, e1[w, 2w+1] = 1
    # o_ref : (1, O, 2*RH, 2*W)  output rows of this tile, native NCHW layout
    O = out_ch
    w = w_ref[...]
    b = b_ref[...]
    e0 = e0_ref[...]
    e1 = e1_ref[...]
    for r in range(rows_per_tile):
        xr = x_ref[0, :, r, :]                                     # (C, W)
        # Both convolutions fused into one contraction over channels.
        y = jnp.dot(w, xr, preferred_element_type=jnp.float32)     # (4*O, W)
        for ki in range(2):
            y_even = y[(2 * ki) * O:(2 * ki + 1) * O, :]           # kj = 0
            y_odd = y[(2 * ki + 1) * O:(2 * ki + 2) * O, :]        # kj = 1
            # Interleave kj=0 / kj=1 columns -> output row already in NCHW.
            z = (jnp.dot(y_even, e0, preferred_element_type=jnp.float32)
                 + jnp.dot(y_odd, e1, preferred_element_type=jnp.float32)
                 + b)                                              # (O, 2*W)
            o_ref[0, :, 2 * r + ki, :] = z.astype(o_ref.dtype)


def _pick_rows_per_tile(H, W, C, O, itemsize=4,
                        vmem_budget_bytes=16 * 2**20, max_unroll=64):
    """Rows per tile: must divide H and satisfy the (8,128) block rule
    (RH % 8 == 0 or RH == H).  Prefer the largest candidate whose
    double-buffered input+output blocks fit the VMEM budget with a bounded
    in-kernel row unroll."""
    candidates = []
    for d in range(1, H + 1):
        if H % d:
            continue
        if d != H and d % 8 != 0:
            continue
        bytes_needed = 2 * (C * d * W + O * (2 * d) * (2 * W)) * itemsize
        candidates.append((d, bytes_needed))
    fitting = [d for d, nbytes in candidates if nbytes <= vmem_budget_bytes]
    if fitting:
        bounded = [d for d in fitting if d <= max_unroll]
        return max(bounded) if bounded else min(fitting)
    # Nothing fits the budget: fall back to the smallest legal tile.
    return min(d for d, _ in candidates)


def dwconvt2d_pallas(x, w_dw, b_dw, w_pw, b_pw):
    """x: (N, C, H, W) f32.  Returns (N, O, 2H, 2W), matching
    nn.ConvTranspose2d(C, C, 2, 2, groups=C) -> nn.Conv2d(C, O, 1)."""
    N, C, H, W = x.shape
    O = w_pw.shape[0]

    # ---- parameter fusion (plain JAX glue on tiny arrays) ----
    wd = w_dw.reshape(C, 2, 2)          # (C, ki, kj)
    wp = w_pw.reshape(O, C)             # (O, C)
    # wfused[(2*ki+kj)*O + o, c] = wd[c, ki, kj] * wp[o, c]
    wfused = (wd.transpose(1, 2, 0)[:, :, None, :] *
              wp[None, None, :, :]).reshape(4 * O, C)
    bfused = (wp @ b_dw + b_pw).reshape(O, 1)

    # One-hot expansion matrices that place kj=0 results at even output
    # columns and kj=1 results at odd output columns.
    cols = jnp.arange(2 * W)[None, :]
    rows = jnp.arange(W)[:, None]
    e0 = (cols == 2 * rows).astype(x.dtype)        # (W, 2W)
    e1 = (cols == 2 * rows + 1).astype(x.dtype)    # (W, 2W)

    RH = _pick_rows_per_tile(H, W, C, O, itemsize=x.dtype.itemsize)
    HB = H // RH

    kernel = functools.partial(_dwconvt2d_kernel,
                               rows_per_tile=RH, out_ch=O)

    # NOTE: the weight/bias/expansion inputs have constant index_maps (loaded
    # once); pipeline_mode=pl.Buffered(1) could halve their (tiny) VMEM
    # footprint for very large C/O.
    out = pl.pallas_call(
        kernel,
        out_shape=jax.ShapeDtypeStruct((N, O, 2 * H, 2 * W), x.dtype),
        grid_spec=pltpu.PrefetchScalarGridSpec(
            num_scalar_prefetch=0,
            grid=(N, HB),
            in_specs=[
                pl.BlockSpec((1, C, RH, W), lambda n, hb: (n, 0, hb, 0)),
                pl.BlockSpec((4 * O, C), lambda n, hb: (0, 0)),
                pl.BlockSpec((O, 1), lambda n, hb: (0, 0)),
                pl.BlockSpec((W, 2 * W), lambda n, hb: (0, 0)),
                pl.BlockSpec((W, 2 * W), lambda n, hb: (0, 0)),
            ],
            out_specs=pl.BlockSpec((1, O, 2 * RH, 2 * W),
                                   lambda n, hb: (n, 0, hb, 0)),
        ),
        compiler_params=pltpu.CompilerParams(
            dimension_semantics=("parallel", "parallel"),
            vmem_limit_bytes=32 * 2**20,
        ),
    )(x, wfused, bfused, e0, e1)
    return out


def dwconvt2d_ref(x, w_dw, b_dw, w_pw, b_pw):
    """Pure-JAX reference mirroring PyTorch semantics (k=2, s=2, p=0, groups=C)."""
    N, C, H, W = x.shape
    O = w_pw.shape[0]
    wd = w_dw.reshape(C, 2, 2)
    # depthwise transpose conv: y[n,c,2i+ki,2j+kj] = x[n,c,i,j]*wd[c,ki,kj] + b_dw[c]
    y = x[:, :, :, None, :, None] * wd[None, :, None, :, None, :]   # (N,C,H,2,W,2)
    y = y.reshape(N, C, 2 * H, 2 * W) + b_dw[None, :, None, None]
    # 1x1 conv
    wp = w_pw.reshape(O, C)
    out = jnp.einsum("nchw,oc->nohw", y, wp) + b_pw[None, :, None, None]
    return out


if __name__ == "__main__":
    key = jax.random.PRNGKey(0)
    N, C, H, W = 2, 4, 16, 16
    O = 8  # out_channels

    k_x, k_wd, k_bd, k_wp, k_bp = jax.random.split(key, 5)
    x = jax.random.normal(k_x, (N, C, H, W), dtype=jnp.float32)
    # nn.ConvTranspose2d(C, C, k=2, s=2, groups=C): weight (C, 1, 2, 2), bias (C,)
    w_dw = jax.random.normal(k_wd, (C, 1, 2, 2), dtype=jnp.float32) * 0.5
    b_dw = jax.random.normal(k_bd, (C,), dtype=jnp.float32) * 0.1
    # nn.Conv2d(C, O, kernel=1): weight (O, C, 1, 1), bias (O,)
    w_pw = jax.random.normal(k_wp, (O, C, 1, 1), dtype=jnp.float32) * 0.5
    b_pw = jax.random.normal(k_bp, (O,), dtype=jnp.float32) * 0.1

    out = dwconvt2d_pallas(x, w_dw, b_dw, w_pw, b_pw)
    out = jax.block_until_ready(out)

    ref = dwconvt2d_ref(x, w_dw, b_dw, w_pw, b_pw)
    assert out.shape == (N, O, 2 * H, 2 * W), out.shape
    assert jnp.allclose(out, ref, atol=1e-4, rtol=1e-4), "mismatch vs reference"

    print("KERNEL_OK")
</pallas_src>

<mosaic_0001>
module attributes {stable_mosaic.version = 11 : i64} {
  func.func @_dwconvt2d_kernel(%arg0: i32, %arg1: i32, %arg2: memref<1x4x16x16xf32, #tpu.memory_space<vmem>>, %arg3: memref<32x4xf32, #tpu.memory_space<vmem>>, %arg4: memref<8x1xf32, #tpu.memory_space<vmem>>, %arg5: memref<16x32xf32, #tpu.memory_space<vmem>>, %arg6: memref<16x32xf32, #tpu.memory_space<vmem>>, %arg7: memref<1x8x32x32xf32, #tpu.memory_space<vmem>>) attributes {dimension_semantics = [#tpu.dimension_semantics<parallel>, #tpu.dimension_semantics<parallel>], iteration_bounds = array<i64: 2, 1>, scalar_prefetch = 0 : i64, scratch_operands = 0 : i64, tpu.core_type = #tpu.core_type<tc>, window_params = [{transform_indices = @transform_0, window_bounds = array<i64: 1, 4, 16, 16>}, {pipeline_mode = #tpu.pipeline_mode<synchronous>, transform_indices = @transform_1, window_bounds = array<i64: 32, 4>}, {pipeline_mode = #tpu.pipeline_mode<synchronous>, transform_indices = @transform_2, window_bounds = array<i64: 8, 1>}, {pipeline_mode = #tpu.pipeline_mode<synchronous>, transform_indices = @transform_3, window_bounds = array<i64: 16, 32>}, {pipeline_mode = #tpu.pipeline_mode<synchronous>, transform_indices = @transform_4, window_bounds = array<i64: 16, 32>}, {transform_indices = @transform_5, window_bounds = array<i64: 1, 8, 32, 32>}]} {
    %c0 = arith.constant 0 : index
    %c0_0 = arith.constant 0 : index
    %0 = vector.load %arg3[%c0, %c0_0] : memref<32x4xf32, #tpu.memory_space<vmem>>, vector<32x4xf32>
    %c0_1 = arith.constant 0 : index
    %c0_2 = arith.constant 0 : index
    %1 = vector.load %arg4[%c0_1, %c0_2] : memref<8x1xf32, #tpu.memory_space<vmem>>, vector<8x1xf32>
    %c0_3 = arith.constant 0 : index
    %c0_4 = arith.constant 0 : index
    %2 = vector.load %arg5[%c0_3, %c0_4] : memref<16x32xf32, #tpu.memory_space<vmem>>, vector<16x32xf32>
    %c0_5 = arith.constant 0 : index
    %c0_6 = arith.constant 0 : index
    %3 = vector.load %arg6[%c0_5, %c0_6] : memref<16x32xf32, #tpu.memory_space<vmem>>, vector<16x32xf32>
    %c0_7 = arith.constant 0 : index
    %c0_8 = arith.constant 0 : index
    %c0_9 = arith.constant 0 : index
    %c0_10 = arith.constant 0 : index
    %4 = vector.load %arg2[%c0_7, %c0_8, %c0_9, %c0_10] : memref<1x4x16x16xf32, #tpu.memory_space<vmem>>, vector<1x4x1x16xf32>
    %5 = vector.shape_cast %4 : vector<1x4x1x16xf32> to vector<4x16xf32>
    %cst = arith.constant dense<0.000000e+00> : vector<32x16xf32>
    %6 = tpu.matmul %0, %5, %cst {dimension_numbers = #tpu.dot_dimension_numbers<[1], [0], [0], [1], [0, 0, 1, 1], [], []>} : vector<32x4xf32>, vector<4x16xf32>, vector<32x16xf32> -> vector<32x16xf32>
    %7 = vector.extract_strided_slice %6 {offsets = [0, 0], sizes = [8, 16], strides = [1, 1]} : vector<32x16xf32> to vector<8x16xf32>
    %8 = vector.extract_strided_slice %6 {offsets = [8, 0], sizes = [8, 16], strides = [1, 1]} : vector<32x16xf32> to vector<8x16xf32>
    %cst_11 = arith.constant dense<0.000000e+00> : vector<8x32xf32>
    %9 = tpu.matmul %7, %2, %cst_11 {dimension_numbers = #tpu.dot_dimension_numbers<[1], [0], [0], [1], [0, 0, 1, 1], [], []>} : vector<8x16xf32>, vector<16x32xf32>, vector<8x32xf32> -> vector<8x32xf32>
    %cst_12 = arith.constant dense<0.000000e+00> : vector<8x32xf32>
    %10 = tpu.matmul %8, %3, %cst_12 {dimension_numbers = #tpu.dot_dimension_numbers<[1], [0], [0], [1], [0, 0, 1, 1], [], []>} : vector<8x16xf32>, vector<16x32xf32>, vector<8x32xf32> -> vector<8x32xf32>
    %11 = arith.addf %9, %10 : vector<8x32xf32>
    %12 = vector.broadcast %1 : vector<8x1xf32> to vector<8x32xf32>
    %13 = arith.addf %11, %12 : vector<8x32xf32>
    %c0_13 = arith.constant 0 : index
    %c0_14 = arith.constant 0 : index
    %c0_15 = arith.constant 0 : index
    %c0_16 = arith.constant 0 : index
    %14 = vector.load %arg7[%c0_13, %c0_14, %c0_15, %c0_16] : memref<1x8x32x32xf32, #tpu.memory_space<vmem>>, vector<1x8x1x32xf32>
    %15 = vector.shape_cast %14 : vector<1x8x1x32xf32> to vector<8x32xf32>
    %16 = vector.shape_cast %13 : vector<8x32xf32> to vector<1x8x1x32xf32>
    tpu.vector_store %arg7[%c0_13, %c0_14, %c0_15, %c0_16], %16 {strides = array<i32>} : memref<1x8x32x32xf32, #tpu.memory_space<vmem>>, vector<1x8x1x32xf32>,
    %17 = vector.extract_strided_slice %6 {offsets = [16, 0], sizes = [8, 16], strides = [1, 1]} : vector<32x16xf32> to vector<8x16xf32>
    %18 = vector.extract_strided_slice %6 {offsets = [24, 0], sizes = [8, 16], strides = [1, 1]} : vector<32x16xf32> to vector<8x16xf32>
    %cst_17 = arith.constant dense<0.000000e+00> : vector<8x32xf32>
    %19 = tpu.matmul %17, %2, %cst_17 {dimension_numbers = #tpu.dot_dimension_numbers<[1], [0], [0], [1], [0, 0, 1, 1], [], []>} : vector<8x16xf32>, vector<16x32xf32>, vector<8x32xf32> -> vector<8x32xf32>
    %cst_18 = arith.constant dense<0.000000e+00> : vector<8x32xf32>
    %20 = tpu.matmul %18, %3, %cst_18 {dimension_numbers = #tpu.dot_dimension_numbers<[1], [0], [0], [1], [0, 0, 1, 1], [], []>} : vector<8x16xf32>, vector<16x32xf32>, vector<8x32xf32> -> vector<8x32xf32>
    %21 = arith.addf %19, %20 : vector<8x32xf32>
    %22 = vector.broadcast %1 : vector<8x1xf32> to vector<8x32xf32>
    %23 = arith.addf %21, %22 : vector<8x32xf32>
    %c0_19 = arith.constant 0 : index
    %c0_20 = arith.constant 0 : index
    %c1 = arith.constant 1 : index
    %c0_21 = arith.constant 0 : index
    %24 = vector.load %arg7[%c0_19, %c0_20, %c1, %c0_21] : memref<1x8x32x32xf32, #tpu.memory_space<vmem>>, vector<1x8x1x32xf32>
    %25 = vector.shape_cast %24 : vector<1x8x1x32xf32> to vector<8x32xf32>
    %26 = vector.shape_cast %23 : vector<8x32xf32> to vector<1x8x1x32xf32>
    tpu.vector_store %arg7[%c0_19, %c0_20, %c1, %c0_21], %26 {strides = array<i32>} : memref<1x8x32x32xf32, #tpu.memory_space<vmem>>, vector<1x8x1x32xf32>,
    %c0_22 = arith.constant 0 : index
    %c0_23 = arith.constant 0 : index
    %c1_24 = arith.constant 1 : index
    %c0_25 = arith.constant 0 : index
    %27 = vector.load %arg2[%c0_22, %c0_23, %c1_24, %c0_25] : memref<1x4x16x16xf32, #tpu.memory_space<vmem>>, vector<1x4x1x16xf32>
    %28 = vector.shape_cast %27 : vector<1x4x1x16xf32> to vector<4x16xf32>
    %cst_26 = arith.constant dense<0.000000e+00> : vector<32x16xf32>
    %29 = tpu.matmul %0, %28, %cst_26 {dimension_numbers = #tpu.dot_dimension_numbers<[1], [0], [0], [1], [0, 0, 1, 1], [], []>} : vector<32x4xf32>, vector<4x16xf32>, vector<32x16xf32> -> vector<32x16xf32>
    %30 = vector.extract_strided_slice %29 {offsets = [0, 0], sizes = [8, 16], strides = [1, 1]} : vector<32x16xf32> to vector<8x16xf32>
    %31 = vector.extract_strided_slice %29 {offsets = [8, 0], sizes = [8, 16], strides = [1, 1]} : vector<32x16xf32> to vector<8x16xf32>
    %cst_27 = arith.constant dense<0.000000e+00> : vector<8x32xf32>
    %32 = tpu.matmul %30, %2, %cst_27 {dimension_numbers = #tpu.dot_dimension_numbers<[1], [0], [0], [1], [0, 0, 1, 1], [], []>} : vector<8x16xf32>, vector<16x32xf32>, vector<8x32xf32> -> vector<8x32xf32>
    %cst_28 = arith.constant dense<0.000000e+00> : vector<8x32xf32>
    %33 = tpu.matmul %31, %3, %cst_28 {dimension_numbers = #tpu.dot_dimension_numbers<[1], [0], [0], [1], [0, 0, 1, 1], [], []>} : vector<8x16xf32>, vector<16x32xf32>, vector<8x32xf32> -> vector<8x32xf32>
    %34 = arith.addf %32, %33 : vector<8x32xf32>
    %35 = vector.broadcast %1 : vector<8x1xf32> to vector<8x32xf32>
    %36 = arith.addf %34, %35 : vector<8x32xf32>
    %c0_29 = arith.constant 0 : index
    %c0_30 = arith.constant 0 : index
    %c2 = arith.constant 2 : index
    %c0_31 = arith.constant 0 : index
    %37 = vector.load %arg7[%c0_29, %c0_30, %c2, %c0_31] : memref<1x8x32x32xf32, #tpu.memory_space<vmem>>, vector<1x8x1x32xf32>
    %38 = vector.shape_cast %37 : vector<1x8x1x32xf32> to vector<8x32xf32>
    %39 = vector.shape_cast %36 : vector<8x32xf32> to vector<1x8x1x32xf32>
    tpu.vector_store %arg7[%c0_29, %c0_30, %c2, %c0_31], %39 {strides = array<i32>} : memref<1x8x32x32xf32, #tpu.memory_space<vmem>>, vector<1x8x1x32xf32>,
    %40 = vector.extract_strided_slice %29 {offsets = [16, 0], sizes = [8, 16], strides = [1, 1]} : vector<32x16xf32> to vector<8x16xf32>
    %41 = vector.extract_strided_slice %29 {offsets = [24, 0], sizes = [8, 16], strides = [1, 1]} : vector<32x16xf32> to vector<8x16xf32>
    %cst_32 = arith.constant dense<0.000000e+00> : vector<8x32xf32>
    %42 = tpu.matmul %40, %2, %cst_32 {dimension_numbers = #tpu.dot_dimension_numbers<[1], [0], [0], [1], [0, 0, 1, 1], [], []>} : vector<8x16xf32>, vector<16x32xf32>, vector<8x32xf32> -> vector<8x32xf32>
    %cst_33 = arith.constant dense<0.000000e+00> : vector<8x32xf32>
    %43 = tpu.matmul %41, %3, %cst_33 {dimension_numbers = #tpu.dot_dimension_numbers<[1], [0], [0], [1], [0, 0, 1, 1], [], []>} : vector<8x16xf32>, vector<16x32xf32>, vector<8x32xf32> -> vector<8x32xf32>
    %44 = arith.addf %42, %43 : vector<8x32xf32>
    %45 = vector.broadcast %1 : vector<8x1xf32> to vector<8x32xf32>
    %46 = arith.addf %44, %45 : vector<8x32xf32>
    %c0_34 = arith.constant 0 : index
    %c0_35 = arith.constant 0 : index
    %c3 = arith.constant 3 : index
    %c0_36 = arith.constant 0 : index
    %47 = vector.load %arg7[%c0_34, %c0_35, %c3, %c0_36] : memref<1x8x32x32xf32, #tpu.memory_space<vmem>>, vector<1x8x1x32xf32>
    %48 = vector.shape_cast %47 : vector<1x8x1x32xf32> to vector<8x32xf32>
    %49 = vector.shape_cast %46 : vector<8x32xf32> to vector<1x8x1x32xf32>
    tpu.vector_store %arg7[%c0_34, %c0_35, %c3, %c0_36], %49 {strides = array<i32>} : memref<1x8x32x32xf32, #tpu.memory_space<vmem>>, vector<1x8x1x32xf32>,
    %c0_37 = arith.constant 0 : index
    %c0_38 = arith.constant 0 : index
    %c2_39 = arith.constant 2 : index
    %c0_40 = arith.constant 0 : index
    %50 = vector.load %arg2[%c0_37, %c0_38, %c2_39, %c0_40] : memref<1x4x16x16xf32, #tpu.memory_space<vmem>>, vector<1x4x1x16xf32>
    %51 = vector.shape_cast %50 : vector<1x4x1x16xf32> to vector<4x16xf32>
    %cst_41 = arith.constant dense<0.000000e+00> : vector<32x16xf32>
    %52 = tpu.matmul %0, %51, %cst_41 {dimension_numbers = #tpu.dot_dimension_numbers<[1], [0], [0], [1], [0, 0, 1, 1], [], []>} : vector<32x4xf32>, vector<4x16xf32>, vector<32x16xf32> -> vector<32x16xf32>
    %53 = vector.extract_strided_slice %52 {offsets = [0, 0], sizes = [8, 16], strides = [1, 1]} : vector<32x16xf32> to vector<8x16xf32>
    %54 = vector.extract_strided_slice %52 {offsets = [8, 0], sizes = [8, 16], strides = [1, 1]} : vector<32x16xf32> to vector<8x16xf32>
    %cst_42 = arith.constant dense<0.000000e+00> : vector<8x32xf32>
    %55 = tpu.matmul %53, %2, %cst_42 {dimension_numbers = #tpu.dot_dimension_numbers<[1], [0], [0], [1], [0, 0, 1, 1], [], []>} : vector<8x16xf32>, vector<16x32xf32>, vector<8x32xf32> -> vector<8x32xf32>
    %cst_43 = arith.constant dense<0.000000e+00> : vector<8x32xf32>
    %56 = tpu.matmul %54, %3, %cst_43 {dimension_numbers = #tpu.dot_dimension_numbers<[1], [0], [0], [1], [0, 0, 1, 1], [], []>} : vector<8x16xf32>, vector<16x32xf32>, vector<8x32xf32> -> vector<8x32xf32>
    %57 = arith.addf %55, %56 : vector<8x32xf32>
    %58 = vector.broadcast %1 : vector<8x1xf32> to vector<8x32xf32>
    %59 = arith.addf %57, %58 : vector<8x32xf32>
    %c0_44 = arith.constant 0 : index
    %c0_45 = arith.constant 0 : index
    %c4 = arith.constant 4 : index
    %c0_46 = arith.constant 0 : index
    %60 = vector.load %arg7[%c0_44, %c0_45, %c4, %c0_46] : memref<1x8x32x32xf32, #tpu.memory_space<vmem>>, vector<1x8x1x32xf32>
    %61 = vector.shape_cast %60 : vector<1x8x1x32xf32> to vector<8x32xf32>
    %62 = vector.shape_cast %59 : vector<8x32xf32> to vector<1x8x1x32xf32>
    tpu.vector_store %arg7[%c0_44, %c0_45, %c4, %c0_46], %62 {strides = array<i32>} : memref<1x8x32x32xf32, #tpu.memory_space<vmem>>, vector<1x8x1x32xf32>,
    %63 = vector.extract_strided_slice %52 {offsets = [16, 0], sizes = [8, 16], strides = [1, 1]} : vector<32x16xf32> to vector<8x16xf32>
    %64 = vector.extract_strided_slice %52 {offsets = [24, 0], sizes = [8, 16], strides = [1, 1]} : vector<32x16xf32> to vector<8x16xf32>
    %cst_47 = arith.constant dense<0.000000e+00> : vector<8x32xf32>
    %65 = tpu.matmul %63, %2, %cst_47 {dimension_numbers = #tpu.dot_dimension_numbers<[1], [0], [0], [1], [0, 0, 1, 1], [], []>} : vector<8x16xf32>, vector<16x32xf32>, vector<8x32xf32> -> vector<8x32xf32>
    %cst_48 = arith.constant dense<0.000000e+00> : vector<8x32xf32>
    %66 = tpu.matmul %64, %3, %cst_48 {dimension_numbers = #tpu.dot_dimension_numbers<[1], [0], [0], [1], [0, 0, 1, 1], [], []>} : vector<8x16xf32>, vector<16x32xf32>, vector<8x32xf32> -> vector<8x32xf32>
    %67 = arith.addf %65, %66 : vector<8x32xf32>
    %68 = vector.broadcast %1 : vector<8x1xf32> to vector<8x32xf32>
    %69 = arith.addf %67, %68 : vector<8x32xf32>
    %c0_49 = arith.constant 0 : index
    %c0_50 = arith.constant 0 : index
    %c5 = arith.constant 5 : index
    %c0_51 = arith.constant 0 : index
    %70 = vector.load %arg7[%c0_49, %c0_50, %c5, %c0_51] : memref<1x8x32x32xf32, #tpu.memory_space<vmem>>, vector<1x8x1x32xf32>
    %71 = vector.shape_cast %70 : vector<1x8x1x32xf32> to vector<8x32xf32>
    %72 = vector.shape_cast %69 : vector<8x32xf32> to vector<1x8x1x32xf32>
    tpu.vector_store %arg7[%c0_49, %c0_50, %c5, %c0_51], %72 {strides = array<i32>} : memref<1x8x32x32xf32, #tpu.memory_space<vmem>>, vector<1x8x1x32xf32>,
    %c0_52 = arith.constant 0 : index
    %c0_53 = arith.constant 0 : index
    %c3_54 = arith.constant 3 : index
    %c0_55 = arith.constant 0 : index
    %73 = vector.load %arg2[%c0_52, %c0_53, %c3_54, %c0_55] : memref<1x4x16x16xf32, #tpu.memory_space<vmem>>, vector<1x4x1x16xf32>
    %74 = vector.shape_cast %73 : vector<1x4x1x16xf32> to vector<4x16xf32>
    %cst_56 = arith.constant dense<0.000000e+00> : vector<32x16xf32>
    %75 = tpu.matmul %0, %74, %cst_56 {dimension_numbers = #tpu.dot_dimension_numbers<[1], [0], [0], [1], [0, 0, 1, 1], [], []>} : vector<32x4xf32>, vector<4x16xf32>, vector<32x16xf32> -> vector<32x16xf32>
    %76 = vector.extract_strided_slice %75 {offsets = [0, 0], sizes = [8, 16], strides = [1, 1]} : vector<32x16xf32> to vector<8x16xf32>
    %77 = vector.extract_strided_slice %75 {offsets = [8, 0], sizes = [8, 16], strides = [1, 1]} : vector<32x16xf32> to vector<8x16xf32>
    %cst_57 = arith.constant dense<0.000000e+00> : vector<8x32xf32>
    %78 = tpu.matmul %76, %2, %cst_57 {dimension_numbers = #tpu.dot_dimension_numbers<[1], [0], [0], [1], [0, 0, 1, 1], [], []>} : vector<8x16xf32>, vector<16x32xf32>, vector<8x32xf32> -> vector<8x32xf32>
    %cst_58 = arith.constant dense<0.000000e+00> : vector<8x32xf32>
    %79 = tpu.matmul %77, %3, %cst_58 {dimension_numbers = #tpu.dot_dimension_numbers<[1], [0], [0], [1], [0, 0, 1, 1], [], []>} : vector<8x16xf32>, vector<16x32xf32>, vector<8x32xf32> -> vector<8x32xf32>
    %80 = arith.addf %78, %79 : vector<8x32xf32>
    %81 = vector.broadcast %1 : vector<8x1xf32> to vector<8x32xf32>
    %82 = arith.addf %80, %81 : vector<8x32xf32>
    %c0_59 = arith.constant 0 : index
    %c0_60 = arith.constant 0 : index
    %c6 = arith.constant 6 : index
    %c0_61 = arith.constant 0 : index
    %83 = vector.load %arg7[%c0_59, %c0_60, %c6, %c0_61] : memref<1x8x32x32xf32, #tpu.memory_space<vmem>>, vector<1x8x1x32xf32>
    %84 = vector.shape_cast %83 : vector<1x8x1x32xf32> to vector<8x32xf32>
    %85 = vector.shape_cast %82 : vector<8x32xf32> to vector<1x8x1x32xf32>
    tpu.vector_store %arg7[%c0_59, %c0_60, %c6, %c0_61], %85 {strides = array<i32>} : memref<1x8x32x32xf32, #tpu.memory_space<vmem>>, vector<1x8x1x32xf32>,
    %86 = vector.extract_strided_slice %75 {offsets = [16, 0], sizes = [8, 16], strides = [1, 1]} : vector<32x16xf32> to vector<8x16xf32>
    %87 = vector.extract_strided_slice %75 {offsets = [24, 0], sizes = [8, 16], strides = [1, 1]} : vector<32x16xf32> to vector<8x16xf32>
    %cst_62 = arith.constant dense<0.000000e+00> : vector<8x32xf32>
    %88 = tpu.matmul %86, %2, %cst_62 {dimension_numbers = #tpu.dot_dimension_numbers<[1], [0], [0], [1], [0, 0, 1, 1], [], []>} : vector<8x16xf32>, vector<16x32xf32>, vector<8x32xf32> -> vector<8x32xf32>
    %cst_63 = arith.constant dense<0.000000e+00> : vector<8x32xf32>
    %89 = tpu.matmul %87, %3, %cst_63 {dimension_numbers = #tpu.dot_dimension_numbers<[1], [0], [0], [1], [0, 0, 1, 1], [], []>} : vector<8x16xf32>, vector<16x32xf32>, vector<8x32xf32> -> vector<8x32xf32>
    %90 = arith.addf %88, %89 : vector<8x32xf32>
    %91 = vector.broadcast %1 : vector<8x1xf32> to vector<8x32xf32>
    %92 = arith.addf %90, %91 : vector<8x32xf32>
    %c0_64 = arith.constant 0 : index
    %c0_65 = arith.constant 0 : index
    %c7 = arith.constant 7 : index
    %c0_66 = arith.constant 0 : index
    %93 = vector.load %arg7[%c0_64, %c0_65, %c7, %c0_66] : memref<1x8x32x32xf32, #tpu.memory_space<vmem>>, vector<1x8x1x32xf32>
    %94 = vector.shape_cast %93 : vector<1x8x1x32xf32> to vector<8x32xf32>
    %95 = vector.shape_cast %92 : vector<8x32xf32> to vector<1x8x1x32xf32>
    tpu.vector_store %arg7[%c0_64, %c0_65, %c7, %c0_66], %95 {strides = array<i32>} : memref<1x8x32x32xf32, #tpu.memory_space<vmem>>, vector<1x8x1x32xf32>,
    %c0_67 = arith.constant 0 : index
    %c0_68 = arith.constant 0 : index
    %c4_69 = arith.constant 4 : index
    %c0_70 = arith.constant 0 : index
    %96 = vector.load %arg2[%c0_67, %c0_68, %c4_69, %c0_70] : memref<1x4x16x16xf32, #tpu.memory_space<vmem>>, vector<1x4x1x16xf32>
    %97 = vector.shape_cast %96 : vector<1x4x1x16xf32> to vector<4x16xf32>
    %cst_71 = arith.constant dense<0.000000e+00> : vector<32x16xf32>
    %98 = tpu.matmul %0, %97, %cst_71 {dimension_numbers = #tpu.dot_dimension_numbers<[1], [0], [0], [1], [0, 0, 1, 1], [], []>} : vector<32x4xf32>, vector<4x16xf32>, vector<32x16xf32> -> vector<32x16xf32>
    %99 = vector.extract_strided_slice %98 {offsets = [0, 0], sizes = [8, 16], strides = [1, 1]} : vector<32x16xf32> to vector<8x16xf32>
    %100 = vector.extract_strided_slice %98 {offsets = [8, 0], sizes = [8, 16], strides = [1, 1]} : vector<32x16xf32> to vector<8x16xf32>
    %cst_72 = arith.constant dense<0.000000e+00> : vector<8x32xf32>
    %101 = tpu.matmul %99, %2, %cst_72 {dimension_numbers = #tpu.dot_dimension_numbers<[1], [0], [0], [1], [0, 0, 1, 1], [], []>} : vector<8x16xf32>, vector<16x32xf32>, vector<8x32xf32> -> vector<8x32xf32>
    %cst_73 = arith.constant dense<0.000000e+00> : vector<8x32xf32>
    %102 = tpu.matmul %100, %3, %cst_73 {dimension_numbers = #tpu.dot_dimension_numbers<[1], [0], [0], [1], [0, 0, 1, 1], [], []>} : vector<8x16xf32>, vector<16x32xf32>, vector<8x32xf32> -> vector<8x32xf32>
    %103 = arith.addf %101, %102 : vector<8x32xf32>
    %104 = vector.broadcast %1 : vector<8x1xf32> to vector<8x32xf32>
    %105 = arith.addf %103, %104 : vector<8x32xf32>
    %c0_74 = arith.constant 0 : index
    %c0_75 = arith.constant 0 : index
    %c8 = arith.constant 8 : index
    %c0_76 = arith.constant 0 : index
    %106 = vector.load %arg7[%c0_74, %c0_75, %c8, %c0_76] : memref<1x8x32x32xf32, #tpu.memory_space<vmem>>, vector<1x8x1x32xf32>
    %107 = vector.shape_cast %106 : vector<1x8x1x32xf32> to vector<8x32xf32>
    %108 = vector.shape_cast %105 : vector<8x32xf32> to vector<1x8x1x32xf32>
    tpu.vector_store %arg7[%c0_74, %c0_75, %c8, %c0_76], %108 {strides = array<i32>} : memref<1x8x32x32xf32, #tpu.memory_space<vmem>>, vector<1x8x1x32xf32>,
    %109 = vector.extract_strided_slice %98 {offsets = [16, 0], sizes = [8, 16], strides = [1, 1]} : vector<32x16xf32> to vector<8x16xf32>
    %110 = vector.extract_strided_slice %98 {offsets = [24, 0], sizes = [8, 16], strides = [1, 1]} : vector<32x16xf32> to vector<8x16xf32>
    %cst_77 = arith.constant dense<0.000000e+00> : vector<8x32xf32>
    %111 = tpu.matmul %109, %2, %cst_77 {dimension_numbers = #tpu.dot_dimension_numbers<[1], [0], [0], [1], [0, 0, 1, 1], [], []>} : vector<8x16xf32>, vector<16x32xf32>, vector<8x32xf32> -> vector<8x32xf32>
    %cst_78 = arith.constant dense<0.000000e+00> : vector<8x32xf32>
    %112 = tpu.matmul %110, %3, %cst_78 {dimension_numbers = #tpu.dot_dimension_numbers<[1], [0], [0], [1], [0, 0, 1, 1], [], []>} : vector<8x16xf32>, vector<16x32xf32>, vector<8x32xf32> -> vector<8x32xf32>
    %113 = arith.addf %111, %112 : vector<8x32xf32>
    %114 = vector.broadcast %1 : vector<8x1xf32> to vector<8x32xf32>
    %115 = arith.addf %113, %114 : vector<8x32xf32>
    %c0_79 = arith.constant 0 : index
    %c0_80 = arith.constant 0 : index
    %c9 = arith.constant 9 : index
    %c0_81 = arith.constant 0 : index
    %116 = vector.load %arg7[%c0_79, %c0_80, %c9, %c0_81] : memref<1x8x32x32xf32, #tpu.memory_space<vmem>>, vector<1x8x1x32xf32>
    %117 = vector.shape_cast %116 : vector<1x8x1x32xf32> to vector<8x32xf32>
    %118 = vector.shape_cast %115 : vector<8x32xf32> to vector<1x8x1x32xf32>
    tpu.vector_store %arg7[%c0_79, %c0_80, %c9, %c0_81], %118 {strides = array<i32>} : memref<1x8x32x32xf32, #tpu.memory_space<vmem>>, vector<1x8x1x32xf32>,
    %c0_82 = arith.constant 0 : index
    %c0_83 = arith.constant 0 : index
    %c5_84 = arith.constant 5 : index
    %c0_85 = arith.constant 0 : index
    %119 = vector.load %arg2[%c0_82, %c0_83, %c5_84, %c0_85] : memref<1x4x16x16xf32, #tpu.memory_space<vmem>>, vector<1x4x1x16xf32>
    %120 = vector.shape_cast %119 : vector<1x4x1x16xf32> to vector<4x16xf32>
    %cst_86 = arith.constant dense<0.000000e+00> : vector<32x16xf32>
    %121 = tpu.matmul %0, %120, %cst_86 {dimension_numbers = #tpu.dot_dimension_numbers<[1], [0], [0], [1], [0, 0, 1, 1], [], []>} : vector<32x4xf32>, vector<4x16xf32>, vector<32x16xf32> -> vector<32x16xf32>
    %122 = vector.extract_strided_slice %121 {offsets = [0, 0], sizes = [8, 16], strides = [1, 1]} : vector<32x16xf32> to vector<8x16xf32>
    %123 = vector.extract_strided_slice %121 {offsets = [8, 0], sizes = [8, 16], strides = [1, 1]} : vector<32x16xf32> to vector<8x16xf32>
    %cst_87 = arith.constant dense<0.000000e+00> : vector<8x32xf32>
    %124 = tpu.matmul %122, %2, %cst_87 {dimension_numbers = #tpu.dot_dimension_numbers<[1], [0], [0], [1], [0, 0, 1, 1], [], []>} : vector<8x16xf32>, vector<16x32xf32>, vector<8x32xf32> -> vector<8x32xf32>
    %cst_88 = arith.constant dense<0.000000e+00> : vector<8x32xf32>
    %125 = tpu.matmul %123, %3, %cst_88 {dimension_numbers = #tpu.dot_dimension_numbers<[1], [0], [0], [1], [0, 0, 1, 1], [], []>} : vector<8x16xf32>, vector<16x32xf32>, vector<8x32xf32> -> vector<8x32xf32>
    %126 = arith.addf %124, %125 : vector<8x32xf32>
    %127 = vector.broadcast %1 : vector<8x1xf32> to vector<8x32xf32>
    %128 = arith.addf %126, %127 : vector<8x32xf32>
    %c0_89 = arith.constant 0 : index
    %c0_90 = arith.constant 0 : index
    %c10 = arith.constant 10 : index
    %c0_91 = arith.constant 0 : index
    %129 = vector.load %arg7[%c0_89, %c0_90, %c10, %c0_91] : memref<1x8x32x32xf32, #tpu.memory_space<vmem>>, vector<1x8x1x32xf32>
    %130 = vector.shape_cast %129 : vector<1x8x1x32xf32> to vector<8x32xf32>
    %131 = vector.shape_cast %128 : vector<8x32xf32> to vector<1x8x1x32xf32>
    tpu.vector_store %arg7[%c0_89, %c0_90, %c10, %c0_91], %131 {strides = array<i32>} : memref<1x8x32x32xf32, #tpu.memory_space<vmem>>, vector<1x8x1x32xf32>,
    %132 = vector.extract_strided_slice %121 {offsets = [16, 0], sizes = [8, 16], strides = [1, 1]} : vector<32x16xf32> to vector<8x16xf32>
    %133 = vector.extract_strided_slice %121 {offsets = [24, 0], sizes = [8, 16], strides = [1, 1]} : vector<32x16xf32> to vector<8x16xf32>
    %cst_92 = arith.constant dense<0.000000e+00> : vector<8x32xf32>
    %134 = tpu.matmul %132, %2, %cst_92 {dimension_numbers = #tpu.dot_dimension_numbers<[1], [0], [0], [1], [0, 0, 1, 1], [], []>} : vector<8x16xf32>, vector<16x32xf32>, vector<8x32xf32> -> vector<8x32xf32>
    %cst_93 = arith.constant dense<0.000000e+00> : vector<8x32xf32>
    %135 = tpu.matmul %133, %3, %cst_93 {dimension_numbers = #tpu.dot_dimension_numbers<[1], [0], [0], [1], [0, 0, 1, 1], [], []>} : vector<8x16xf32>, vector<16x32xf32>, vector<8x32xf32> -> vector<8x32xf32>
    %136 = arith.addf %134, %135 : vector<8x32xf32>
    %137 = vector.broadcast %1 : vector<8x1xf32> to vector<8x32xf32>
    %138 = arith.addf %136, %137 : vector<8x32xf32>
    %c0_94 = arith.constant 0 : index
    %c0_95 = arith.constant 0 : index
    %c11 = arith.constant 11 : index
    %c0_96 = arith.constant 0 : index
    %139 = vector.load %arg7[%c0_94, %c0_95, %c11, %c0_96] : memref<1x8x32x32xf32, #tpu.memory_space<vmem>>, vector<1x8x1x32xf32>
    %140 = vector.shape_cast %139 : vector<1x8x1x32xf32> to vector<8x32xf32>
    %141 = vector.shape_cast %138 : vector<8x32xf32> to vector<1x8x1x32xf32>
    tpu.vector_store %arg7[%c0_94, %c0_95, %c11, %c0_96], %141 {strides = array<i32>} : memref<1x8x32x32xf32, #tpu.memory_space<vmem>>, vector<1x8x1x32xf32>,
    %c0_97 = arith.constant 0 : index
    %c0_98 = arith.constant 0 : index
    %c6_99 = arith.constant 6 : index
    %c0_100 = arith.constant 0 : index
    %142 = vector.load %arg2[%c0_97, %c0_98, %c6_99, %c0_100] : memref<1x4x16x16xf32, #tpu.memory_space<vmem>>, vector<1x4x1x16xf32>
    %143 = vector.shape_cast %142 : vector<1x4x1x16xf32> to vector<4x16xf32>
    %cst_101 = arith.constant dense<0.000000e+00> : vector<32x16xf32>
    %144 = tpu.matmul %0, %143, %cst_101 {dimension_numbers = #tpu.dot_dimension_numbers<[1], [0], [0], [1], [0, 0, 1, 1], [], []>} : vector<32x4xf32>, vector<4x16xf32>, vector<32x16xf32> -> vector<32x16xf32>
    %145 = vector.extract_strided_slice %144 {offsets = [0, 0], sizes = [8, 16], strides = [1, 1]} : vector<32x16xf32> to vector<8x16xf32>
    %146 = vector.extract_strided_slice %144 {offsets = [8, 0], sizes = [8, 16], strides = [1, 1]} : vector<32x16xf32> to vector<8x16xf32>
    %cst_102 = arith.constant dense<0.000000e+00> : vector<8x32xf32>
    %147 = tpu.matmul %145, %2, %cst_102 {dimension_numbers = #tpu.dot_dimension_numbers<[1], [0], [0], [1], [0, 0, 1, 1], [], []>} : vector<8x16xf32>, vector<16x32xf32>, vector<8x32xf32> -> vector<8x32xf32>
    %cst_103 = arith.constant dense<0.000000e+00> : vector<8x32xf32>
    %148 = tpu.matmul %146, %3, %cst_103 {dimension_numbers = #tpu.dot_dimension_numbers<[1], [0], [0], [1], [0, 0, 1, 1], [], []>} : vector<8x16xf32>, vector<16x32xf32>, vector<8x32xf32> -> vector<8x32xf32>
    %149 = arith.addf %147, %148 : vector<8x32xf32>
    %150 = vector.broadcast %1 : vector<8x1xf32> to vector<8x32xf32>
    %151 = arith.addf %149, %150 : vector<8x32xf32>
    %c0_104 = arith.constant 0 : index
    %c0_105 = arith.constant 0 : index
    %c12 = arith.constant 12 : index
    %c0_106 = arith.constant 0 : index
    %152 = vector.load %arg7[%c0_104, %c0_105, %c12, %c0_106] : memref<1x8x32x32xf32, #tpu.memory_space<vmem>>, vector<1x8x1x32xf32>
    %153 = vector.shape_cast %152 : vector<1x8x1x32xf32> to vector<8x32xf32>
    %154 = vector.shape_cast %151 : vector<8x32xf32> to vector<1x8x1x32xf32>
    tpu.vector_store %arg7[%c0_104, %c0_105, %c12, %c0_106], %154 {strides = array<i32>} : memref<1x8x32x32xf32, #tpu.memory_space<vmem>>, vector<1x8x1x32xf32>,
    %155 = vector.extract_strided_slice %144 {offsets = [16, 0], sizes = [8, 16], strides = [1, 1]} : vector<32x16xf32> to vector<8x16xf32>
    %156 = vector.extract_strided_slice %144 {offsets = [24, 0], sizes = [8, 16], strides = [1, 1]} : vector<32x16xf32> to vector<8x16xf32>
    %cst_107 = arith.constant dense<0.000000e+00> : vector<8x32xf32>
    %157 = tpu.matmul %155, %2, %cst_107 {dimension_numbers = #tpu.dot_dimension_numbers<[1], [0], [0], [1], [0, 0, 1, 1], [], []>} : vector<8x16xf32>, vector<16x32xf32>, vector<8x32xf32> -> vector<8x32xf32>
    %cst_108 = arith.constant dense<0.000000e+00> : vector<8x32xf32>
    %158 = tpu.matmul %156, %3, %cst_108 {dimension_numbers = #tpu.dot_dimension_numbers<[1], [0], [0], [1], [0, 0, 1, 1], [], []>} : vector<8x16xf32>, vector<16x32xf32>, vector<8x32xf32> -> vector<8x32xf32>
    %159 = arith.addf %157, %158 : vector<8x32xf32>
    %160 = vector.broadcast %1 : vector<8x1xf32> to vector<8x32xf32>
    %161 = arith.addf %159, %160 : vector<8x32xf32>
    %c0_109 = arith.constant 0 : index
    %c0_110 = arith.constant 0 : index
    %c13 = arith.constant 13 : index
    %c0_111 = arith.constant 0 : index
    %162 = vector.load %arg7[%c0_109, %c0_110, %c13, %c0_111] : memref<1x8x32x32xf32, #tpu.memory_space<vmem>>, vector<1x8x1x32xf32>
    %163 = vector.shape_cast %162 : vector<1x8x1x32xf32> to vector<8x32xf32>
    %164 = vector.shape_cast %161 : vector<8x32xf32> to vector<1x8x1x32xf32>
    tpu.vector_store %arg7[%c0_109, %c0_110, %c13, %c0_111], %164 {strides = array<i32>} : memref<1x8x32x32xf32, #tpu.memory_space<vmem>>, vector<1x8x1x32xf32>,
    %c0_112 = arith.constant 0 : index
    %c0_113 = arith.constant 0 : index
    %c7_114 = arith.constant 7 : index
    %c0_115 = arith.constant 0 : index
    %165 = vector.load %arg2[%c0_112, %c0_113, %c7_114, %c0_115] : memref<1x4x16x16xf32, #tpu.memory_space<vmem>>, vector<1x4x1x16xf32>
    %166 = vector.shape_cast %165 : vector<1x4x1x16xf32> to vector<4x16xf32>
    %cst_116 = arith.constant dense<0.000000e+00> : vector<32x16xf32>
    %167 = tpu.matmul %0, %166, %cst_116 {dimension_numbers = #tpu.dot_dimension_numbers<[1], [0], [0], [1], [0, 0, 1, 1], [], []>} : vector<32x4xf32>, vector<4x16xf32>, vector<32x16xf32> -> vector<32x16xf32>
    %168 = vector.extract_strided_slice %167 {offsets = [0, 0], sizes = [8, 16], strides = [1, 1]} : vector<32x16xf32> to vector<8x16xf32>
    %169 = vector.extract_strided_slice %167 {offsets = [8, 0], sizes = [8, 16], strides = [1, 1]} : vector<32x16xf32> to vector<8x16xf32>
    %cst_117 = arith.constant dense<0.000000e+00> : vector<8x32xf32>
    %170 = tpu.matmul %168, %2, %cst_117 {dimension_numbers = #tpu.dot_dimension_numbers<[1], [0], [0], [1], [0, 0, 1, 1], [], []>} : vector<8x16xf32>, vector<16x32xf32>, vector<8x32xf32> -> vector<8x32xf32>
    %cst_118 = arith.constant dense<0.000000e+00> : vector<8x32xf32>
    %171 = tpu.matmul %169, %3, %cst_118 {dimension_numbers = #tpu.dot_dimension_numbers<[1], [0], [0], [1], [0, 0, 1, 1], [], []>} : vector<8x16xf32>, vector<16x32xf32>, vector<8x32xf32> -> vector<8x32xf32>
    %172 = arith.addf %170, %171 : vector<8x32xf32>
    %173 = vector.broadcast %1 : vector<8x1xf32> to vector<8x32xf32>
    %174 = arith.addf %172, %173 : vector<8x32xf32>
    %c0_119 = arith.constant 0 : index
    %c0_120 = arith.constant 0 : index
    %c14 = arith.constant 14 : index
    %c0_121 = arith.constant 0 : index
    %175 = vector.load %arg7[%c0_119, %c0_120, %c14, %c0_121] : memref<1x8x32x32xf32, #tpu.memory_space<vmem>>, vector<1x8x1x32xf32>
    %176 = vector.shape_cast %175 : vector<1x8x1x32xf32> to vector<8x32xf32>
    %177 = vector.shape_cast %174 : vector<8x32xf32> to vector<1x8x1x32xf32>
    tpu.vector_store %arg7[%c0_119, %c0_120, %c14, %c0_121], %177 {strides = array<i32>} : memref<1x8x32x32xf32, #tpu.memory_space<vmem>>, vector<1x8x1x32xf32>,
    %178 = vector.extract_strided_slice %167 {offsets = [16, 0], sizes = [8, 16], strides = [1, 1]} : vector<32x16xf32> to vector<8x16xf32>
    %179 = vector.extract_strided_slice %167 {offsets = [24, 0], sizes = [8, 16], strides = [1, 1]} : vector<32x16xf32> to vector<8x16xf32>
    %cst_122 = arith.constant dense<0.000000e+00> : vector<8x32xf32>
    %180 = tpu.matmul %178, %2, %cst_122 {dimension_numbers = #tpu.dot_dimension_numbers<[1], [0], [0], [1], [0, 0, 1, 1], [], []>} : vector<8x16xf32>, vector<16x32xf32>, vector<8x32xf32> -> vector<8x32xf32>
    %cst_123 = arith.constant dense<0.000000e+00> : vector<8x32xf32>
    %181 = tpu.matmul %179, %3, %cst_123 {dimension_numbers = #tpu.dot_dimension_numbers<[1], [0], [0], [1], [0, 0, 1, 1], [], []>} : vector<8x16xf32>, vector<16x32xf32>, vector<8x32xf32> -> vector<8x32xf32>
    %182 = arith.addf %180, %181 : vector<8x32xf32>
    %183 = vector.broadcast %1 : vector<8x1xf32> to vector<8x32xf32>
    %184 = arith.addf %182, %183 : vector<8x32xf32>
    %c0_124 = arith.constant 0 : index
    %c0_125 = arith.constant 0 : index
    %c15 = arith.constant 15 : index
    %c0_126 = arith.constant 0 : index
    %185 = vector.load %arg7[%c0_124, %c0_125, %c15, %c0_126] : memref<1x8x32x32xf32, #tpu.memory_space<vmem>>, vector<1x8x1x32xf32>
    %186 = vector.shape_cast %185 : vector<1x8x1x32xf32> to vector<8x32xf32>
    %187 = vector.shape_cast %184 : vector<8x32xf32> to vector<1x8x1x32xf32>
    tpu.vector_store %arg7[%c0_124, %c0_125, %c15, %c0_126], %187 {strides = array<i32>} : memref<1x8x32x32xf32, #tpu.memory_space<vmem>>, vector<1x8x1x32xf32>,
    %c0_127 = arith.constant 0 : index
    %c0_128 = arith.constant 0 : index
    %c8_129 = arith.constant 8 : index
    %c0_130 = arith.constant 0 : index
    %188 = vector.load %arg2[%c0_127, %c0_128, %c8_129, %c0_130] : memref<1x4x16x16xf32, #tpu.memory_space<vmem>>, vector<1x4x1x16xf32>
    %189 = vector.shape_cast %188 : vector<1x4x1x16xf32> to vector<4x16xf32>
    %cst_131 = arith.constant dense<0.000000e+00> : vector<32x16xf32>
    %190 = tpu.matmul %0, %189, %cst_131 {dimension_numbers = #tpu.dot_dimension_numbers<[1], [0], [0], [1], [0, 0, 1, 1], [], []>} : vector<32x4xf32>, vector<4x16xf32>, vector<32x16xf32> -> vector<32x16xf32>
    %191 = vector.extract_strided_slice %190 {offsets = [0, 0], sizes = [8, 16], strides = [1, 1]} : vector<32x16xf32> to vector<8x16xf32>
    %192 = vector.extract_strided_slice %190 {offsets = [8, 0], sizes = [8, 16], strides = [1, 1]} : vector<32x16xf32> to vector<8x16xf32>
    %cst_132 = arith.constant dense<0.000000e+00> : vector<8x32xf32>
    %193 = tpu.matmul %191, %2, %cst_132 {dimension_numbers = #tpu.dot_dimension_numbers<[1], [0], [0], [1], [0, 0, 1, 1], [], []>} : vector<8x16xf32>, vector<16x32xf32>, vector<8x32xf32> -> vector<8x32xf32>
    %cst_133 = arith.constant dense<0.000000e+00> : vector<8x32xf32>
    %194 = tpu.matmul %192, %3, %cst_133 {dimension_numbers = #tpu.dot_dimension_numbers<[1], [0], [0], [1], [0, 0, 1, 1], [], []>} : vector<8x16xf32>, vector<16x32xf32>, vector<8x32xf32> -> vector<8x32xf32>
    %195 = arith.addf %193, %194 : vector<8x32xf32>
    %196 = vector.broadcast %1 : vector<8x1xf32> to vector<8x32xf32>
    %197 = arith.addf %195, %196 : vector<8x32xf32>
    %c0_134 = arith.constant 0 : index
    %c0_135 = arith.constant 0 : index
    %c16 = arith.constant 16 : index
    %c0_136 = arith.constant 0 : index
    %198 = vector.load %arg7[%c0_134, %c0_135, %c16, %c0_136] : memref<1x8x32x32xf32, #tpu.memory_space<vmem>>, vector<1x8x1x32xf32>
    %199 = vector.shape_cast %198 : vector<1x8x1x32xf32> to vector<8x32xf32>
    %200 = vector.shape_cast %197 : vector<8x32xf32> to vector<1x8x1x32xf32>
    tpu.vector_store %arg7[%c0_134, %c0_135, %c16, %c0_136], %200 {strides = array<i32>} : memref<1x8x32x32xf32, #tpu.memory_space<vmem>>, vector<1x8x1x32xf32>,
    %201 = vector.extract_strided_slice %190 {offsets = [16, 0], sizes = [8, 16], strides = [1, 1]} : vector<32x16xf32> to vector<8x16xf32>
    %202 = vector.extract_strided_slice %190 {offsets = [24, 0], sizes = [8, 16], strides = [1, 1]} : vector<32x16xf32> to vector<8x16xf32>
    %cst_137 = arith.constant dense<0.000000e+00> : vector<8x32xf32>
    %203 = tpu.matmul %201, %2, %cst_137 {dimension_numbers = #tpu.dot_dimension_numbers<[1], [0], [0], [1], [0, 0, 1, 1], [], []>} : vector<8x16xf32>, vector<16x32xf32>, vector<8x32xf32> -> vector<8x32xf32>
    %cst_138 = arith.constant dense<0.000000e+00> : vector<8x32xf32>
    %204 = tpu.matmul %202, %3, %cst_138 {dimension_numbers = #tpu.dot_dimension_numbers<[1], [0], [0], [1], [0, 0, 1, 1], [], []>} : vector<8x16xf32>, vector<16x32xf32>, vector<8x32xf32> -> vector<8x32xf32>
    %205 = arith.addf %203, %204 : vector<8x32xf32>
    %206 = vector.broadcast %1 : vector<8x1xf32> to vector<8x32xf32>
    %207 = arith.addf %205, %206 : vector<8x32xf32>
    %c0_139 = arith.constant 0 : index
    %c0_140 = arith.constant 0 : index
    %c17 = arith.constant 17 : index
    %c0_141 = arith.constant 0 : index
    %208 = vector.load %arg7[%c0_139, %c0_140, %c17, %c0_141] : memref<1x8x32x32xf32, #tpu.memory_space<vmem>>, vector<1x8x1x32xf32>
    %209 = vector.shape_cast %208 : vector<1x8x1x32xf32> to vector<8x32xf32>
    %210 = vector.shape_cast %207 : vector<8x32xf32> to vector<1x8x1x32xf32>
    tpu.vector_store %arg7[%c0_139, %c0_140, %c17, %c0_141], %210 {strides = array<i32>} : memref<1x8x32x32xf32, #tpu.memory_space<vmem>>, vector<1x8x1x32xf32>,
    %c0_142 = arith.constant 0 : index
    %c0_143 = arith.constant 0 : index
    %c9_144 = arith.constant 9 : index
    %c0_145 = arith.constant 0 : index
    %211 = vector.load %arg2[%c0_142, %c0_143, %c9_144, %c0_145] : memref<1x4x16x16xf32, #tpu.memory_space<vmem>>, vector<1x4x1x16xf32>
    %212 = vector.shape_cast %211 : vector<1x4x1x16xf32> to vector<4x16xf32>
    %cst_146 = arith.constant dense<0.000000e+00> : vector<32x16xf32>
    %213 = tpu.matmul %0, %212, %cst_146 {dimension_numbers = #tpu.dot_dimension_numbers<[1], [0], [0], [1], [0, 0, 1, 1], [], []>} : vector<32x4xf32>, vector<4x16xf32>, vector<32x16xf32> -> vector<32x16xf32>
    %214 = vector.extract_strided_slice %213 {offsets = [0, 0], sizes = [8, 16], strides = [1, 1]} : vector<32x16xf32> to vector<8x16xf32>
    %215 = vector.extract_strided_slice %213 {offsets = [8, 0], sizes = [8, 16], strides = [1, 1]} : vector<32x16xf32> to vector<8x16xf32>
    %cst_147 = arith.constant dense<0.000000e+00> : vector<8x32xf32>
    %216 = tpu.matmul %214, %2, %cst_147 {dimension_numbers = #tpu.dot_dimension_numbers<[1], [0], [0], [1], [0, 0, 1, 1], [], []>} : vector<8x16xf32>, vector<16x32xf32>, vector<8x32xf32> -> vector<8x32xf32>
    %cst_148 = arith.constant dense<0.000000e+00> : vector<8x32xf32>
    %217 = tpu.matmul %215, %3, %cst_148 {dimension_numbers = #tpu.dot_dimension_numbers<[1], [0], [0], [1], [0, 0, 1, 1], [], []>} : vector<8x16xf32>, vector<16x32xf32>, vector<8x32xf32> -> vector<8x32xf32>
    %218 = arith.addf %216, %217 : vector<8x32xf32>
    %219 = vector.broadcast %1 : vector<8x1xf32> to vector<8x32xf32>
    %220 = arith.addf %218, %219 : vector<8x32xf32>
    %c0_149 = arith.constant 0 : index
    %c0_150 = arith.constant 0 : index
    %c18 = arith.constant 18 : index
    %c0_151 = arith.constant 0 : index
    %221 = vector.load %arg7[%c0_149, %c0_150, %c18, %c0_151] : memref<1x8x32x32xf32, #tpu.memory_space<vmem>>, vector<1x8x1x32xf32>
    %222 = vector.shape_cast %221 : vector<1x8x1x32xf32> to vector<8x32xf32>
    %223 = vector.shape_cast %220 : vector<8x32xf32> to vector<1x8x1x32xf32>
    tpu.vector_store %arg7[%c0_149, %c0_150, %c18, %c0_151], %223 {strides = array<i32>} : memref<1x8x32x32xf32, #tpu.memory_space<vmem>>, vector<1x8x1x32xf32>,
    %224 = vector.extract_strided_slice %213 {offsets = [16, 0], sizes = [8, 16], strides = [1, 1]} : vector<32x16xf32> to vector<8x16xf32>
    %225 = vector.extract_strided_slice %213 {offsets = [24, 0], sizes = [8, 16], strides = [1, 1]} : vector<32x16xf32> to vector<8x16xf32>
    %cst_152 = arith.constant dense<0.000000e+00> : vector<8x32xf32>
    %226 = tpu.matmul %224, %2, %cst_152 {dimension_numbers = #tpu.dot_dimension_numbers<[1], [0], [0], [1], [0, 0, 1, 1], [], []>} : vector<8x16xf32>, vector<16x32xf32>, vector<8x32xf32> -> vector<8x32xf32>
    %cst_153 = arith.constant dense<0.000000e+00> : vector<8x32xf32>
    %227 = tpu.matmul %225, %3, %cst_153 {dimension_numbers = #tpu.dot_dimension_numbers<[1], [0], [0], [1], [0, 0, 1, 1], [], []>} : vector<8x16xf32>, vector<16x32xf32>, vector<8x32xf32> -> vector<8x32xf32>
    %228 = arith.addf %226, %227 : vector<8x32xf32>
    %229 = vector.broadcast %1 : vector<8x1xf32> to vector<8x32xf32>
    %230 = arith.addf %228, %229 : vector<8x32xf32>
    %c0_154 = arith.constant 0 : index
    %c0_155 = arith.constant 0 : index
    %c19 = arith.constant 19 : index
    %c0_156 = arith.constant 0 : index
    %231 = vector.load %arg7[%c0_154, %c0_155, %c19, %c0_156] : memref<1x8x32x32xf32, #tpu.memory_space<vmem>>, vector<1x8x1x32xf32>
    %232 = vector.shape_cast %231 : vector<1x8x1x32xf32> to vector<8x32xf32>
    %233 = vector.shape_cast %230 : vector<8x32xf32> to vector<1x8x1x32xf32>
    tpu.vector_store %arg7[%c0_154, %c0_155, %c19, %c0_156], %233 {strides = array<i32>} : memref<1x8x32x32xf32, #tpu.memory_space<vmem>>, vector<1x8x1x32xf32>,
    %c0_157 = arith.constant 0 : index
    %c0_158 = arith.constant 0 : index
    %c10_159 = arith.constant 10 : index
    %c0_160 = arith.constant 0 : index
    %234 = vector.load %arg2[%c0_157, %c0_158, %c10_159, %c0_160] : memref<1x4x16x16xf32, #tpu.memory_space<vmem>>, vector<1x4x1x16xf32>
    %235 = vector.shape_cast %234 : vector<1x4x1x16xf32> to vector<4x16xf32>
    %cst_161 = arith.constant dense<0.000000e+00> : vector<32x16xf32>
    %236 = tpu.matmul %0, %235, %cst_161 {dimension_numbers = #tpu.dot_dimension_numbers<[1], [0], [0], [1], [0, 0, 1, 1], [], []>} : vector<32x4xf32>, vector<4x16xf32>, vector<32x16xf32> -> vector<32x16xf32>
    %237 = vector.extract_strided_slice %236 {offsets = [0, 0], sizes = [8, 16], strides = [1, 1]} : vector<32x16xf32> to vector<8x16xf32>
    %238 = vector.extract_strided_slice %236 {offsets = [8, 0], sizes = [8, 16], strides = [1, 1]} : vector<32x16xf32> to vector<8x16xf32>
    %cst_162 = arith.constant dense<0.000000e+00> : vector<8x32xf32>
    %239 = tpu.matmul %237, %2, %cst_162 {dimension_numbers = #tpu.dot_dimension_numbers<[1], [0], [0], [1], [0, 0, 1, 1], [], []>} : vector<8x16xf32>, vector<16x32xf32>, vector<8x32xf32> -> vector<8x32xf32>
    %cst_163 = arith.constant dense<0.000000e+00> : vector<8x32xf32>
    %240 = tpu.matmul %238, %3, %cst_163 {dimension_numbers = #tpu.dot_dimension_numbers<[1], [0], [0], [1], [0, 0, 1, 1], [], []>} : vector<8x16xf32>, vector<16x32xf32>, vector<8x32xf32> -> vector<8x32xf32>
    %241 = arith.addf %239, %240 : vector<8x32xf32>
    %242 = vector.broadcast %1 : vector<8x1xf32> to vector<8x32xf32>
    %243 = arith.addf %241, %242 : vector<8x32xf32>
    %c0_164 = arith.constant 0 : index
    %c0_165 = arith.constant 0 : index
    %c20 = arith.constant 20 : index
    %c0_166 = arith.constant 0 : index
    %244 = vector.load %arg7[%c0_164, %c0_165, %c20, %c0_166] : memref<1x8x32x32xf32, #tpu.memory_space<vmem>>, vector<1x8x1x32xf32>
    %245 = vector.shape_cast %244 : vector<1x8x1x32xf32> to vector<8x32xf32>
    %246 = vector.shape_cast %243 : vector<8x32xf32> to vector<1x8x1x32xf32>
    tpu.vector_store %arg7[%c0_164, %c0_165, %c20, %c0_166], %246 {strides = array<i32>} : memref<1x8x32x32xf32, #tpu.memory_space<vmem>>, vector<1x8x1x32xf32>,
    %247 = vector.extract_strided_slice %236 {offsets = [16, 0], sizes = [8, 16], strides = [1, 1]} : vector<32x16xf32> to vector<8x16xf32>
    %248 = vector.extract_strided_slice %236 {offsets = [24, 0], sizes = [8, 16], strides = [1, 1]} : vector<32x16xf32> to vector<8x16xf32>
    %cst_167 = arith.constant dense<0.000000e+00> : vector<8x32xf32>
    %249 = tpu.matmul %247, %2, %cst_167 {dimension_numbers = #tpu.dot_dimension_numbers<[1], [0], [0], [1], [0, 0, 1, 1], [], []>} : vector<8x16xf32>, vector<16x32xf32>, vector<8x32xf32> -> vector<8x32xf32>
    %cst_168 = arith.constant dense<0.000000e+00> : vector<8x32xf32>
    %250 = tpu.matmul %248, %3, %cst_168 {dimension_numbers = #tpu.dot_dimension_numbers<[1], [0], [0], [1], [0, 0, 1, 1], [], []>} : vector<8x16xf32>, vector<16x32xf32>, vector<8x32xf32> -> vector<8x32xf32>
    %251 = arith.addf %249, %250 : vector<8x32xf32>
    %252 = vector.broadcast %1 : vector<8x1xf32> to vector<8x32xf32>
    %253 = arith.addf %251, %252 : vector<8x32xf32>
    %c0_169 = arith.constant 0 : index
    %c0_170 = arith.constant 0 : index
    %c21 = arith.constant 21 : index
    %c0_171 = arith.constant 0 : index
    %254 = vector.load %arg7[%c0_169, %c0_170, %c21, %c0_171] : memref<1x8x32x32xf32, #tpu.memory_space<vmem>>, vector<1x8x1x32xf32>
    %255 = vector.shape_cast %254 : vector<1x8x1x32xf32> to vector<8x32xf32>
    %256 = vector.shape_cast %253 : vector<8x32xf32> to vector<1x8x1x32xf32>
    tpu.vector_store %arg7[%c0_169, %c0_170, %c21, %c0_171], %256 {strides = array<i32>} : memref<1x8x32x32xf32, #tpu.memory_space<vmem>>, vector<1x8x1x32xf32>,
    %c0_172 = arith.constant 0 : index
    %c0_173 = arith.constant 0 : index
    %c11_174 = arith.constant 11 : index
    %c0_175 = arith.constant 0 : index
    %257 = vector.load %arg2[%c0_172, %c0_173, %c11_174, %c0_175] : memref<1x4x16x16xf32, #tpu.memory_space<vmem>>, vector<1x4x1x16xf32>
    %258 = vector.shape_cast %257 : vector<1x4x1x16xf32> to vector<4x16xf32>
    %cst_176 = arith.constant dense<0.000000e+00> : vector<32x16xf32>
    %259 = tpu.matmul %0, %258, %cst_176 {dimension_numbers = #tpu.dot_dimension_numbers<[1], [0], [0], [1], [0, 0, 1, 1], [], []>} : vector<32x4xf32>, vector<4x16xf32>, vector<32x16xf32> -> vector<32x16xf32>
    %260 = vector.extract_strided_slice %259 {offsets = [0, 0], sizes = [8, 16], strides = [1, 1]} : vector<32x16xf32> to vector<8x16xf32>
    %261 = vector.extract_strided_slice %259 {offsets = [8, 0], sizes = [8, 16], strides = [1, 1]} : vector<32x16xf32> to vector<8x16xf32>
    %cst_177 = arith.constant dense<0.000000e+00> : vector<8x32xf32>
    %262 = tpu.matmul %260, %2, %cst_177 {dimension_numbers = #tpu.dot_dimension_numbers<[1], [0], [0], [1], [0, 0, 1, 1], [], []>} : vector<8x16xf32>, vector<16x32xf32>, vector<8x32xf32> -> vector<8x32xf32>
    %cst_178 = arith.constant dense<0.000000e+00> : vector<8x32xf32>
    %263 = tpu.matmul %261, %3, %cst_178 {dimension_numbers = #tpu.dot_dimension_numbers<[1], [0], [0], [1], [0, 0, 1, 1], [], []>} : vector<8x16xf32>, vector<16x32xf32>, vector<8x32xf32> -> vector<8x32xf32>
    %264 = arith.addf %262, %263 : vector<8x32xf32>
    %265 = vector.broadcast %1 : vector<8x1xf32> to vector<8x32xf32>
    %266 = arith.addf %264, %265 : vector<8x32xf32>
    %c0_179 = arith.constant 0 : index
    %c0_180 = arith.constant 0 : index
    %c22 = arith.constant 22 : index
    %c0_181 = arith.constant 0 : index
    %267 = vector.load %arg7[%c0_179, %c0_180, %c22, %c0_181] : memref<1x8x32x32xf32, #tpu.memory_space<vmem>>, vector<1x8x1x32xf32>
    %268 = vector.shape_cast %267 : vector<1x8x1x32xf32> to vector<8x32xf32>
    %269 = vector.shape_cast %266 : vector<8x32xf32> to vector<1x8x1x32xf32>
    tpu.vector_store %arg7[%c0_179, %c0_180, %c22, %c0_181], %269 {strides = array<i32>} : memref<1x8x32x32xf32, #tpu.memory_space<vmem>>, vector<1x8x1x32xf32>,
    %270 = vector.extract_strided_slice %259 {offsets = [16, 0], sizes = [8, 16], strides = [1, 1]} : vector<32x16xf32> to vector<8x16xf32>
    %271 = vector.extract_strided_slice %259 {offsets = [24, 0], sizes = [8, 16], strides = [1, 1]} : vector<32x16xf32> to vector<8x16xf32>
    %cst_182 = arith.constant dense<0.000000e+00> : vector<8x32xf32>
    %272 = tpu.matmul %270, %2, %cst_182 {dimension_numbers = #tpu.dot_dimension_numbers<[1], [0], [0], [1], [0, 0, 1, 1], [], []>} : vector<8x16xf32>, vector<16x32xf32>, vector<8x32xf32> -> vector<8x32xf32>
    %cst_183 = arith.constant dense<0.000000e+00> : vector<8x32xf32>
    %273 = tpu.matmul %271, %3, %cst_183 {dimension_numbers = #tpu.dot_dimension_numbers<[1], [0], [0], [1], [0, 0, 1, 1], [], []>} : vector<8x16xf32>, vector<16x32xf32>, vector<8x32xf32> -> vector<8x32xf32>
    %274 = arith.addf %272, %273 : vector<8x32xf32>
    %275 = vector.broadcast %1 : vector<8x1xf32> to vector<8x32xf32>
    %276 = arith.addf %274, %275 : vector<8x32xf32>
    %c0_184 = arith.constant 0 : index
    %c0_185 = arith.constant 0 : index
    %c23 = arith.constant 23 : index
    %c0_186 = arith.constant 0 : index
    %277 = vector.load %arg7[%c0_184, %c0_185, %c23, %c0_186] : memref<1x8x32x32xf32, #tpu.memory_space<vmem>>, vector<1x8x1x32xf32>
    %278 = vector.shape_cast %277 : vector<1x8x1x32xf32> to vector<8x32xf32>
    %279 = vector.shape_cast %276 : vector<8x32xf32> to vector<1x8x1x32xf32>
    tpu.vector_store %arg7[%c0_184, %c0_185, %c23, %c0_186], %279 {strides = array<i32>} : memref<1x8x32x32xf32, #tpu.memory_space<vmem>>, vector<1x8x1x32xf32>,
    %c0_187 = arith.constant 0 : index
    %c0_188 = arith.constant 0 : index
    %c12_189 = arith.constant 12 : index
    %c0_190 = arith.constant 0 : index
    %280 = vector.load %arg2[%c0_187, %c0_188, %c12_189, %c0_190] : memref<1x4x16x16xf32, #tpu.memory_space<vmem>>, vector<1x4x1x16xf32>
    %281 = vector.shape_cast %280 : vector<1x4x1x16xf32> to vector<4x16xf32>
    %cst_191 = arith.constant dense<0.000000e+00> : vector<32x16xf32>
    %282 = tpu.matmul %0, %281, %cst_191 {dimension_numbers = #tpu.dot_dimension_numbers<[1], [0], [0], [1], [0, 0, 1, 1], [], []>} : vector<32x4xf32>, vector<4x16xf32>, vector<32x16xf32> -> vector<32x16xf32>
    %283 = vector.extract_strided_slice %282 {offsets = [0, 0], sizes = [8, 16], strides = [1, 1]} : vector<32x16xf32> to vector<8x16xf32>
    %284 = vector.extract_strided_slice %282 {offsets = [8, 0], sizes = [8, 16], strides = [1, 1]} : vector<32x16xf32> to vector<8x16xf32>
    %cst_192 = arith.constant dense<0.000000e+00> : vector<8x32xf32>
    %285 = tpu.matmul %283, %2, %cst_192 {dimension_numbers = #tpu.dot_dimension_numbers<[1], [0], [0], [1], [0, 0, 1, 1], [], []>} : vector<8x16xf32>, vector<16x32xf32>, vector<8x32xf32> -> vector<8x32xf32>
    %cst_193 = arith.constant dense<0.000000e+00> : vector<8x32xf32>
    %286 = tpu.matmul %284, %3, %cst_193 {dimension_numbers = #tpu.dot_dimension_numbers<[1], [0], [0], [1], [0, 0, 1, 1], [], []>} : vector<8x16xf32>, vector<16x32xf32>, vector<8x32xf32> -> vector<8x32xf32>
    %287 = arith.addf %285, %286 : vector<8x32xf32>
    %288 = vector.broadcast %1 : vector<8x1xf32> to vector<8x32xf32>
    %289 = arith.addf %287, %288 : vector<8x32xf32>
    %c0_194 = arith.constant 0 : index
    %c0_195 = arith.constant 0 : index
    %c24 = arith.constant 24 : index
    %c0_196 = arith.constant 0 : index
    %290 = vector.load %arg7[%c0_194, %c0_195, %c24, %c0_196] : memref<1x8x32x32xf32, #tpu.memory_space<vmem>>, vector<1x8x1x32xf32>
    %291 = vector.shape_cast %290 : vector<1x8x1x32xf32> to vector<8x32xf32>
    %292 = vector.shape_cast %289 : vector<8x32xf32> to vector<1x8x1x32xf32>
    tpu.vector_store %arg7[%c0_194, %c0_195, %c24, %c0_196], %292 {strides = array<i32>} : memref<1x8x32x32xf32, #tpu.memory_space<vmem>>, vector<1x8x1x32xf32>,
    %293 = vector.extract_strided_slice %282 {offsets = [16, 0], sizes = [8, 16], strides = [1, 1]} : vector<32x16xf32> to vector<8x16xf32>
    %294 = vector.extract_strided_slice %282 {offsets = [24, 0], sizes = [8, 16], strides = [1, 1]} : vector<32x16xf32> to vector<8x16xf32>
    %cst_197 = arith.constant dense<0.000000e+00> : vector<8x32xf32>
    %295 = tpu.matmul %293, %2, %cst_197 {dimension_numbers = #tpu.dot_dimension_numbers<[1], [0], [0], [1], [0, 0, 1, 1], [], []>} : vector<8x16xf32>, vector<16x32xf32>, vector<8x32xf32> -> vector<8x32xf32>
    %cst_198 = arith.constant dense<0.000000e+00> : vector<8x32xf32>
    %296 = tpu.matmul %294, %3, %cst_198 {dimension_numbers = #tpu.dot_dimension_numbers<[1], [0], [0], [1], [0, 0, 1, 1], [], []>} : vector<8x16xf32>, vector<16x32xf32>, vector<8x32xf32> -> vector<8x32xf32>
    %297 = arith.addf %295, %296 : vector<8x32xf32>
    %298 = vector.broadcast %1 : vector<8x1xf32> to vector<8x32xf32>
    %299 = arith.addf %297, %298 : vector<8x32xf32>
    %c0_199 = arith.constant 0 : index
    %c0_200 = arith.constant 0 : index
    %c25 = arith.constant 25 : index
    %c0_201 = arith.constant 0 : index
    %300 = vector.load %arg7[%c0_199, %c0_200, %c25, %c0_201] : memref<1x8x32x32xf32, #tpu.memory_space<vmem>>, vector<1x8x1x32xf32>
    %301 = vector.shape_cast %300 : vector<1x8x1x32xf32> to vector<8x32xf32>
    %302 = vector.shape_cast %299 : vector<8x32xf32> to vector<1x8x1x32xf32>
    tpu.vector_store %arg7[%c0_199, %c0_200, %c25, %c0_201], %302 {strides = array<i32>} : memref<1x8x32x32xf32, #tpu.memory_space<vmem>>, vector<1x8x1x32xf32>,
    %c0_202 = arith.constant 0 : index
    %c0_203 = arith.constant 0 : index
    %c13_204 = arith.constant 13 : index
    %c0_205 = arith.constant 0 : index
    %303 = vector.load %arg2[%c0_202, %c0_203, %c13_204, %c0_205] : memref<1x4x16x16xf32, #tpu.memory_space<vmem>>, vector<1x4x1x16xf32>
    %304 = vector.shape_cast %303 : vector<1x4x1x16xf32> to vector<4x16xf32>
    %cst_206 = arith.constant dense<0.000000e+00> : vector<32x16xf32>
    %305 = tpu.matmul %0, %304, %cst_206 {dimension_numbers = #tpu.dot_dimension_numbers<[1], [0], [0], [1], [0, 0, 1, 1], [], []>} : vector<32x4xf32>, vector<4x16xf32>, vector<32x16xf32> -> vector<32x16xf32>
    %306 = vector.extract_strided_slice %305 {offsets = [0, 0], sizes = [8, 16], strides = [1, 1]} : vector<32x16xf32> to vector<8x16xf32>
    %307 = vector.extract_strided_slice %305 {offsets = [8, 0], sizes = [8, 16], strides = [1, 1]} : vector<32x16xf32> to vector<8x16xf32>
    %cst_207 = arith.constant dense<0.000000e+00> : vector<8x32xf32>
    %308 = tpu.matmul %306, %2, %cst_207 {dimension_numbers = #tpu.dot_dimension_numbers<[1], [0], [0], [1], [0, 0, 1, 1], [], []>} : vector<8x16xf32>, vector<16x32xf32>, vector<8x32xf32> -> vector<8x32xf32>
    %cst_208 = arith.constant dense<0.000000e+00> : vector<8x32xf32>
    %309 = tpu.matmul %307, %3, %cst_208 {dimension_numbers = #tpu.dot_dimension_numbers<[1], [0], [0], [1], [0, 0, 1, 1], [], []>} : vector<8x16xf32>, vector<16x32xf32>, vector<8x32xf32> -> vector<8x32xf32>
    %310 = arith.addf %308, %309 : vector<8x32xf32>
    %311 = vector.broadcast %1 : vector<8x1xf32> to vector<8x32xf32>
    %312 = arith.addf %310, %311 : vector<8x32xf32>
    %c0_209 = arith.constant 0 : index
    %c0_210 = arith.constant 0 : index
    %c26 = arith.constant 26 : index
    %c0_211 = arith.constant 0 : index
    %313 = vector.load %arg7[%c0_209, %c0_210, %c26, %c0_211] : memref<1x8x32x32xf32, #tpu.memory_space<vmem>>, vector<1x8x1x32xf32>
    %314 = vector.shape_cast %313 : vector<1x8x1x32xf32> to vector<8x32xf32>
    %315 = vector.shape_cast %312 : vector<8x32xf32> to vector<1x8x1x32xf32>
    tpu.vector_store %arg7[%c0_209, %c0_210, %c26, %c0_211], %315 {strides = array<i32>} : memref<1x8x32x32xf32, #tpu.memory_space<vmem>>, vector<1x8x1x32xf32>,
    %316 = vector.extract_strided_slice %305 {offsets = [16, 0], sizes = [8, 16], strides = [1, 1]} : vector<32x16xf32> to vector<8x16xf32>
    %317 = vector.extract_strided_slice %305 {offsets = [24, 0], sizes = [8, 16], strides = [1, 1]} : vector<32x16xf32> to vector<8x16xf32>
    %cst_212 = arith.constant dense<0.000000e+00> : vector<8x32xf32>
    %318 = tpu.matmul %316, %2, %cst_212 {dimension_numbers = #tpu.dot_dimension_numbers<[1], [0], [0], [1], [0, 0, 1, 1], [], []>} : vector<8x16xf32>, vector<16x32xf32>, vector<8x32xf32> -> vector<8x32xf32>
    %cst_213 = arith.constant dense<0.000000e+00> : vector<8x32xf32>
    %319 = tpu.matmul %317, %3, %cst_213 {dimension_numbers = #tpu.dot_dimension_numbers<[1], [0], [0], [1], [0, 0, 1, 1], [], []>} : vector<8x16xf32>, vector<16x32xf32>, vector<8x32xf32> -> vector<8x32xf32>
    %320 = arith.addf %318, %319 : vector<8x32xf32>
    %321 = vector.broadcast %1 : vector<8x1xf32> to vector<8x32xf32>
    %322 = arith.addf %320, %321 : vector<8x32xf32>
    %c0_214 = arith.constant 0 : index
    %c0_215 = arith.constant 0 : index
    %c27 = arith.constant 27 : index
    %c0_216 = arith.constant 0 : index
    %323 = vector.load %arg7[%c0_214, %c0_215, %c27, %c0_216] : memref<1x8x32x32xf32, #tpu.memory_space<vmem>>, vector<1x8x1x32xf32>
    %324 = vector.shape_cast %323 : vector<1x8x1x32xf32> to vector<8x32xf32>
    %325 = vector.shape_cast %322 : vector<8x32xf32> to vector<1x8x1x32xf32>
    tpu.vector_store %arg7[%c0_214, %c0_215, %c27, %c0_216], %325 {strides = array<i32>} : memref<1x8x32x32xf32, #tpu.memory_space<vmem>>, vector<1x8x1x32xf32>,
    %c0_217 = arith.constant 0 : index
    %c0_218 = arith.constant 0 : index
    %c14_219 = arith.constant 14 : index
    %c0_220 = arith.constant 0 : index
    %326 = vector.load %arg2[%c0_217, %c0_218, %c14_219, %c0_220] : memref<1x4x16x16xf32, #tpu.memory_space<vmem>>, vector<1x4x1x16xf32>
    %327 = vector.shape_cast %326 : vector<1x4x1x16xf32> to vector<4x16xf32>
    %cst_221 = arith.constant dense<0.000000e+00> : vector<32x16xf32>
    %328 = tpu.matmul %0, %327, %cst_221 {dimension_numbers = #tpu.dot_dimension_numbers<[1], [0], [0], [1], [0, 0, 1, 1], [], []>} : vector<32x4xf32>, vector<4x16xf32>, vector<32x16xf32> -> vector<32x16xf32>
    %329 = vector.extract_strided_slice %328 {offsets = [0, 0], sizes = [8, 16], strides = [1, 1]} : vector<32x16xf32> to vector<8x16xf32>
    %330 = vector.extract_strided_slice %328 {offsets = [8, 0], sizes = [8, 16], strides = [1, 1]} : vector<32x16xf32> to vector<8x16xf32>
    %cst_222 = arith.constant dense<0.000000e+00> : vector<8x32xf32>
    %331 = tpu.matmul %329, %2, %cst_222 {dimension_numbers = #tpu.dot_dimension_numbers<[1], [0], [0], [1], [0, 0, 1, 1], [], []>} : vector<8x16xf32>, vector<16x32xf32>, vector<8x32xf32> -> vector<8x32xf32>
    %cst_223 = arith.constant dense<0.000000e+00> : vector<8x32xf32>
    %332 = tpu.matmul %330, %3, %cst_223 {dimension_numbers = #tpu.dot_dimension_numbers<[1], [0], [0], [1], [0, 0, 1, 1], [], []>} : vector<8x16xf32>, vector<16x32xf32>, vector<8x32xf32> -> vector<8x32xf32>
    %333 = arith.addf %331, %332 : vector<8x32xf32>
    %334 = vector.broadcast %1 : vector<8x1xf32> to vector<8x32xf32>
    %335 = arith.addf %333, %334 : vector<8x32xf32>
    %c0_224 = arith.constant 0 : index
    %c0_225 = arith.constant 0 : index
    %c28 = arith.constant 28 : index
    %c0_226 = arith.constant 0 : index
    %336 = vector.load %arg7[%c0_224, %c0_225, %c28, %c0_226] : memref<1x8x32x32xf32, #tpu.memory_space<vmem>>, vector<1x8x1x32xf32>
    %337 = vector.shape_cast %336 : vector<1x8x1x32xf32> to vector<8x32xf32>
    %338 = vector.shape_cast %335 : vector<8x32xf32> to vector<1x8x1x32xf32>
    tpu.vector_store %arg7[%c0_224, %c0_225, %c28, %c0_226], %338 {strides = array<i32>} : memref<1x8x32x32xf32, #tpu.memory_space<vmem>>, vector<1x8x1x32xf32>,
    %339 = vector.extract_strided_slice %328 {offsets = [16, 0], sizes = [8, 16], strides = [1, 1]} : vector<32x16xf32> to vector<8x16xf32>
    %340 = vector.extract_strided_slice %328 {offsets = [24, 0], sizes = [8, 16], strides = [1, 1]} : vector<32x16xf32> to vector<8x16xf32>
    %cst_227 = arith.constant dense<0.000000e+00> : vector<8x32xf32>
    %341 = tpu.matmul %339, %2, %cst_227 {dimension_numbers = #tpu.dot_dimension_numbers<[1], [0], [0], [1], [0, 0, 1, 1], [], []>} : vector<8x16xf32>, vector<16x32xf32>, vector<8x32xf32> -> vector<8x32xf32>
    %cst_228 = arith.constant dense<0.000000e+00> : vector<8x32xf32>
    %342 = tpu.matmul %340, %3, %cst_228 {dimension_numbers = #tpu.dot_dimension_numbers<[1], [0], [0], [1], [0, 0, 1, 1], [], []>} : vector<8x16xf32>, vector<16x32xf32>, vector<8x32xf32> -> vector<8x32xf32>
    %343 = arith.addf %341, %342 : vector<8x32xf32>
    %344 = vector.broadcast %1 : vector<8x1xf32> to vector<8x32xf32>
    %345 = arith.addf %343, %344 : vector<8x32xf32>
    %c0_229 = arith.constant 0 : index
    %c0_230 = arith.constant 0 : index
    %c29 = arith.constant 29 : index
    %c0_231 = arith.constant 0 : index
    %346 = vector.load %arg7[%c0_229, %c0_230, %c29, %c0_231] : memref<1x8x32x32xf32, #tpu.memory_space<vmem>>, vector<1x8x1x32xf32>
    %347 = vector.shape_cast %346 : vector<1x8x1x32xf32> to vector<8x32xf32>
    %348 = vector.shape_cast %345 : vector<8x32xf32> to vector<1x8x1x32xf32>
    tpu.vector_store %arg7[%c0_229, %c0_230, %c29, %c0_231], %348 {strides = array<i32>} : memref<1x8x32x32xf32, #tpu.memory_space<vmem>>, vector<1x8x1x32xf32>,
    %c0_232 = arith.constant 0 : index
    %c0_233 = arith.constant 0 : index
    %c15_234 = arith.constant 15 : index
    %c0_235 = arith.constant 0 : index
    %349 = vector.load %arg2[%c0_232, %c0_233, %c15_234, %c0_235] : memref<1x4x16x16xf32, #tpu.memory_space<vmem>>, vector<1x4x1x16xf32>
    %350 = vector.shape_cast %349 : vector<1x4x1x16xf32> to vector<4x16xf32>
    %cst_236 = arith.constant dense<0.000000e+00> : vector<32x16xf32>
    %351 = tpu.matmul %0, %350, %cst_236 {dimension_numbers = #tpu.dot_dimension_numbers<[1], [0], [0], [1], [0, 0, 1, 1], [], []>} : vector<32x4xf32>, vector<4x16xf32>, vector<32x16xf32> -> vector<32x16xf32>
    %352 = vector.extract_strided_slice %351 {offsets = [0, 0], sizes = [8, 16], strides = [1, 1]} : vector<32x16xf32> to vector<8x16xf32>
    %353 = vector.extract_strided_slice %351 {offsets = [8, 0], sizes = [8, 16], strides = [1, 1]} : vector<32x16xf32> to vector<8x16xf32>
    %cst_237 = arith.constant dense<0.000000e+00> : vector<8x32xf32>
    %354 = tpu.matmul %352, %2, %cst_237 {dimension_numbers = #tpu.dot_dimension_numbers<[1], [0], [0], [1], [0, 0, 1, 1], [], []>} : vector<8x16xf32>, vector<16x32xf32>, vector<8x32xf32> -> vector<8x32xf32>
    %cst_238 = arith.constant dense<0.000000e+00> : vector<8x32xf32>
    %355 = tpu.matmul %353, %3, %cst_238 {dimension_numbers = #tpu.dot_dimension_numbers<[1], [0], [0], [1], [0, 0, 1, 1], [], []>} : vector<8x16xf32>, vector<16x32xf32>, vector<8x32xf32> -> vector<8x32xf32>
    %356 = arith.addf %354, %355 : vector<8x32xf32>
    %357 = vector.broadcast %1 : vector<8x1xf32> to vector<8x32xf32>
    %358 = arith.addf %356, %357 : vector<8x32xf32>
    %c0_239 = arith.constant 0 : index
    %c0_240 = arith.constant 0 : index
    %c30 = arith.constant 30 : index
    %c0_241 = arith.constant 0 : index
    %359 = vector.load %arg7[%c0_239, %c0_240, %c30, %c0_241] : memref<1x8x32x32xf32, #tpu.memory_space<vmem>>, vector<1x8x1x32xf32>
    %360 = vector.shape_cast %359 : vector<1x8x1x32xf32> to vector<8x32xf32>
    %361 = vector.shape_cast %358 : vector<8x32xf32> to vector<1x8x1x32xf32>
    tpu.vector_store %arg7[%c0_239, %c0_240, %c30, %c0_241], %361 {strides = array<i32>} : memref<1x8x32x32xf32, #tpu.memory_space<vmem>>, vector<1x8x1x32xf32>,
    %362 = vector.extract_strided_slice %351 {offsets = [16, 0], sizes = [8, 16], strides = [1, 1]} : vector<32x16xf32> to vector<8x16xf32>
    %363 = vector.extract_strided_slice %351 {offsets = [24, 0], sizes = [8, 16], strides = [1, 1]} : vector<32x16xf32> to vector<8x16xf32>
    %cst_242 = arith.constant dense<0.000000e+00> : vector<8x32xf32>
    %364 = tpu.matmul %362, %2, %cst_242 {dimension_numbers = #tpu.dot_dimension_numbers<[1], [0], [0], [1], [0, 0, 1, 1], [], []>} : vector<8x16xf32>, vector<16x32xf32>, vector<8x32xf32> -> vector<8x32xf32>
    %cst_243 = arith.constant dense<0.000000e+00> : vector<8x32xf32>
    %365 = tpu.matmul %363, %3, %cst_243 {dimension_numbers = #tpu.dot_dimension_numbers<[1], [0], [0], [1], [0, 0, 1, 1], [], []>} : vector<8x16xf32>, vector<16x32xf32>, vector<8x32xf32> -> vector<8x32xf32>
    %366 = arith.addf %364, %365 : vector<8x32xf32>
    %367 = vector.broadcast %1 : vector<8x1xf32> to vector<8x32xf32>
    %368 = arith.addf %366, %367 : vector<8x32xf32>
    %c0_244 = arith.constant 0 : index
    %c0_245 = arith.constant 0 : index
    %c31 = arith.constant 31 : index
    %c0_246 = arith.constant 0 : index
    %369 = vector.load %arg7[%c0_244, %c0_245, %c31, %c0_246] : memref<1x8x32x32xf32, #tpu.memory_space<vmem>>, vector<1x8x1x32xf32>
    %370 = vector.shape_cast %369 : vector<1x8x1x32xf32> to vector<8x32xf32>
    %371 = vector.shape_cast %368 : vector<8x32xf32> to vector<1x8x1x32xf32>
    tpu.vector_store %arg7[%c0_244, %c0_245, %c31, %c0_246], %371 {strides = array<i32>} : memref<1x8x32x32xf32, #tpu.memory_space<vmem>>, vector<1x8x1x32xf32>,
    return
  }
  func.func @transform_0(%arg0: i32, %arg1: i32) -> (i32, i32, i32, i32) {
    %c0_i32 = arith.constant 0 : i32
    %c0_i32_0 = arith.constant 0 : i32
    %c0_i32_1 = arith.constant 0 : i32
    return %arg0, %c0_i32, %arg1, %c0_i32_0 : i32, i32, i32, i32
  }
  func.func @transform_1(%arg0: i32, %arg1: i32) -> (i32, i32) {
    %c0_i32 = arith.constant 0 : i32
    %c0_i32_0 = arith.constant 0 : i32
    %c0_i32_1 = arith.constant 0 : i32
    return %c0_i32, %c0_i32_0 : i32, i32
  }
  func.func @transform_2(%arg0: i32, %arg1: i32) -> (i32, i32) {
    %c0_i32 = arith.constant 0 : i32
    %c0_i32_0 = arith.constant 0 : i32
    %c0_i32_1 = arith.constant 0 : i32
    return %c0_i32, %c0_i32_0 : i32, i32
  }
  func.func @transform_3(%arg0: i32, %arg1: i32) -> (i32, i32) {
    %c0_i32 = arith.constant 0 : i32
    %c0_i32_0 = arith.constant 0 : i32
    %c0_i32_1 = arith.constant 0 : i32
    return %c0_i32, %c0_i32_0 : i32, i32
  }
  func.func @transform_4(%arg0: i32, %arg1: i32) -> (i32, i32) {
    %c0_i32 = arith.constant 0 : i32
    %c0_i32_0 = arith.constant 0 : i32
    %c0_i32_1 = arith.constant 0 : i32
    return %c0_i32, %c0_i32_0 : i32, i32
  }
  func.func @transform_5(%arg0: i32, %arg1: i32) -> (i32, i32, i32, i32) {
    %c0_i32 = arith.constant 0 : i32
    %c0_i32_0 = arith.constant 0 : i32
    %c0_i32_1 = arith.constant 0 : i32
    return %arg0, %c0_i32, %arg1, %c0_i32_0 : i32, i32, i32, i32
  }
}

</mosaic_0001>

<bundles_post_ra>
// kernel: tpu_custom_call.1
= control target key start
LH: loop header
LB: loop body
LE: loop exit
PB: predicated region body
PF: predicated region fallthrough
CT: control target
= control target key end

     0   :  { %10 = vsyncpa [#allocation3], 0  ;;  %s4943_s0 = inlined_call_operand.hbm [shape: f32[2,4,16,16], index: 0, kind: input, shape index: {}]   ;;  %s4944_s1 = inlined_call_operand.vmem [shape: f32[32,4], index: 1, kind: input, shape index: {}]   ;;  %s4945_s2 = inlined_call_operand.vmem [shape: f32[8,1], index: 2, kind: input, shape index: {}]   ;;  %s4946_s3 = inlined_call_operand.vmem [shape: f32[16,32], index: 3, kind: input, shape index: {}]   ;;  %s4947_s4 = inlined_call_operand.vmem [shape: f32[16,32], index: 4, kind: input, shape index: {}]   ;;  %s4948_s5 = inlined_call_operand.hbm [shape: f32[2,8,32,32], index: 5, kind: output, shape index: {}]  }
   0x1   :  { %12 = vsyncpa [#allocation3 + $0x1], 0 }
   0x2   :  { %13 = vsyncpa [#allocation4], 0 }
   0x3   :  { %15 = vsyncpa [#allocation4 + $0x1], 0  ;;  %s3745_s18 = smov 0   ;;  %s3747_s19 = smov 0  }
   0x4   :  { %s3749_s20 = smov 0   ;;  %s3751_s21 = smov 0  }
   0x5   :  { %s3753_s22 = smov 0   ;;  %s3755_s23 = smov 0  }
   0x6 LB: > { %s3363_s24 = sadd.s32 4294967295, %s3708_s23   ;;  %s3364_s25 = sadd.s32 4294967294, %s3708_s23   ;;  %s3708_s23 = sphi %s3755_s23, %s21_s23   ;;  %s3704_s22 = sphi %s3753_s22, %s4957_s22   ;;  %s3700_s21 = sphi %s3751_s21, %s4956_s21   ;;  %s3696_s20 = sphi %s3749_s20, %s4955_s20   ;;  %s3692_s19 = sphi %s3747_s19, %s4954_s19   ;;  %s3688_s18 = sphi %s3745_s18, %s4953_s18  }
   0x7   : > { %s33_s26 = sadd.s32 1, %s3704_s22  ;;  %s42_s27 = sadd.s32 1, %s3696_s20 }
   0x8   : > { %p35_p0 = scmp.ge.s32.totalorder %s33_s26, 2  ;;  %p49_p1 = scmp.ne.s32.totalorder %s3696_s20, %s3692_s19 }
   0x9   : > { %p50_p2 = scmp.eq.s32.totalorder %s3708_s23, 0  ;;  %p55_p3 = scmp.ne.s32.totalorder %s3692_s19, %s3688_s18 }
   0xa   : > { %s4959_s26 = smov (%p35_p0, %s33_s26), 0  ;;  %p56_p5 = scmp.eq.s32.totalorder %s3363_s24, 0 }
   0xb   : > { %p3786_p4 = por %p50_p2, %p49_p1  ;;  %s37_s29 = ssub.s32 %s3704_s22, %s4959_s26 }
   0xc   : > { %p165_p6 = scmp.eq.s32.totalorder %s3363_s24, 1  ;;  %p40_p7 = scmp.eq.s32.totalorder %s37_s29, 0 }
   0xd   : > { %p3792_p8 = por %p56_p5, %p55_p3  ;;  %p171_p10 = scmp.eq.s32.totalorder %s3364_s25, 1 }
   0xe   : > { %p3796_p9 = por %p165_p6, %p49_p1  ;;  %p3366_p12 = scmp.ge.s32.totalorder %s3708_s23, 2 }
   0xf   : > { %s3801_s7 = scalar_select %p40_p7, %s3696_s20, %s42_s27  }
  0x10   : > { %p3803_p11 = por %p171_p10, %p55_p3  ;;  %p3536_p13 = scmp.lt.s32.totalorder %s3708_s23, 2 }
  0x11   : > { %s203_s9 = sand.u32 1, %s3696_s20   ;;  %s3522_s11 = sshll.u32 %s3704_s22, 6 }
  0x12   : > { %s3367_s10 = sshll.u32 %s203_s9, 6  ;;  %s214_s14 = scalar_lea.hbm %s4943_s0, %s3522_s11 }
  0x13   : > { %s207_s15 = scalar_lea.vmem [#allocation2], %s3367_s10  ;;  %s215_s17 = sshll.u32 %s214_s14, 4  ;;  %s216_s17 = int_to_ptr.hbm [resolvable:$true] %s215_s17 }
  0x14   : > { %s217_s16 = sshll.u32 %s207_s15, 4  ;;  %p3529_p0 = pnand %p3536_p13, %p3786_p4  ;;  %s218_s16 = int_to_ptr.vmem [resolvable:$true] %s217_s16 }
  0x15   : > { %p3370_p1 = scmp.ge.s32.totalorder %s3708_s23, 1  ;;  %s204_s24 = scalar_lea.sflag [#allocation3], %s203_s9 }
  0x16   : > { %s3710_s25 = smov 128   ;;  %s3711_s27 = smov 8  }
  0x17   : > { %3531 = dma.hbm_to_vmem [thread:$0]  (!%p3529_p0), %s216_s17, 1024, %s218_s16, %s204_s24, %s3710_s25, %s3710_s25, %s3711_s27  }
  0x18   : > { %p225_p2 = scmp.lt.s32.totalorder %s3708_s23, 3 }
  0x1a   : > { %p226_p3 = pnand %p3370_p1, %p225_p2 }
  0x1b   : > { %s3819_s29 = sand.u32 (!%p226_p3), 1, %s3692_s19  }
  0x1c   : > { %229 = sbr.rel (%p226_p3) target bundleno = 721 (0x2d1), region = 40  ;;  %s3371_s10 = sshll.u32 (!%p226_p3), %s3819_s29, 6 }
  0x1d   : > { %s232_s11 = scalar_lea.sflag (!%p226_p3), [#allocation3], %s3819_s29  ;;  %s3823_s12 = scalar_lea.vmem (!%p226_p3), [#allocation2], %s3371_s10 }
  0x21   : > { %3679 = dma.done.wait (%p3792_p8), %s232_s11, 1024  }
  0x22   : > { %3681 = vsyncadd (%p3792_p8), %s232_s11, 4294966272  ;;  %vm283_vm0 = vcmask 1041409   ;;  %v274_v0 = vld [vmem:[%s3823_s12] sm:$0x1]  ;;  %v275_v1 = vld [vmem:[%s3823_s12 + $0x10] sm:$0x1] }
  0x23   : > { %v276_v2 = vld [vmem:[%s3823_s12 + $0x20] sm:$0x1]  ;;  %v277_v3 = vld [vmem:[%s3823_s12 + $0x30] sm:$0x1]  ;;  %v282_v4 = vrot.slane %v275_v1, 7  ;;  %vm286_vm1 = vcmask 1042434  }
  0x24   : > { %v285_v5 = vrot.slane %v276_v2, 6  ;;  %v288_v6 = vrot.slane %v277_v3, 5  ;;  %vm289_vm2 = vcmask 1043459   ;;  %v483_v7 = vld [vmem:[%s3823_s12 + $0x1] sm:$0x1]  ;;  %vm304_vm3 = vcmask 1043456  }
  0x25   : > { %v484_v8 = vld [vmem:[%s3823_s12 + $0x11] sm:$0x1]  ;;  %v284_v9 = vsel %vm283_vm0, %v282_v4, %v274_v0  ;;  %v485_v10 = vld [vmem:[%s3823_s12 + $0x21] sm:$0x1]  ;;  %vm291_vm4 = vcmask 31744   ;;  %v3847_v17 = vld [vmem:[%s4946_s3 + $0x8] sm:$0xff] }
  0x26   : > { %v486_v11 = vld [vmem:[%s3823_s12 + $0x31] sm:$0x1]  ;;  %v491_v12 = vrot.slane %v484_v8, 7  ;;  %v287_v13 = vsel %vm286_vm1, %v285_v5, %v284_v9  ;;  %v3842_v14 = vld [vmem:[%s4944_s1] sm:$0xff]  ;;  %v493_v15 = vrot.slane %v485_v10, 6  ;;  %377 = vmatpush.msra.mxu3 %v3847_v17  ;;  %v3863_v22 = vld [vmem:[%s4944_s1 + $0x8] sm:$0xff] }
  0x27   : > { %v495_v16 = vrot.slane %v486_v11, 5  ;;  %v290_v18 = vsel %vm289_vm2, %v288_v6, %v287_v13  ;;  %v3872_v23 = vld [vmem:[%s4944_s1 + $0x10] sm:$0xff]  ;;  %v3881_v24 = vld [vmem:[%s4944_s1 + $0x18] sm:$0xff]  ;;  %v3890_v25 = vld [vmem:[%s4946_s3] sm:$0xff]  ;;  %v3712_v29 = vmov 0   ;;  %vm336_vm5 = vcmask 130048  }
  0x28   : > { %v492_v19 = vsel %vm283_vm0, %v491_v12, %v483_v7  ;;  %3373 = vmatpush.msk.msra.mxu0 %vm304_vm3, %v290_v18  ;;  %378 = vmatpush.msra.mxu3 %v3890_v25  ;;  %v3896_v26 = vld [vmem:[%s4947_s4 + $0x8] sm:$0xff]  ;;  %v3904_v27 = vld [vmem:[%s4947_s4] sm:$0xff]  ;;  %v854_v32 = vld [vmem:[%s3823_s12 + $0x13] sm:$0x1]  ;;  %s3372_s15 = sshll.u32 %s3819_s29, 8  ;;  %vm404_vm6 = vcmask 253952  }
  0x29   : > { %v494_v20 = vsel %vm286_vm1, %v493_v15, %v492_v19  ;;  %3374 = vmatmul.msk.f32.vlgmr.msra.gmra.mxu0 %vm291_vm4, %v3842_v14  ;;  %354 = vmatpush.msra.mxu1 %v3896_v26  ;;  %v269_v28 = vld [vmem:[%s4945_s2] sm:$0xff]  ;;  %v856_v34 = vld [vmem:[%s3823_s12 + $0x33] sm:$0x1]  ;;  %v861_v35 = vrot.slane %v854_v32, 7  ;;  %v669_v45 = vld [vmem:[%s3823_s12 + $0x12] sm:$0x1] }
  0x2a   : > { %v496_v21 = vsel %vm289_vm2, %v495_v16, %v494_v20  ;;  %430 = vmatpush.msrb.mxu3 %v3896_v26  ;;  %730 = vmatpush.msrb.mxu0 %v3896_v26  ;;  %v853_v31 = vld [vmem:[%s3823_s12 + $0x3] sm:$0x1]  ;;  %v865_v37 = vrot.slane %v856_v34, 5  ;;  %v670_v46 = vld [vmem:[%s3823_s12 + $0x22] sm:$0x1]  ;;  %v676_v47 = vrot.slane %v669_v45, 7 }
  0x2b   : > { %3382 = vmatpush.msk.msra.mxu2 %vm304_vm3, %v496_v21  ;;  %355 = vmatpush.msra.mxu1 %v3904_v27  ;;  %v855_v33 = vld [vmem:[%s3823_s12 + $0x23] sm:$0x1]  ;;  %v862_v38 = vsel %vm283_vm0, %v861_v35, %v853_v31  ;;  %v668_v48 = vld [vmem:[%s3823_s12 + $0x2] sm:$0x1]  ;;  %v671_v50 = vld [vmem:[%s3823_s12 + $0x32] sm:$0x1] }
  0x2c   : > { %3383 = vmatmul.msk.f32.vlgmr.msra.gmra.mxu2 %vm291_vm4, %v3842_v14  ;;  %431 = vmatpush.msrb.mxu3 %v3904_v27  ;;  %v863_v36 = vrot.slane %v855_v33, 6  ;;  %v678_v51 = vrot.slane %v670_v46, 6  ;;  %v677_v52 = vsel %vm283_vm0, %v676_v47, %v668_v48  ;;  %v1039_v53 = vld [vmem:[%s3823_s12 + $0x14] sm:$0x1]  ;;  %v680_v54 = vrot.slane %v671_v50, 5  ;;  %s4072_s16 = scalar_lea.vmem [#allocation5], %s3372_s15 }
  0x2d   : > { %453 = vmatpush.msrb.mxu1 %v3847_v17  ;;  %731 = vmatpush.msrb.mxu0 %v3904_v27  ;;  %v1040_v57 = vld [vmem:[%s3823_s12 + $0x24] sm:$0x1]  ;;  %v1046_v58 = vrot.slane %v1039_v53, 7  ;;  %v1041_v61 = vld [vmem:[%s3823_s12 + $0x34] sm:$0x1]  ;;  %s3523_s30 = sshll.u32 %s3700_s21, 8 }
  0x2e   : > { %3591 = vset.pattern.permute.xlu0 %v3712_v29  ;;  %v864_v39 = vsel %vm286_vm1, %v863_v36, %v862_v38  ;;  %v679_v56 = vsel %vm286_vm1, %v678_v51, %v677_v52  ;;  %v1038_v59 = vld [vmem:[%s3823_s12 + $0x4] sm:$0x1]  ;;  %v1048_v62 = vrot.slane %v1040_v57, 6  ;;  %v1223_v0 = vld [vmem:[%s3823_s12 + $0x5] sm:$0x1]  ;;  %v1050_v6 = vrot.slane %v1041_v61, 5  ;;  %s3272_s14 = scalar_lea.hbm %s4948_s5, %s3523_s30 }
  0x2f   : > { %800 = vmatpush.msra.mxu0 %v3896_v26  ;;  %454 = vmatpush.msrb.mxu1 %v3890_v25  ;;  %v866_v40 = vsel %vm289_vm2, %v865_v37, %v864_v39  ;;  %v681_v60 = vsel %vm289_vm2, %v680_v54, %v679_v56  ;;  %v1047_v63 = vsel %vm283_vm0, %v1046_v58, %v1038_v59  ;;  %v1224_v1 = vld [vmem:[%s3823_s12 + $0x15] sm:$0x1]  ;;  %v1225_v2 = vld [vmem:[%s3823_s12 + $0x25] sm:$0x1]  ;;  %v1408_v15 = vld [vmem:[%s3823_s12 + $0x6] sm:$0x1] }
  0x30   : > { %385 = vperm.xlu0 %3591, %v269_v28   ;;  %3400 = vmatpush.msk.msrb.mxu2 %vm304_vm3, %v866_v40  ;;  %v1226_v3 = vld [vmem:[%s3823_s12 + $0x35] sm:$0x1]  ;;  %v1231_v4 = vrot.slane %v1224_v1, 7  ;;  %v1233_v5 = vrot.slane %v1225_v2, 6  ;;  %v1049_v8 = vsel %vm286_vm1, %v1048_v62, %v1047_v63  ;;  %v1409_v16 = vld [vmem:[%s3823_s12 + $0x16] sm:$0x1] }
  0x31   : > { %3375 = vmatmul.msk.f32.gmra.mxu0 %vm291_vm4, %v3863_v22  ;;  %v1235_v7 = vrot.slane %v1226_v3, 5  ;;  %v1051_v13 = vsel %vm289_vm2, %v1050_v6, %v1049_v8  ;;  %v1410_v18 = vld [vmem:[%s3823_s12 + $0x26] sm:$0x1]  ;;  %v1411_v19 = vld [vmem:[%s3823_s12 + $0x36] sm:$0x1]  ;;  %v1416_v20 = vrot.slane %v1409_v16, 7 }
  0x32   : > { %801 = vmatpush.msra.mxu0 %v3904_v27  ;;  %v1232_v9 = vsel %vm283_vm0, %v1231_v4, %v1223_v0  ;;  %v1418_v21 = vrot.slane %v1410_v18, 6  ;;  %v1420_v28 = vrot.slane %v1411_v19, 5  ;;  %v1593_v32 = vld [vmem:[%s3823_s12 + $0x7] sm:$0x1]  ;;  %v1594_v33 = vld [vmem:[%s3823_s12 + $0x17] sm:$0x1] }
  0x33   : > { %v1234_v10 = vsel %vm286_vm1, %v1233_v5, %v1232_v9  ;;  %v1417_v29 = vsel %vm283_vm0, %v1416_v20, %v1408_v15  ;;  %v1595_v34 = vld [vmem:[%s3823_s12 + $0x27] sm:$0x1]  ;;  %v1596_v35 = vld [vmem:[%s3823_s12 + $0x37] sm:$0x1]  ;;  %v1601_v36 = vrot.slane %v1594_v33, 7  ;;  %s3273_s21 = sshll.u32 %s4072_s16, 4  ;;  %s3274_s21 = int_to_ptr.vmem [resolvable:$true] %s3273_s21 }
  0x34   : > { %3384 = vmatmul.msk.f32.gmra.mxu2 %vm291_vm4, %v3863_v22  ;;  %v1236_v12 = vsel %vm289_vm2, %v1235_v7, %v1234_v10  ;;  %v1603_v37 = vrot.slane %v1595_v34, 6  ;;  %v1605_v38 = vrot.slane %v1596_v35, 5  ;;  %v1781_v45 = vld [vmem:[%s3823_s12 + $0x38] sm:$0x1]  ;;  %v1963_v52 = vld [vmem:[%s3823_s12 + $0x9] sm:$0x1] }
  0x35   : > { %3418 = vmatpush.msk.msra.mxu2 %vm304_vm3, %v1236_v12  ;;  %v1602_v39 = vsel %vm283_vm0, %v1601_v36, %v1593_v32  ;;  %v1790_v48 = vrot.slane %v1781_v45, 5  ;;  %v1964_v53 = vld [vmem:[%s3823_s12 + $0x19] sm:$0x1]  ;;  %v1965_v54 = vld [vmem:[%s3823_s12 + $0x29] sm:$0x1]  ;;  %s3275_s15 = sshll.u32 %s3272_s14, 4  ;;  %s3276_s15 = int_to_ptr.hbm [resolvable:$true] %s3275_s15 }
  0x36   : > { %v1604_v40 = vsel %vm286_vm1, %v1603_v37, %v1602_v39  ;;  %v1971_v56 = vrot.slane %v1964_v53, 7  ;;  %v1973_v57 = vrot.slane %v1965_v54, 6  ;;  %v2148_v62 = vld [vmem:[%s3823_s12 + $0xa] sm:$0x1]  ;;  %v2149_v63 = vld [vmem:[%s3823_s12 + $0x1a] sm:$0x1] }
  0x37   : > { %v2150_v0 = vld [vmem:[%s3823_s12 + $0x2a] sm:$0x1]  ;;  %v2151_v1 = vld [vmem:[%s3823_s12 + $0x3a] sm:$0x1]  ;;  %v2156_v2 = vrot.slane %v2149_v63, 7  ;;  %s3640_s17 = sshra.s32 %s3276_s15, 4  ;;  %s3641_s17 = int_to_ptr.hbm [resolvable:$true] %s3640_s17 }
  0x38   : > { %v1972_v59 = vsel %vm283_vm0, %v1971_v56, %v1963_v52  ;;  %v2158_v3 = vrot.slane %v2150_v0, 6  ;;  %v2160_v4 = vrot.slane %v2151_v1, 5  ;;  %v2334_v15 = vld [vmem:[%s3823_s12 + $0x1b] sm:$0x1]  ;;  %v2335_v16 = vld [vmem:[%s3823_s12 + $0x2b] sm:$0x1]  ;;  %p3647_p7 = scmp.lt.s32.totalorder %s3641_s17, %s4948_s5 }
  0x39   : > { %3376 = vmatmul.msk.f32.gmra.mxu0 %vm291_vm4, %v3872_v23  ;;  %v2157_v5 = vsel %vm283_vm0, %v2156_v2, %v2148_v62  ;;  %v2336_v18 = vld [vmem:[%s3823_s12 + $0x3b] sm:$0x1]  ;;  %v2341_v19 = vrot.slane %v2334_v15, 7  ;;  %v2343_v20 = vrot.slane %v2335_v16, 6  ;;  %v2518_v39 = vld [vmem:[%s3823_s12 + $0xc] sm:$0x1] }
  0x3a   : > { %v2159_v6 = vsel %vm286_vm1, %v2158_v3, %v2157_v5  ;;  %v2345_v34 = vrot.slane %v2336_v18, 5  ;;  %v2706_v63 = vld [vmem:[%s3823_s12 + $0x3d] sm:$0x1]  ;;  %s3642_s24 = scalar_lea.hbm %s3641_s17, 256  ;;  %s3646_s10 = scalar_lea.hbm %s4948_s5, 512 }
  0x3b   : > { %v2161_v7 = vsel %vm289_vm2, %v2160_v4, %v2159_v6  ;;  %v2715_v5 = vrot.slane %v2706_v63, 5  ;;  %p3643_p4 = scmp.ne.s32.totalorder %s3641_s17, %s3642_s24  ;;  %p3648_p8 = scmp.lt.s32.totalorder %s3646_s10, %s3642_s24 }
  0x3c   : > { %3385 = vmatmul.msk.f32.gmra.mxu2 %vm291_vm4, %v3872_v23 }
  0x3d   : > { %p3644_p5 = pnand %p3643_p4, %p3796_p9  ;;  %p3649_p10 = por %p3648_p8, %p3647_p7 }
  0x3f   : > { %p3645_p6 = pneg %p3644_p5 }
  0x41   : > { %3377 = vmatmul.msk.f32.gmra.mxu0 %vm291_vm4, %v3881_v24  ;;  %p3650_p13 = pnand %p3649_p10, %p3645_p6 }
  0x44   : > { %3386 = vmatmul.msk.f32.gmra.mxu2 %vm291_vm4, %v3881_v24 }
  0x4c   : > { %3401 = vmatmul.msk.f32.vlgmr.msrb.gmra.mxu2 %vm291_vm4, %v3842_v14 }
  0x54   : > { %3402 = vmatmul.msk.f32.gmra.mxu2 %vm291_vm4, %v3863_v22 }
  0x5c   : > { %3403 = vmatmul.msk.f32.gmra.mxu2 %vm291_vm4, %v3872_v23 }
  0x64   : > { %3404 = vmatmul.msk.f32.gmra.mxu2 %vm291_vm4, %v3881_v24 }
  0x6c   : > { %3419 = vmatmul.msk.f32.vlgmr.msra.gmra.mxu2 %vm291_vm4, %v3842_v14 }
  0x74   : > { %3420 = vmatmul.msk.f32.gmra.mxu2 %vm291_vm4, %v3863_v22 }
  0x7c   : > { %3421 = vmatmul.msk.f32.gmra.mxu2 %vm291_vm4, %v3872_v23 }
  0x84   : > { %3422 = vmatmul.msk.f32.gmra.mxu2 %vm291_vm4, %v3881_v24 }
  0xa2   : > { %v4063_v8 = vpop.permute.xlu0 %385 }
  0xa6   : > { %v324_v30 = vpop.f32.mrf.mxu0 }
  0xa7   : > { %3379 = vmatmul.msk.f32.vlgmr.msra.gmra.mxu3 %vm336_vm5, %v324_v30  ;;  %v1419_v30 = vsel %vm286_vm1, %v1418_v21, %v1417_v29 }
  0xa8   : > { %545 = vmatpush.msra.mxu3 %v3896_v26  ;;  %v1421_v31 = vsel %vm289_vm2, %v1420_v28, %v1419_v30 }
  0xaa   : > { %546 = vmatpush.msra.mxu3 %v3904_v27 }
  0xae   : > { %v327_v41 = vpop.f32.mrf.mxu0 }
  0xaf   : > { %v516_v42 = vpop.f32.mrf.mxu2  ;;  %3378 = vmatmul.msk.f32.vlgmr.msra.gmra.mxu1 %vm336_vm5, %v327_v41  ;;  %v1606_v41 = vsel %vm289_vm2, %v1605_v38, %v1604_v40  ;;  %v2519_v40 = vld [vmem:[%s3823_s12 + $0x1c] sm:$0x1] }
  0xb0   : > { %568 = vmatpush.msra.mxu1 %v3847_v17  ;;  %3436 = vmatpush.msk.msrb.mxu2 %vm304_vm3, %v1606_v41  ;;  %v2520_v41 = vld [vmem:[%s3823_s12 + $0x2c] sm:$0x1] }
  0xb1   : > { %3437 = vmatmul.msk.f32.vlgmr.msrb.gmra.mxu2 %vm291_vm4, %v3842_v14 }
  0xb2   : > { %569 = vmatpush.msra.mxu1 %v3890_v25 }
  0xb6   : > { %v330_v43 = vpop.f32.mrf.mxu0 }
  0xb7   : > { %3381 = vmatmul.msk.f32.vlgmr.msrb.gmra.mxu1 %vm336_vm5, %v330_v43  ;;  %v519_v44 = vpop.f32.mrf.mxu2  ;;  %v1779_v43 = vld [vmem:[%s3823_s12 + $0x18] sm:$0x1] }
  0xb8   : > { %638 = vmatpush.msrb.mxu1 %v3847_v17  ;;  %v1786_v46 = vrot.slane %v1779_v43, 7  ;;  %v2526_v43 = vrot.slane %v2519_v40, 7  ;;  %v2890_v40 = vld [vmem:[%s3823_s12 + $0x2e] sm:$0x1] }
  0xb9   : > { %3438 = vmatmul.msk.f32.gmra.mxu2 %vm291_vm4, %v3863_v22 }
  0xba   : > { %639 = vmatpush.msrb.mxu1 %v3890_v25 }
  0xbe   : > { %v333_v49 = vpop.f32.mrf.mxu0 }
  0xbf   : > { %3380 = vmatmul.msk.f32.vlgmr.msrb.gmra.mxu3 %vm336_vm5, %v333_v49  ;;  %3388 = vmatmul.msk.f32.vlgmr.msra.gmra.mxu1 %vm336_vm5, %v516_v42  ;;  %v522_v55 = vpop.f32.mrf.mxu2  ;;  %v1778_v42 = vld [vmem:[%s3823_s12 + $0x8] sm:$0x1] }
  0xc0   : > { %615 = vmatpush.msrb.mxu3 %v3896_v26  ;;  %753 = vmatpush.msra.mxu1 %v3847_v17  ;;  %v1787_v49 = vsel %vm283_vm0, %v1786_v46, %v1778_v42  ;;  %v2521_v42 = vld [vmem:[%s3823_s12 + $0x3c] sm:$0x1] }
  0xc1   : > { %3439 = vmatmul.msk.f32.gmra.mxu2 %vm291_vm4, %v3872_v23  ;;  %v2530_v45 = vrot.slane %v2521_v42, 5 }
  0xc2   : > { %616 = vmatpush.msrb.mxu3 %v3904_v27  ;;  %754 = vmatpush.msra.mxu1 %v3890_v25 }
  0xc7   : > { %3387 = vmatmul.msk.f32.vlgmr.msra.gmra.mxu3 %vm336_vm5, %v519_v44  ;;  %3390 = vmatmul.msk.f32.vlgmr.msrb.gmra.mxu1 %vm336_vm5, %v522_v55  ;;  %v525_v11 = vpop.f32.mrf.mxu2  ;;  %v1780_v44 = vld [vmem:[%s3823_s12 + $0x28] sm:$0x1]  ;;  %v1966_v55 = vld [vmem:[%s3823_s12 + $0x39] sm:$0x1] }
  0xc8   : > { %3391 = vmatpush.msk.msra.mxu3 %vm304_vm3, %v681_v60  ;;  %823 = vmatpush.msrb.mxu1 %v3847_v17  ;;  %v1788_v47 = vrot.slane %v1780_v44, 6  ;;  %v1975_v58 = vrot.slane %v1966_v55, 5  ;;  %v1974_v60 = vsel %vm286_vm1, %v1973_v57, %v1972_v59  ;;  %v2528_v44 = vrot.slane %v2520_v41, 6  ;;  %v2703_v59 = vld [vmem:[%s3823_s12 + $0xd] sm:$0x1] }
  0xc9   : > { %3440 = vmatmul.msk.f32.gmra.mxu2 %vm291_vm4, %v3881_v24  ;;  %v2891_v41 = vld [vmem:[%s3823_s12 + $0x3e] sm:$0x1] }
  0xca   : > { %824 = vmatpush.msrb.mxu1 %v3890_v25  ;;  %v1789_v50 = vsel %vm286_vm1, %v1788_v47, %v1787_v49  ;;  %v1976_v61 = vsel %vm289_vm2, %v1975_v58, %v1974_v60  ;;  %v2527_v47 = vsel %vm283_vm0, %v2526_v43, %v2518_v39  ;;  %v2704_v60 = vld [vmem:[%s3823_s12 + $0x1d] sm:$0x1] }
  0xcb   : > { %v1791_v51 = vsel %vm289_vm2, %v1790_v48, %v1789_v50  ;;  %3454 = vmatpush.msk.msra.mxu2 %vm304_vm3, %v1976_v61  ;;  %v2529_v49 = vsel %vm286_vm1, %v2528_v44, %v2527_v47  ;;  %v2705_v61 = vld [vmem:[%s3823_s12 + $0x2d] sm:$0x1]  ;;  %v2711_v0 = vrot.slane %v2704_v60, 7 }
  0xcc   : > { %v2531_v50 = vsel %vm289_vm2, %v2530_v45, %v2529_v49  ;;  %v2713_v1 = vrot.slane %v2705_v61, 6  ;;  %v2898_v45 = vrot.slane %v2890_v40, 6 }
  0xcd   : > { %v2712_v6 = vsel %vm283_vm0, %v2711_v0, %v2703_v59 }
  0xcf   : > { %3389 = vmatmul.msk.f32.vlgmr.msrb.gmra.mxu3 %vm336_vm5, %v525_v11  ;;  %v4125_v2 = vpop.f32.mrf.mxu2 }
  0xd0   : > { %3409 = vmatpush.msk.msrb.mxu3 %vm304_vm3, %v1051_v13  ;;  %v2333_v13 = vld [vmem:[%s3823_s12 + $0xb] sm:$0x1] }
  0xd1   : > { %3455 = vmatmul.msk.f32.vlgmr.msra.gmra.mxu2 %vm291_vm4, %v3842_v14 }
  0xd7   : > { %3392 = vmatmul.msk.f32.vlgmr.msra.gmra.mxu3 %vm291_vm4, %v3842_v14 }
  0xd8   : > { %3427 = vmatpush.msk.msra.mxu3 %vm304_vm3, %v1421_v31  ;;  %v2342_v31 = vsel %vm283_vm0, %v2341_v19, %v2333_v13 }
  0xd9   : > { %3456 = vmatmul.msk.f32.gmra.mxu2 %vm291_vm4, %v3863_v22  ;;  %v2344_v33 = vsel %vm286_vm1, %v2343_v20, %v2342_v31 }
  0xda   : > { %v2346_v37 = vsel %vm289_vm2, %v2345_v34, %v2344_v33 }
  0xdb   : > { %3472 = vmatpush.msk.msrb.mxu2 %vm304_vm3, %v2346_v37  ;;  %v2888_v37 = vld [vmem:[%s3823_s12 + $0xe] sm:$0x1] }
  0xdf   : > { %3393 = vmatmul.msk.f32.gmra.mxu3 %vm291_vm4, %v3863_v22 }
  0xe1   : > { %3457 = vmatmul.msk.f32.gmra.mxu2 %vm291_vm4, %v3872_v23 }
  0xe7   : > { %3394 = vmatmul.msk.f32.gmra.mxu3 %vm291_vm4, %v3872_v23 }
  0xe9   : > { %3458 = vmatmul.msk.f32.gmra.mxu2 %vm291_vm4, %v3881_v24 }
  0xef   : > { %3395 = vmatmul.msk.f32.gmra.mxu3 %vm291_vm4, %v3881_v24 }
  0xf1   : > { %3473 = vmatmul.msk.f32.vlgmr.msrb.gmra.mxu2 %vm291_vm4, %v3842_v14 }
  0xf7   : > { %3410 = vmatmul.msk.f32.vlgmr.msrb.gmra.mxu3 %vm291_vm4, %v3842_v14 }
  0xf8   : > { %3445 = vmatpush.msk.msrb.mxu3 %vm304_vm3, %v1791_v51 }
  0xf9   : > { %3474 = vmatmul.msk.f32.gmra.mxu2 %vm291_vm4, %v3863_v22 }
  0xff   : > { %3411 = vmatmul.msk.f32.gmra.mxu3 %vm291_vm4, %v3863_v22 }
 0x101   : > { %3475 = vmatmul.msk.f32.gmra.mxu2 %vm291_vm4, %v3872_v23 }
 0x107   : > { %3412 = vmatmul.msk.f32.gmra.mxu3 %vm291_vm4, %v3872_v23 }
 0x109   : > { %3476 = vmatmul.msk.f32.gmra.mxu2 %vm291_vm4, %v3881_v24 }
 0x10f   : > { %3413 = vmatmul.msk.f32.gmra.mxu3 %vm291_vm4, %v3881_v24 }
 0x117   : > { %3428 = vmatmul.msk.f32.vlgmr.msra.gmra.mxu3 %vm291_vm4, %v3842_v14 }
 0x118   : > { %3463 = vmatpush.msk.msra.mxu3 %vm304_vm3, %v2161_v7 }
 0x11f   : > { %3429 = vmatmul.msk.f32.gmra.mxu3 %vm291_vm4, %v3863_v22 }
 0x127   : > { %3430 = vmatmul.msk.f32.gmra.mxu3 %vm291_vm4, %v3872_v23 }
 0x12a   : > { %v380_v9 = vpop.f32.mrf.mxu3 }
 0x12c   : > { %v357_v10 = vpop.f32.mrf.mxu1 }
 0x12d   : > { %v381_v11 = vadd.f32 %v380_v9, %v357_v10  ;;  %v2714_v9 = vsel %vm286_vm1, %v2713_v1, %v2712_v6 }
 0x12e   : > { %v2716_v10 = vsel %vm289_vm2, %v2715_v5, %v2714_v9 }
 0x12f   : > { %v388_v12 = vadd.f32 %v4063_v8, %v381_v11  ;;  %3431 = vmatmul.msk.f32.gmra.mxu3 %vm291_vm4, %v3881_v24  ;;  %3490 = vmatpush.msk.msra.mxu2 %vm304_vm3, %v2716_v10 }
 0x130   : > { %3491 = vmatmul.msk.f32.vlgmr.msra.gmra.mxu2 %vm291_vm4, %v3842_v14 }
 0x131   : > { %v390_v21 = vrot.slane %v388_v12, 1  ;;  %v391_v28 = vrot.slane %v388_v12, 2  ;;  %v392_v29 = vrot.slane %v388_v12, 3  ;;  %405 = vst.msk [vmem:[%s4072_s16] sm:$0x1] %vm404_vm6, %v388_v12  ;;  %v393_v30 = vrot.slane %v388_v12, 4 }
 0x132   : > { %v394_v32 = vrot.slane %v388_v12, 5  ;;  %v395_v35 = vrot.slane %v388_v12, 6  ;;  %v396_v36 = vrot.slane %v388_v12, 7 }
 0x133   : > { %406 = vst.msk [vmem:[%s4072_s16 + $0x20] sm:$0x1] %vm404_vm6, %v390_v21  ;;  %v4152_v21 = vpop.f32.mrf.mxu2 }
 0x134   : > { %407 = vst.msk [vmem:[%s4072_s16 + $0x40] sm:$0x1] %vm404_vm6, %v391_v28  ;;  %v456_v38 = vpop.f32.mrf.mxu1 }
 0x135   : > { %408 = vst.msk [vmem:[%s4072_s16 + $0x60] sm:$0x1] %vm404_vm6, %v392_v29 }
 0x136   : > { %409 = vst.msk [vmem:[%s4072_s16 + $0x80] sm:$0x1] %vm404_vm6, %v393_v30 }
 0x137   : > { %410 = vst.msk [vmem:[%s4072_s16 + $0xa0] sm:$0x1] %vm404_vm6, %v394_v32  ;;  %3446 = vmatmul.msk.f32.vlgmr.msrb.gmra.mxu3 %vm291_vm4, %v3842_v14 }
 0x138   : > { %411 = vst.msk [vmem:[%s4072_s16 + $0xc0] sm:$0x1] %vm404_vm6, %v395_v35  ;;  %3481 = vmatpush.msk.msrb.mxu3 %vm304_vm3, %v2531_v50  ;;  %3492 = vmatmul.msk.f32.gmra.mxu2 %vm291_vm4, %v3863_v22 }
 0x139   : > { %412 = vst.msk [vmem:[%s4072_s16 + $0xe0] sm:$0x1] %vm404_vm6, %v396_v36 }
 0x13b   : > { %v892_v42 = vpop.f32.mrf.mxu2 }
 0x13c   : > { %v571_v52 = vpop.f32.mrf.mxu1 }
 0x13f   : > { %3447 = vmatmul.msk.f32.gmra.mxu3 %vm291_vm4, %v3863_v22 }
 0x140   : > { %3493 = vmatmul.msk.f32.gmra.mxu2 %vm291_vm4, %v3872_v23 }
 0x142   : > { %v433_v46 = vpop.f32.mrf.mxu3 }
 0x143   : > { %v457_v48 = vadd.f32 %v456_v38, %v433_v46  ;;  %v2889_v38 = vld [vmem:[%s3823_s12 + $0x1e] sm:$0x1]  ;;  %v2900_v46 = vrot.slane %v2891_v41, 5 }
 0x144   : > { %v641_v16 = vpop.f32.mrf.mxu1  ;;  %v2896_v44 = vrot.slane %v2889_v38, 7 }
 0x145   : > { %v459_v51 = vadd.f32 %v457_v48, %v4063_v8 }
 0x146   : > { %v2897_v47 = vsel %vm283_vm0, %v2896_v44, %v2888_v37 }
 0x147   : > { %v461_v53 = vrot.slane %v459_v51, 1  ;;  %v462_v54 = vrot.slane %v459_v51, 2  ;;  %v463_v55 = vrot.slane %v459_v51, 3  ;;  %475 = vst.msk [vmem:[%s4072_s16 + $0x1] sm:$0x1] %vm404_vm6, %v459_v51  ;;  %3448 = vmatmul.msk.f32.gmra.mxu3 %vm291_vm4, %v3872_v23  ;;  %v464_v56 = vrot.slane %v459_v51, 4 }
 0x148   : > { %v465_v57 = vrot.slane %v459_v51, 5  ;;  %v466_v58 = vrot.slane %v459_v51, 6  ;;  %v467_v3 = vrot.slane %v459_v51, 7  ;;  %v2899_v48 = vsel %vm286_vm1, %v2898_v45, %v2897_v47  ;;  %v895_v51 = vpop.f32.mrf.mxu2  ;;  %3494 = vmatmul.msk.f32.gmra.mxu2 %vm291_vm4, %v3881_v24 }
 0x149   : > { %476 = vst.msk [vmem:[%s4072_s16 + $0x21] sm:$0x1] %vm404_vm6, %v461_v53  ;;  %v2901_v49 = vsel %vm289_vm2, %v2900_v46, %v2899_v48  ;;  %v3074_v53 = vld [vmem:[%s3823_s12 + $0x1f] sm:$0x1]  ;;  %v4361_v46 = vld [vmem:[%s4946_s3 + $0x8] sm:$0xff] }
 0x14a   : > { %477 = vst.msk [vmem:[%s4072_s16 + $0x41] sm:$0x1] %vm404_vm6, %v462_v54  ;;  %v548_v62 = vpop.f32.mrf.mxu3  ;;  %v3075_v54 = vld [vmem:[%s3823_s12 + $0x2f] sm:$0x1] }
 0x14b   : > { %478 = vst.msk [vmem:[%s4072_s16 + $0x61] sm:$0x1] %vm404_vm6, %v463_v55  ;;  %v572_v4 = vadd.f32 %v571_v52, %v548_v62  ;;  %v3073_v52 = vld [vmem:[%s3823_s12 + $0xf] sm:$0x1]  ;;  %v3076_v55 = vld [vmem:[%s3823_s12 + $0x3f] sm:$0x1] }
 0x14c   : > { %479 = vst.msk [vmem:[%s4072_s16 + $0x81] sm:$0x1] %vm404_vm6, %v464_v56  ;;  %v3081_v56 = vrot.slane %v3074_v53, 7  ;;  %s3259_s12 = scalar_lea.sflag [#allocation4], %s3819_s29 }
 0x14d   : > { %480 = vst.msk [vmem:[%s4072_s16 + $0xa1] sm:$0x1] %vm404_vm6, %v465_v57  ;;  %v574_v7 = vadd.f32 %v572_v4, %v4063_v8  ;;  %v3083_v57 = vrot.slane %v3075_v54, 6 }
 0x14e   : > { %481 = vst.msk [vmem:[%s4072_s16 + $0xc1] sm:$0x1] %vm404_vm6, %v466_v58  ;;  %v3085_v58 = vrot.slane %v3076_v55, 5  ;;  %v3082_v60 = vsel %vm283_vm0, %v3081_v56, %v3073_v52  ;;  %v4379_v56 = vld [vmem:[%s4946_s3] sm:$0xff] }
 0x14f   : > { %482 = vst.msk [vmem:[%s4072_s16 + $0xe1] sm:$0x1] %vm404_vm6, %v467_v3  ;;  %v576_v11 = vrot.slane %v574_v7, 1  ;;  %v577_v12 = vrot.slane %v574_v7, 2  ;;  %v578_v13 = vrot.slane %v574_v7, 3  ;;  %3449 = vmatmul.msk.f32.gmra.mxu3 %vm291_vm4, %v3881_v24  ;;  %v579_v15 = vrot.slane %v574_v7, 4 }
 0x150   : > { %590 = vst.msk [vmem:[%s4072_s16 + $0x2] sm:$0x1] %vm404_vm6, %v574_v7  ;;  %v580_v18 = vrot.slane %v574_v7, 5  ;;  %v581_v19 = vrot.slane %v574_v7, 6  ;;  %v582_v28 = vrot.slane %v574_v7, 7  ;;  %v1256_v61 = vpop.f32.mrf.mxu2  ;;  %v3084_v62 = vsel %vm286_vm1, %v3083_v57, %v3082_v60 }
 0x151   : > { %591 = vst.msk [vmem:[%s4072_s16 + $0x22] sm:$0x1] %vm404_vm6, %v576_v11  ;;  %v3086_v63 = vsel %vm289_vm2, %v3085_v58, %v3084_v62 }
 0x152   : > { %592 = vst.msk [vmem:[%s4072_s16 + $0x42] sm:$0x1] %vm404_vm6, %v577_v12  ;;  %v618_v20 = vpop.f32.mrf.mxu3  ;;  %3508 = vmatpush.msk.msrb.mxu2 %vm304_vm3, %v3086_v63 }
 0x153   : > { %593 = vst.msk [vmem:[%s4072_s16 + $0x62] sm:$0x1] %vm404_vm6, %v578_v13  ;;  %v642_v29 = vadd.f32 %v641_v16, %v618_v20  ;;  %3509 = vmatmul.msk.f32.vlgmr.msrb.gmra.mxu2 %vm291_vm4, %v3842_v14 }
 0x154   : > { %594 = vst.msk [vmem:[%s4072_s16 + $0x82] sm:$0x1] %vm404_vm6, %v579_v15 }
 0x155   : > { %595 = vst.msk [vmem:[%s4072_s16 + $0xa2] sm:$0x1] %vm404_vm6, %v580_v18  ;;  %v644_v30 = vadd.f32 %v642_v29, %v4063_v8 }
 0x156   : > { %596 = vst.msk [vmem:[%s4072_s16 + $0xc2] sm:$0x1] %vm404_vm6, %v581_v19 }
 0x157   : > { %597 = vst.msk [vmem:[%s4072_s16 + $0xe2] sm:$0x1] %vm404_vm6, %v582_v28  ;;  %v646_v31 = vrot.slane %v644_v30, 1  ;;  %v647_v32 = vrot.slane %v644_v30, 2  ;;  %v648_v33 = vrot.slane %v644_v30, 3  ;;  %3464 = vmatmul.msk.f32.vlgmr.msra.gmra.mxu3 %vm291_vm4, %v3842_v14  ;;  %v649_v34 = vrot.slane %v644_v30, 4 }
 0x158   : > { %v650_v35 = vrot.slane %v644_v30, 5  ;;  %v651_v36 = vrot.slane %v644_v30, 6  ;;  %660 = vst.msk [vmem:[%s4072_s16 + $0x3] sm:$0x1] %vm404_vm6, %v644_v30  ;;  %v652_v43 = vrot.slane %v644_v30, 7  ;;  %3499 = vmatpush.msk.msra.mxu3 %vm304_vm3, %v2901_v49  ;;  %v1259_v1 = vpop.f32.mrf.mxu2 }
 0x159   : > { %661 = vst.msk [vmem:[%s4072_s16 + $0x23] sm:$0x1] %vm404_vm6, %v646_v31 }
 0x15a   : > { %662 = vst.msk [vmem:[%s4072_s16 + $0x43] sm:$0x1] %vm404_vm6, %v647_v32  ;;  %v701_v39 = vpop.f32.mrf.mxu3 }
 0x15b   : > { %663 = vst.msk [vmem:[%s4072_s16 + $0x63] sm:$0x1] %vm404_vm6, %v648_v33  ;;  %3397 = vmatmul.msk.f32.vlgmr.msra.gmra.mxu1 %vm336_vm5, %v701_v39  ;;  %3510 = vmatmul.msk.f32.gmra.mxu2 %vm291_vm4, %v3863_v22 }
 0x15c   : > { %664 = vst.msk [vmem:[%s4072_s16 + $0x83] sm:$0x1] %vm404_vm6, %v649_v34  ;;  %938 = vmatpush.msra.mxu1 %v3847_v17 }
 0x15d   : > { %665 = vst.msk [vmem:[%s4072_s16 + $0xa3] sm:$0x1] %vm404_vm6, %v650_v35 }
 0x15e   : > { %666 = vst.msk [vmem:[%s4072_s16 + $0xc3] sm:$0x1] %vm404_vm6, %v651_v36  ;;  %939 = vmatpush.msra.mxu1 %v3890_v25 }
 0x15f   : > { %667 = vst.msk [vmem:[%s4072_s16 + $0xe3] sm:$0x1] %vm404_vm6, %v652_v43  ;;  %3465 = vmatmul.msk.f32.gmra.mxu3 %vm291_vm4, %v3863_v22 }
 0x160   : > { %v1262_v4 = vpop.f32.mrf.mxu2 }
 0x162   : > { %v704_v50 = vpop.f32.mrf.mxu3 }
 0x163   : > { %3396 = vmatmul.msk.f32.vlgmr.msrb.gmra.mxu0 %vm336_vm5, %v704_v50  ;;  %3511 = vmatmul.msk.f32.gmra.mxu2 %vm291_vm4, %v3872_v23 }
 0x164   : > { %915 = vmatpush.msrb.mxu0 %v3896_v26 }
 0x166   : > { %916 = vmatpush.msrb.mxu0 %v3904_v27 }
 0x167   : > { %3466 = vmatmul.msk.f32.gmra.mxu3 %vm291_vm4, %v3872_v23 }
 0x168   : > { %v1265_v5 = vpop.f32.mrf.mxu2 }
 0x16a   : > { %v707_v59 = vpop.f32.mrf.mxu3 }
 0x16b   : > { %3399 = vmatmul.msk.f32.vlgmr.msrb.gmra.mxu1 %vm336_vm5, %v707_v59  ;;  %3512 = vmatmul.msk.f32.gmra.mxu2 %vm291_vm4, %v3881_v24 }
 0x16c   : > { %1008 = vmatpush.msrb.mxu1 %v3847_v17 }
 0x16e   : > { %1009 = vmatpush.msrb.mxu1 %v3890_v25 }
 0x16f   : > { %3467 = vmatmul.msk.f32.gmra.mxu3 %vm291_vm4, %v3881_v24 }
 0x170   : > { %v1626_v7 = vpop.f32.mrf.mxu2 }
 0x172   : > { %v710_v0 = vpop.f32.mrf.mxu3 }
 0x173   : > { %3398 = vmatmul.msk.f32.vlgmr.msra.gmra.mxu0 %vm336_vm5, %v710_v0  ;;  %3406 = vmatmul.msk.f32.vlgmr.msra.gmra.mxu1 %vm336_vm5, %v4125_v2  ;;  %v4403_v0 = vld [vmem:[%s4947_s4 + $0x8] sm:$0xff] }
 0x174   : > { %985 = vmatpush.msra.mxu0 %v3896_v26  ;;  %1123 = vmatpush.msra.mxu1 %v3847_v17 }
 0x176   : > { %986 = vmatpush.msra.mxu0 %v3904_v27  ;;  %1124 = vmatpush.msra.mxu1 %v3890_v25 }
 0x177   : > { %3482 = vmatmul.msk.f32.vlgmr.msrb.gmra.mxu3 %vm291_vm4, %v3842_v14 }
 0x178   : > { %v1629_v10 = vpop.f32.mrf.mxu2 }
 0x17a   : > { %v1071_v3 = vpop.f32.mrf.mxu3 }
 0x17b   : > { %3405 = vmatmul.msk.f32.vlgmr.msrb.gmra.mxu0 %vm336_vm5, %v4152_v21  ;;  %3408 = vmatmul.msk.f32.vlgmr.msrb.gmra.mxu1 %vm336_vm5, %v892_v42 }
 0x17c   : > { %1100 = vmatpush.msrb.mxu0 %v3896_v26  ;;  %1193 = vmatpush.msrb.mxu1 %v3847_v17 }
 0x17e   : > { %1101 = vmatpush.msrb.mxu0 %v3904_v27  ;;  %1194 = vmatpush.msrb.mxu1 %v3890_v25 }
 0x17f   : > { %3483 = vmatmul.msk.f32.gmra.mxu3 %vm291_vm4, %v3863_v22 }
 0x180   : > { %v1632_v12 = vpop.f32.mrf.mxu2 }
 0x182   : > { %v1074_v2 = vpop.f32.mrf.mxu3 }
 0x183   : > { %3407 = vmatmul.msk.f32.vlgmr.msra.gmra.mxu0 %vm336_vm5, %v895_v51  ;;  %3415 = vmatmul.msk.f32.vlgmr.msra.gmra.mxu1 %vm336_vm5, %v1071_v3 }
 0x184   : > { %1170 = vmatpush.msra.mxu0 %v3896_v26  ;;  %1308 = vmatpush.msra.mxu1 %v3847_v17 }
 0x186   : > { %1171 = vmatpush.msra.mxu0 %v3904_v27  ;;  %1309 = vmatpush.msra.mxu1 %v3890_v25 }
 0x187   : > { %3484 = vmatmul.msk.f32.gmra.mxu3 %vm291_vm4, %v3872_v23 }
 0x188   : > { %v1635_v15 = vpop.f32.mrf.mxu2 }
 0x18a   : > { %v1077_v6 = vpop.f32.mrf.mxu3 }
 0x18b   : > { %3414 = vmatmul.msk.f32.vlgmr.msrb.gmra.mxu0 %vm336_vm5, %v1074_v2  ;;  %3417 = vmatmul.msk.f32.vlgmr.msrb.gmra.mxu1 %vm336_vm5, %v1077_v6 }
 0x18c   : > { %1285 = vmatpush.msrb.mxu0 %v3896_v26  ;;  %1378 = vmatpush.msrb.mxu1 %v3847_v17 }
 0x18e   : > { %1286 = vmatpush.msrb.mxu0 %v3904_v27  ;;  %1379 = vmatpush.msrb.mxu1 %v3890_v25 }
 0x18f   : > { %3485 = vmatmul.msk.f32.gmra.mxu3 %vm291_vm4, %v3881_v24 }
 0x190   : > { %v1996_v16 = vpop.f32.mrf.mxu2 }
 0x192   : > { %v1080_v9 = vpop.f32.mrf.mxu3 }
 0x193   : > { %3416 = vmatmul.msk.f32.vlgmr.msra.gmra.mxu0 %vm336_vm5, %v1080_v9  ;;  %3424 = vmatmul.msk.f32.vlgmr.msra.gmra.mxu1 %vm336_vm5, %v1256_v61 }
 0x194   : > { %1355 = vmatpush.msra.mxu0 %v3896_v26  ;;  %1493 = vmatpush.msra.mxu1 %v3847_v17 }
 0x196   : > { %1356 = vmatpush.msra.mxu0 %v3904_v27  ;;  %1494 = vmatpush.msra.mxu1 %v3890_v25 }
 0x197   : > { %3500 = vmatmul.msk.f32.vlgmr.msra.gmra.mxu3 %vm291_vm4, %v3842_v14 }
 0x19a   : > { %v1441_v11 = vpop.f32.mrf.mxu3 }
 0x19b   : > { %3423 = vmatmul.msk.f32.vlgmr.msrb.gmra.mxu0 %vm336_vm5, %v1259_v1  ;;  %3426 = vmatmul.msk.f32.vlgmr.msrb.gmra.mxu1 %vm336_vm5, %v1262_v4 }
 0x19c   : > { %1470 = vmatpush.msrb.mxu0 %v3896_v26  ;;  %1563 = vmatpush.msrb.mxu1 %v3847_v17 }
 0x19e   : > { %1471 = vmatpush.msrb.mxu0 %v3904_v27  ;;  %1564 = vmatpush.msrb.mxu1 %v3890_v25 }
 0x19f   : > { %3501 = vmatmul.msk.f32.gmra.mxu3 %vm291_vm4, %v3863_v22 }
 0x1a2   : > { %v1444_v13 = vpop.f32.mrf.mxu3 }
 0x1a3   : > { %3425 = vmatmul.msk.f32.vlgmr.msra.gmra.mxu0 %vm336_vm5, %v1265_v5  ;;  %3433 = vmatmul.msk.f32.vlgmr.msra.gmra.mxu1 %vm336_vm5, %v1441_v11  ;;  %v4414_v5 = vld [vmem:[%s4947_s4] sm:$0xff] }
 0x1a4   : > { %1540 = vmatpush.msra.mxu0 %v3896_v26  ;;  %1678 = vmatpush.msra.mxu1 %v3847_v17 }
 0x1a6   : > { %1541 = vmatpush.msra.mxu0 %v3904_v27  ;;  %1679 = vmatpush.msra.mxu1 %v3890_v25 }
 0x1a7   : > { %3502 = vmatmul.msk.f32.gmra.mxu3 %vm291_vm4, %v3872_v23  ;;  %v1999_v23 = vpop.f32.mrf.mxu2 }
 0x1aa   : > { %v1447_v14 = vpop.f32.mrf.mxu3 }
 0x1ab   : > { %3432 = vmatmul.msk.f32.vlgmr.msrb.gmra.mxu0 %vm336_vm5, %v1444_v13  ;;  %3435 = vmatmul.msk.f32.vlgmr.msrb.gmra.mxu1 %vm336_vm5, %v1447_v14 }
 0x1ac   : > { %1655 = vmatpush.msrb.mxu0 %v3896_v26  ;;  %1748 = vmatpush.msrb.mxu1 %v3847_v17 }
 0x1ae   : > { %1656 = vmatpush.msrb.mxu0 %v3904_v27  ;;  %1749 = vmatpush.msrb.mxu1 %v3890_v25 }
 0x1af   : > { %3503 = vmatmul.msk.f32.gmra.mxu3 %vm291_vm4, %v3881_v24  ;;  %v2002_v24 = vpop.f32.mrf.mxu2 }
 0x1b2   : > { %v1450_v22 = vpop.f32.mrf.mxu3 }
 0x1b3   : > { %3434 = vmatmul.msk.f32.vlgmr.msra.gmra.mxu0 %vm336_vm5, %v1450_v22  ;;  %3442 = vmatmul.msk.f32.vlgmr.msra.gmra.mxu1 %vm336_vm5, %v1626_v7 }
 0x1b4   : > { %1725 = vmatpush.msra.mxu0 %v3896_v26  ;;  %1863 = vmatpush.msra.mxu1 %v3847_v17 }
 0x1b6   : > { %1726 = vmatpush.msra.mxu0 %v3904_v27  ;;  %1864 = vmatpush.msra.mxu1 %v3890_v25 }
 0x1b7   : > { %v2005_v20 = vpop.f32.mrf.mxu2 }
 0x1ba   : > { %v1811_v18 = vpop.f32.mrf.mxu3 }
 0x1bb   : > { %3441 = vmatmul.msk.f32.vlgmr.msrb.gmra.mxu0 %vm336_vm5, %v1629_v10  ;;  %3444 = vmatmul.msk.f32.vlgmr.msrb.gmra.mxu1 %vm336_vm5, %v1632_v12 }
 0x1bc   : > { %1840 = vmatpush.msrb.mxu0 %v3896_v26  ;;  %1933 = vmatpush.msrb.mxu1 %v3847_v17 }
 0x1be   : > { %1841 = vmatpush.msrb.mxu0 %v3904_v27  ;;  %1934 = vmatpush.msrb.mxu1 %v3890_v25 }
 0x1bf   : > { %v2366_v28 = vpop.f32.mrf.mxu2 }
 0x1c2   : > { %v1814_v19 = vpop.f32.mrf.mxu3 }
 0x1c3   : > { %3443 = vmatmul.msk.f32.vlgmr.msra.gmra.mxu0 %vm336_vm5, %v1635_v15  ;;  %3451 = vmatmul.msk.f32.vlgmr.msra.gmra.mxu1 %vm336_vm5, %v1811_v18 }
 0x1c4   : > { %1910 = vmatpush.msra.mxu0 %v3896_v26  ;;  %2048 = vmatpush.msra.mxu1 %v3847_v17 }
 0x1c6   : > { %1911 = vmatpush.msra.mxu0 %v3904_v27  ;;  %2049 = vmatpush.msra.mxu1 %v3890_v25 }
 0x1c7   : > { %v4328_v31 = vpop.f32.mrf.mxu2 }
 0x1ca   : > { %v1817_v21 = vpop.f32.mrf.mxu3 }
 0x1cb   : > { %3450 = vmatmul.msk.f32.vlgmr.msrb.gmra.mxu0 %vm336_vm5, %v1814_v19  ;;  %3453 = vmatmul.msk.f32.vlgmr.msrb.gmra.mxu1 %vm336_vm5, %v1817_v21 }
 0x1cc   : > { %2025 = vmatpush.msrb.mxu0 %v3896_v26  ;;  %2118 = vmatpush.msrb.mxu1 %v3847_v17 }
 0x1ce   : > { %2026 = vmatpush.msrb.mxu0 %v3904_v27  ;;  %2119 = vmatpush.msrb.mxu1 %v3890_v25 }
 0x1cf   : > { %v2372_v40 = vpop.f32.mrf.mxu2 }
 0x1d2   : > { %v1820_v29 = vpop.f32.mrf.mxu3 }
 0x1d3   : > { %3452 = vmatmul.msk.f32.vlgmr.msra.gmra.mxu0 %vm336_vm5, %v1820_v29  ;;  %3460 = vmatmul.msk.f32.vlgmr.msra.gmra.mxu1 %vm336_vm5, %v1996_v16 }
 0x1d4   : > { %2095 = vmatpush.msra.mxu0 %v3896_v26  ;;  %2233 = vmatpush.msra.mxu1 %v3847_v17 }
 0x1d6   : > { %2096 = vmatpush.msra.mxu0 %v3904_v27  ;;  %2234 = vmatpush.msra.mxu1 %v3890_v25 }
 0x1d7   : > { %v2375_v47 = vpop.f32.mrf.mxu2 }
 0x1d8   : > { %v756_v32 = vpop.f32.mrf.mxu1 }
 0x1da   : > { %v2181_v30 = vpop.f32.mrf.mxu3 }
 0x1db   : > { %3459 = vmatmul.msk.f32.vlgmr.msrb.gmra.mxu0 %vm336_vm5, %v1999_v23  ;;  %3462 = vmatmul.msk.f32.vlgmr.msrb.gmra.mxu1 %vm336_vm5, %v2002_v24 }
 0x1dc   : > { %2210 = vmatpush.msrb.mxu0 %v3896_v26  ;;  %2303 = vmatpush.msrb.mxu1 %v3847_v17 }
 0x1de   : > { %2211 = vmatpush.msrb.mxu0 %v3904_v27  ;;  %2304 = vmatpush.msrb.mxu1 %v3890_v25 }
 0x1df   : > { %v4388_v61 = vpop.f32.mrf.mxu2 }
 0x1e0   : > { %v733_v33 = vpop.f32.mrf.mxu0 }
 0x1e1   : > { %v757_v34 = vadd.f32 %v756_v32, %v733_v33 }
 0x1e2   : > { %v2184_v35 = vpop.f32.mrf.mxu3 }
 0x1e3   : > { %v759_v36 = vadd.f32 %v757_v34, %v4063_v8  ;;  %3461 = vmatmul.msk.f32.vlgmr.msra.gmra.mxu0 %vm336_vm5, %v2005_v20  ;;  %3469 = vmatmul.msk.f32.vlgmr.msra.gmra.mxu1 %vm336_vm5, %v2181_v30 }
 0x1e4   : > { %2280 = vmatpush.msra.mxu0 %v3896_v26  ;;  %2418 = vmatpush.msra.mxu1 %v3847_v17 }
 0x1e5   : > { %v761_v37 = vrot.slane %v759_v36, 1  ;;  %v762_v38 = vrot.slane %v759_v36, 2  ;;  %v763_v39 = vrot.slane %v759_v36, 3  ;;  %775 = vst.msk [vmem:[%s4072_s16 + $0x4] sm:$0x1] %vm404_vm6, %v759_v36  ;;  %v764_v41 = vrot.slane %v759_v36, 4 }
 0x1e6   : > { %2281 = vmatpush.msra.mxu0 %v3904_v27  ;;  %2419 = vmatpush.msra.mxu1 %v3890_v25  ;;  %v765_v42 = vrot.slane %v759_v36, 5  ;;  %v766_v43 = vrot.slane %v759_v36, 6  ;;  %v767_v44 = vrot.slane %v759_v36, 7 }
 0x1e7   : > { %776 = vst.msk [vmem:[%s4072_s16 + $0x24] sm:$0x1] %vm404_vm6, %v761_v37  ;;  %v4431_v14 = vpop.f32.mrf.mxu2 }
 0x1e8   : > { %777 = vst.msk [vmem:[%s4072_s16 + $0x44] sm:$0x1] %vm404_vm6, %v762_v38  ;;  %v826_v17 = vpop.f32.mrf.mxu1 }
 0x1e9   : > { %778 = vst.msk [vmem:[%s4072_s16 + $0x64] sm:$0x1] %vm404_vm6, %v763_v39 }
 0x1ea   : > { %779 = vst.msk [vmem:[%s4072_s16 + $0x84] sm:$0x1] %vm404_vm6, %v764_v41  ;;  %v2187_v45 = vpop.f32.mrf.mxu3 }
 0x1eb   : > { %780 = vst.msk [vmem:[%s4072_s16 + $0xa4] sm:$0x1] %vm404_vm6, %v765_v42  ;;  %3468 = vmatmul.msk.f32.vlgmr.msrb.gmra.mxu0 %vm336_vm5, %v2184_v35  ;;  %3471 = vmatmul.msk.f32.vlgmr.msrb.gmra.mxu1 %vm336_vm5, %v2187_v45 }
 0x1ec   : > { %781 = vst.msk [vmem:[%s4072_s16 + $0xc4] sm:$0x1] %vm404_vm6, %v766_v43  ;;  %2395 = vmatpush.msrb.mxu0 %v3896_v26  ;;  %2488 = vmatpush.msrb.mxu1 %v4361_v46 }
 0x1ed   : > { %782 = vst.msk [vmem:[%s4072_s16 + $0xe4] sm:$0x1] %vm404_vm6, %v767_v44 }
 0x1ee   : > { %2396 = vmatpush.msrb.mxu0 %v3904_v27  ;;  %2489 = vmatpush.msrb.mxu1 %v3890_v25 }
 0x1ef   : > { %v2742_v35 = vpop.f32.mrf.mxu2 }
 0x1f0   : > { %v803_v48 = vpop.f32.mrf.mxu0  ;;  %v941_v49 = vpop.f32.mrf.mxu1 }
 0x1f1   : > { %v827_v50 = vadd.f32 %v826_v17, %v803_v48 }
 0x1f2   : > { %v2190_v51 = vpop.f32.mrf.mxu3 }
 0x1f3   : > { %v829_v52 = vadd.f32 %v827_v50, %v4063_v8  ;;  %3470 = vmatmul.msk.f32.vlgmr.msra.gmra.mxu0 %vm336_vm5, %v2190_v51  ;;  %3478 = vmatmul.msk.f32.vlgmr.msra.gmra.mxu1 %vm336_vm5, %v2366_v28 }
 0x1f4   : > { %2465 = vmatpush.msra.mxu0 %v3896_v26  ;;  %2603 = vmatpush.msra.mxu1 %v4361_v46 }
 0x1f5   : > { %v831_v53 = vrot.slane %v829_v52, 1  ;;  %v832_v25 = vrot.slane %v829_v52, 2  ;;  %v833_v54 = vrot.slane %v829_v52, 3  ;;  %845 = vst.msk [vmem:[%s4072_s16 + $0x5] sm:$0x1] %vm404_vm6, %v829_v52  ;;  %v834_v55 = vrot.slane %v829_v52, 4 }
 0x1f6   : > { %2466 = vmatpush.msra.mxu0 %v3904_v27  ;;  %2604 = vmatpush.msra.mxu1 %v4379_v56  ;;  %v835_v26 = vrot.slane %v829_v52, 5  ;;  %v836_v57 = vrot.slane %v829_v52, 6  ;;  %v837_v60 = vrot.slane %v829_v52, 7 }
 0x1f7   : > { %846 = vst.msk [vmem:[%s4072_s16 + $0x25] sm:$0x1] %vm404_vm6, %v831_v53  ;;  %v2745_v50 = vpop.f32.mrf.mxu2 }
 0x1f8   : > { %847 = vst.msk [vmem:[%s4072_s16 + $0x45] sm:$0x1] %vm404_vm6, %v832_v25  ;;  %v918_v58 = vpop.f32.mrf.mxu0  ;;  %v1011_v59 = vpop.f32.mrf.mxu1 }
 0x1f9   : > { %848 = vst.msk [vmem:[%s4072_s16 + $0x65] sm:$0x1] %vm404_vm6, %v833_v54  ;;  %v942_v27 = vadd.f32 %v941_v49, %v918_v58 }
 0x1fa   : > { %849 = vst.msk [vmem:[%s4072_s16 + $0x85] sm:$0x1] %vm404_vm6, %v834_v55  ;;  %v2551_v62 = vpop.f32.mrf.mxu3 }
 0x1fb   : > { %850 = vst.msk [vmem:[%s4072_s16 + $0xa5] sm:$0x1] %vm404_vm6, %v835_v26  ;;  %v944_v63 = vadd.f32 %v942_v27, %v4063_v8  ;;  %3477 = vmatmul.msk.f32.vlgmr.msrb.gmra.mxu0 %vm336_vm5, %v4328_v31  ;;  %3480 = vmatmul.msk.f32.vlgmr.msrb.gmra.mxu1 %vm336_vm5, %v2372_v40 }
 0x1fc   : > { %851 = vst.msk [vmem:[%s4072_s16 + $0xc5] sm:$0x1] %vm404_vm6, %v836_v57  ;;  %2580 = vmatpush.msrb.mxu0 %v4403_v0  ;;  %2673 = vmatpush.msrb.mxu1 %v4361_v46 }
 0x1fd   : > { %852 = vst.msk [vmem:[%s4072_s16 + $0xe5] sm:$0x1] %vm404_vm6, %v837_v60  ;;  %v946_v1 = vrot.slane %v944_v63, 1  ;;  %v947_v3 = vrot.slane %v944_v63, 2  ;;  %v948_v4 = vrot.slane %v944_v63, 3  ;;  %v949_v2 = vrot.slane %v944_v63, 4 }
 0x1fe   : > { %960 = vst.msk [vmem:[%s4072_s16 + $0x6] sm:$0x1] %vm404_vm6, %v944_v63  ;;  %2581 = vmatpush.msrb.mxu0 %v4414_v5  ;;  %2674 = vmatpush.msrb.mxu1 %v4379_v56  ;;  %v950_v6 = vrot.slane %v944_v63, 5  ;;  %v951_v7 = vrot.slane %v944_v63, 6  ;;  %v952_v11 = vrot.slane %v944_v63, 7 }
 0x1ff   : > { %961 = vst.msk [vmem:[%s4072_s16 + $0x26] sm:$0x1] %vm404_vm6, %v946_v1 }
 0x200   : > { %962 = vst.msk [vmem:[%s4072_s16 + $0x46] sm:$0x1] %vm404_vm6, %v947_v3  ;;  %v988_v9 = vpop.f32.mrf.mxu0  ;;  %v1126_v10 = vpop.f32.mrf.mxu1 }
 0x201   : > { %963 = vst.msk [vmem:[%s4072_s16 + $0x66] sm:$0x1] %vm404_vm6, %v948_v4  ;;  %v1012_v12 = vadd.f32 %v1011_v59, %v988_v9  ;;  %v3106_v4 = vpop.f32.mrf.mxu2 }
 0x202   : > { %964 = vst.msk [vmem:[%s4072_s16 + $0x86] sm:$0x1] %vm404_vm6, %v949_v2  ;;  %v2554_v13 = vpop.f32.mrf.mxu3 }
 0x203   : > { %965 = vst.msk [vmem:[%s4072_s16 + $0xa6] sm:$0x1] %vm404_vm6, %v950_v6  ;;  %v1014_v15 = vadd.f32 %v1012_v12, %v4063_v8  ;;  %3479 = vmatmul.msk.f32.vlgmr.msra.gmra.mxu0 %vm336_vm5, %v2375_v47  ;;  %3487 = vmatmul.msk.f32.vlgmr.msra.gmra.mxu1 %vm336_vm5, %v2551_v62 }
 0x204   : > { %966 = vst.msk [vmem:[%s4072_s16 + $0xc6] sm:$0x1] %vm404_vm6, %v951_v7  ;;  %2650 = vmatpush.msra.mxu0 %v4403_v0  ;;  %2788 = vmatpush.msra.mxu1 %v4361_v46 }
 0x205   : > { %967 = vst.msk [vmem:[%s4072_s16 + $0xe6] sm:$0x1] %vm404_vm6, %v952_v11  ;;  %v1016_v16 = vrot.slane %v1014_v15, 1  ;;  %v1017_v22 = vrot.slane %v1014_v15, 2  ;;  %v1018_v23 = vrot.slane %v1014_v15, 3  ;;  %v1019_v18 = vrot.slane %v1014_v15, 4 }
 0x206   : > { %1030 = vst.msk [vmem:[%s4072_s16 + $0x7] sm:$0x1] %vm404_vm6, %v1014_v15  ;;  %2651 = vmatpush.msra.mxu0 %v4414_v5  ;;  %2789 = vmatpush.msra.mxu1 %v4379_v56  ;;  %v1020_v24 = vrot.slane %v1014_v15, 5  ;;  %v1021_v19 = vrot.slane %v1014_v15, 6  ;;  %v1022_v28 = vrot.slane %v1014_v15, 7 }
 0x207   : > { %1031 = vst.msk [vmem:[%s4072_s16 + $0x27] sm:$0x1] %vm404_vm6, %v1016_v16 }
 0x208   : > { %1032 = vst.msk [vmem:[%s4072_s16 + $0x47] sm:$0x1] %vm404_vm6, %v1017_v22  ;;  %v1103_v20 = vpop.f32.mrf.mxu0  ;;  %v1196_v21 = vpop.f32.mrf.mxu1 }
 0x209   : > { %1033 = vst.msk [vmem:[%s4072_s16 + $0x67] sm:$0x1] %vm404_vm6, %v1018_v23  ;;  %v1127_v29 = vadd.f32 %v1126_v10, %v1103_v20 }
 0x20a   : > { %1034 = vst.msk [vmem:[%s4072_s16 + $0x87] sm:$0x1] %vm404_vm6, %v1019_v18  ;;  %v2557_v30 = vpop.f32.mrf.mxu3 }
 0x20b   : > { %1035 = vst.msk [vmem:[%s4072_s16 + $0xa7] sm:$0x1] %vm404_vm6, %v1020_v24  ;;  %v1129_v31 = vadd.f32 %v1127_v29, %v4063_v8  ;;  %3486 = vmatmul.msk.f32.vlgmr.msrb.gmra.mxu0 %vm336_vm5, %v2554_v13  ;;  %3489 = vmatmul.msk.f32.vlgmr.msrb.gmra.mxu1 %vm336_vm5, %v2557_v30  ;;  %v3109_v24 = vpop.f32.mrf.mxu2 }
 0x20c   : > { %1036 = vst.msk [vmem:[%s4072_s16 + $0xc7] sm:$0x1] %vm404_vm6, %v1021_v19  ;;  %2765 = vmatpush.msrb.mxu0 %v4403_v0  ;;  %2858 = vmatpush.msrb.mxu1 %v4361_v46 }
 0x20d   : > { %1037 = vst.msk [vmem:[%s4072_s16 + $0xe7] sm:$0x1] %vm404_vm6, %v1022_v28  ;;  %v1131_v32 = vrot.slane %v1129_v31, 1  ;;  %v1132_v33 = vrot.slane %v1129_v31, 2  ;;  %v1133_v34 = vrot.slane %v1129_v31, 3  ;;  %v1134_v36 = vrot.slane %v1129_v31, 4 }
 0x20e   : > { %1145 = vst.msk [vmem:[%s4072_s16 + $0x8] sm:$0x1] %vm404_vm6, %v1129_v31  ;;  %2766 = vmatpush.msrb.mxu0 %v4414_v5  ;;  %2859 = vmatpush.msrb.mxu1 %v4379_v56  ;;  %v1135_v37 = vrot.slane %v1129_v31, 5  ;;  %v1136_v38 = vrot.slane %v1129_v31, 6  ;;  %v1137_v41 = vrot.slane %v1129_v31, 7 }
 0x20f   : > { %1146 = vst.msk [vmem:[%s4072_s16 + $0x28] sm:$0x1] %vm404_vm6, %v1131_v32 }
 0x210   : > { %1147 = vst.msk [vmem:[%s4072_s16 + $0x48] sm:$0x1] %vm404_vm6, %v1132_v33  ;;  %v1173_v39 = vpop.f32.mrf.mxu0  ;;  %v1311_v40 = vpop.f32.mrf.mxu1 }
 0x211   : > { %1148 = vst.msk [vmem:[%s4072_s16 + $0x68] sm:$0x1] %vm404_vm6, %v1133_v34  ;;  %v1197_v42 = vadd.f32 %v1196_v21, %v1173_v39 }
 0x212   : > { %1149 = vst.msk [vmem:[%s4072_s16 + $0x88] sm:$0x1] %vm404_vm6, %v1134_v36  ;;  %v2560_v43 = vpop.f32.mrf.mxu3 }
 0x213   : > { %1150 = vst.msk [vmem:[%s4072_s16 + $0xa8] sm:$0x1] %vm404_vm6, %v1135_v37  ;;  %v1199_v17 = vadd.f32 %v1197_v42, %v4063_v8  ;;  %3488 = vmatmul.msk.f32.vlgmr.msra.gmra.mxu0 %vm336_vm5, %v2560_v43  ;;  %3496 = vmatmul.msk.f32.vlgmr.msra.gmra.mxu1 %vm336_vm5, %v4388_v61 }
 0x214   : > { %1151 = vst.msk [vmem:[%s4072_s16 + $0xc8] sm:$0x1] %vm404_vm6, %v1136_v38  ;;  %2835 = vmatpush.msra.mxu0 %v4403_v0  ;;  %2973 = vmatpush.msra.mxu1 %v4361_v46  ;;  %v3112_v38 = vpop.f32.mrf.mxu2 }
 0x215   : > { %1152 = vst.msk [vmem:[%s4072_s16 + $0xe8] sm:$0x1] %vm404_vm6, %v1137_v41  ;;  %v1201_v44 = vrot.slane %v1199_v17, 1  ;;  %v1202_v45 = vrot.slane %v1199_v17, 2  ;;  %v1203_v47 = vrot.slane %v1199_v17, 3  ;;  %v1204_v48 = vrot.slane %v1199_v17, 4 }
 0x216   : > { %1215 = vst.msk [vmem:[%s4072_s16 + $0x9] sm:$0x1] %vm404_vm6, %v1199_v17  ;;  %2836 = vmatpush.msra.mxu0 %v4414_v5  ;;  %2974 = vmatpush.msra.mxu1 %v4379_v56  ;;  %v1205_v49 = vrot.slane %v1199_v17, 5  ;;  %v1206_v51 = vrot.slane %v1199_v17, 6  ;;  %v1207_v25 = vrot.slane %v1199_v17, 7 }
 0x217   : > { %1216 = vst.msk [vmem:[%s4072_s16 + $0x29] sm:$0x1] %vm404_vm6, %v1201_v44 }
 0x218   : > { %1217 = vst.msk [vmem:[%s4072_s16 + $0x49] sm:$0x1] %vm404_vm6, %v1202_v45  ;;  %v1288_v52 = vpop.f32.mrf.mxu0  ;;  %v1381_v53 = vpop.f32.mrf.mxu1 }
 0x219   : > { %1218 = vst.msk [vmem:[%s4072_s16 + $0x69] sm:$0x1] %vm404_vm6, %v1203_v47  ;;  %v1312_v54 = vadd.f32 %v1311_v40, %v1288_v52 }
 0x21a   : > { %1219 = vst.msk [vmem:[%s4072_s16 + $0x89] sm:$0x1] %vm404_vm6, %v1204_v48  ;;  %v2921_v55 = vpop.f32.mrf.mxu3 }
 0x21b   : > { %1220 = vst.msk [vmem:[%s4072_s16 + $0xa9] sm:$0x1] %vm404_vm6, %v1205_v49  ;;  %v1314_v26 = vadd.f32 %v1312_v54, %v4063_v8  ;;  %3495 = vmatmul.msk.f32.vlgmr.msrb.gmra.mxu0 %vm336_vm5, %v4431_v14  ;;  %3498 = vmatmul.msk.f32.vlgmr.msrb.gmra.mxu1 %vm336_vm5, %v2742_v35 }
 0x21c   : > { %1221 = vst.msk [vmem:[%s4072_s16 + $0xc9] sm:$0x1] %vm404_vm6, %v1206_v51  ;;  %2950 = vmatpush.msrb.mxu0 %v4403_v0  ;;  %3043 = vmatpush.msrb.mxu1 %v4361_v46 }
 0x21d   : > { %1222 = vst.msk [vmem:[%s4072_s16 + $0xe9] sm:$0x1] %vm404_vm6, %v1207_v25  ;;  %v1316_v57 = vrot.slane %v1314_v26, 1  ;;  %v1317_v58 = vrot.slane %v1314_v26, 2  ;;  %v1318_v59 = vrot.slane %v1314_v26, 3  ;;  %v1319_v60 = vrot.slane %v1314_v26, 4 }
 0x21e   : > { %1330 = vst.msk [vmem:[%s4072_s16 + $0xa] sm:$0x1] %vm404_vm6, %v1314_v26  ;;  %2951 = vmatpush.msrb.mxu0 %v4414_v5  ;;  %3044 = vmatpush.msrb.mxu1 %v4379_v56  ;;  %v1320_v27 = vrot.slane %v1314_v26, 5  ;;  %v1321_v61 = vrot.slane %v1314_v26, 6  ;;  %v1322_v1 = vrot.slane %v1314_v26, 7 }
 0x21f   : > { %1331 = vst.msk [vmem:[%s4072_s16 + $0x2a] sm:$0x1] %vm404_vm6, %v1316_v57 }
 0x220   : > { %1332 = vst.msk [vmem:[%s4072_s16 + $0x4a] sm:$0x1] %vm404_vm6, %v1317_v58  ;;  %v1358_v62 = vpop.f32.mrf.mxu0  ;;  %v1496_v63 = vpop.f32.mrf.mxu1 }
 0x221   : > { %1333 = vst.msk [vmem:[%s4072_s16 + $0x6a] sm:$0x1] %vm404_vm6, %v1318_v59  ;;  %v1382_v3 = vadd.f32 %v1381_v53, %v1358_v62 }
 0x222   : > { %1334 = vst.msk [vmem:[%s4072_s16 + $0x8a] sm:$0x1] %vm404_vm6, %v1319_v60  ;;  %v2924_v2 = vpop.f32.mrf.mxu3 }
 0x223   : > { %1335 = vst.msk [vmem:[%s4072_s16 + $0xaa] sm:$0x1] %vm404_vm6, %v1320_v27  ;;  %v1384_v6 = vadd.f32 %v1382_v3, %v4063_v8  ;;  %3497 = vmatmul.msk.f32.vlgmr.msra.gmra.mxu0 %vm336_vm5, %v2745_v50  ;;  %3505 = vmatmul.msk.f32.vlgmr.msra.gmra.mxu1 %vm336_vm5, %v2921_v55  ;;  %v3115_v50 = vpop.f32.mrf.mxu2 }
 0x224   : > { %1336 = vst.msk [vmem:[%s4072_s16 + $0xca] sm:$0x1] %vm404_vm6, %v1321_v61  ;;  %3020 = vmatpush.msra.mxu0 %v4403_v0  ;;  %3158 = vmatpush.msra.mxu1 %v4361_v46 }
 0x225   : > { %1337 = vst.msk [vmem:[%s4072_s16 + $0xea] sm:$0x1] %vm404_vm6, %v1322_v1  ;;  %v1386_v7 = vrot.slane %v1384_v6, 1  ;;  %v1387_v9 = vrot.slane %v1384_v6, 2  ;;  %v1388_v10 = vrot.slane %v1384_v6, 3  ;;  %v1389_v11 = vrot.slane %v1384_v6, 4 }
 0x226   : > { %1400 = vst.msk [vmem:[%s4072_s16 + $0xb] sm:$0x1] %vm404_vm6, %v1384_v6  ;;  %3021 = vmatpush.msra.mxu0 %v4414_v5  ;;  %3159 = vmatpush.msra.mxu1 %v4379_v56  ;;  %v1390_v12 = vrot.slane %v1384_v6, 5  ;;  %v1391_v13 = vrot.slane %v1384_v6, 6  ;;  %v1392_v16 = vrot.slane %v1384_v6, 7 }
 0x227   : > { %1401 = vst.msk [vmem:[%s4072_s16 + $0x2b] sm:$0x1] %vm404_vm6, %v1386_v7 }
 0x228   : > { %1402 = vst.msk [vmem:[%s4072_s16 + $0x4b] sm:$0x1] %vm404_vm6, %v1387_v9  ;;  %v1473_v15 = vpop.f32.mrf.mxu0  ;;  %v1566_v14 = vpop.f32.mrf.mxu1 }
 0x229   : > { %1403 = vst.msk [vmem:[%s4072_s16 + $0x6b] sm:$0x1] %vm404_vm6, %v1388_v10  ;;  %v1497_v22 = vadd.f32 %v1496_v63, %v1473_v15 }
 0x22a   : > { %1404 = vst.msk [vmem:[%s4072_s16 + $0x8b] sm:$0x1] %vm404_vm6, %v1389_v11  ;;  %v2927_v23 = vpop.f32.mrf.mxu3 }
 0x22b   : > { %1405 = vst.msk [vmem:[%s4072_s16 + $0xab] sm:$0x1] %vm404_vm6, %v1390_v12  ;;  %v1499_v18 = vadd.f32 %v1497_v22, %v4063_v8  ;;  %3504 = vmatmul.msk.f32.vlgmr.msrb.gmra.mxu0 %vm336_vm5, %v2924_v2  ;;  %3507 = vmatmul.msk.f32.vlgmr.msrb.gmra.mxu1 %vm336_vm5, %v2927_v23 }
 0x22c   : > { %1406 = vst.msk [vmem:[%s4072_s16 + $0xcb] sm:$0x1] %vm404_vm6, %v1391_v13  ;;  %3135 = vmatpush.msrb.mxu0 %v4403_v0  ;;  %3228 = vmatpush.msrb.mxu1 %v4361_v46 }
 0x22d   : > { %1407 = vst.msk [vmem:[%s4072_s16 + $0xeb] sm:$0x1] %vm404_vm6, %v1392_v16  ;;  %v1501_v19 = vrot.slane %v1499_v18, 1  ;;  %v1502_v20 = vrot.slane %v1499_v18, 2  ;;  %v1503_v21 = vrot.slane %v1499_v18, 3  ;;  %v1504_v28 = vrot.slane %v1499_v18, 4 }
 0x22e   : > { %1515 = vst.msk [vmem:[%s4072_s16 + $0xc] sm:$0x1] %vm404_vm6, %v1499_v18  ;;  %3136 = vmatpush.msrb.mxu0 %v4414_v5  ;;  %3229 = vmatpush.msrb.mxu1 %v4379_v56  ;;  %v1505_v29 = vrot.slane %v1499_v18, 5  ;;  %v1506_v46 = vrot.slane %v1499_v18, 6  ;;  %v1507_v32 = vrot.slane %v1499_v18, 7 }
 0x22f   : > { %1516 = vst.msk [vmem:[%s4072_s16 + $0x2c] sm:$0x1] %vm404_vm6, %v1501_v19 }
 0x230   : > { %1517 = vst.msk [vmem:[%s4072_s16 + $0x4c] sm:$0x1] %vm404_vm6, %v1502_v20  ;;  %v1543_v30 = vpop.f32.mrf.mxu0  ;;  %v1681_v31 = vpop.f32.mrf.mxu1 }
 0x231   : > { %1518 = vst.msk [vmem:[%s4072_s16 + $0x6c] sm:$0x1] %vm404_vm6, %v1503_v21  ;;  %v1567_v33 = vadd.f32 %v1566_v14, %v1543_v30 }
 0x232   : > { %1519 = vst.msk [vmem:[%s4072_s16 + $0x8c] sm:$0x1] %vm404_vm6, %v1504_v28  ;;  %v2930_v34 = vpop.f32.mrf.mxu3 }
 0x233   : > { %1520 = vst.msk [vmem:[%s4072_s16 + $0xac] sm:$0x1] %vm404_vm6, %v1505_v29  ;;  %v1569_v56 = vadd.f32 %v1567_v33, %v4063_v8  ;;  %3506 = vmatmul.msk.f32.vlgmr.msra.gmra.mxu0 %vm336_vm5, %v2930_v34  ;;  %3514 = vmatmul.msk.f32.vlgmr.msra.gmra.mxu1 %vm336_vm5, %v3106_v4 }
 0x234   : > { %1521 = vst.msk [vmem:[%s4072_s16 + $0xcc] sm:$0x1] %vm404_vm6, %v1506_v46  ;;  %3205 = vmatpush.msra.mxu0 %v4403_v0 }
 0x235   : > { %1522 = vst.msk [vmem:[%s4072_s16 + $0xec] sm:$0x1] %vm404_vm6, %v1507_v32  ;;  %v1571_v35 = vrot.slane %v1569_v56, 1  ;;  %v1572_v36 = vrot.slane %v1569_v56, 2  ;;  %v1573_v37 = vrot.slane %v1569_v56, 3  ;;  %v1574_v39 = vrot.slane %v1569_v56, 4 }
 0x236   : > { %1585 = vst.msk [vmem:[%s4072_s16 + $0xd] sm:$0x1] %vm404_vm6, %v1569_v56  ;;  %3206 = vmatpush.msra.mxu0 %v4414_v5  ;;  %v1575_v40 = vrot.slane %v1569_v56, 5  ;;  %v1576_v0 = vrot.slane %v1569_v56, 6  ;;  %v1577_v43 = vrot.slane %v1569_v56, 7 }
 0x237   : > { %1586 = vst.msk [vmem:[%s4072_s16 + $0x2d] sm:$0x1] %vm404_vm6, %v1571_v35 }
 0x238   : > { %1587 = vst.msk [vmem:[%s4072_s16 + $0x4d] sm:$0x1] %vm404_vm6, %v1572_v36  ;;  %v1658_v41 = vpop.f32.mrf.mxu0  ;;  %v1751_v42 = vpop.f32.mrf.mxu1 }
 0x239   : > { %1588 = vst.msk [vmem:[%s4072_s16 + $0x6d] sm:$0x1] %vm404_vm6, %v1573_v37  ;;  %v1682_v17 = vadd.f32 %v1681_v31, %v1658_v41 }
 0x23a   : > { %1589 = vst.msk [vmem:[%s4072_s16 + $0x8d] sm:$0x1] %vm404_vm6, %v1574_v39 }
 0x23b   : > { %1590 = vst.msk [vmem:[%s4072_s16 + $0xad] sm:$0x1] %vm404_vm6, %v1575_v40  ;;  %v1684_v5 = vadd.f32 %v1682_v17, %v4063_v8  ;;  %3513 = vmatmul.msk.f32.vlgmr.msrb.gmra.mxu0 %vm336_vm5, %v3109_v24  ;;  %3516 = vmatmul.msk.f32.vlgmr.msrb.gmra.mxu1 %vm336_vm5, %v3112_v38 }
 0x23c   : > { %1591 = vst.msk [vmem:[%s4072_s16 + $0xcd] sm:$0x1] %vm404_vm6, %v1576_v0 }
 0x23d   : > { %1592 = vst.msk [vmem:[%s4072_s16 + $0xed] sm:$0x1] %vm404_vm6, %v1577_v43  ;;  %v1686_v44 = vrot.slane %v1684_v5, 1  ;;  %v1687_v45 = vrot.slane %v1684_v5, 2  ;;  %v1688_v47 = vrot.slane %v1684_v5, 3  ;;  %v1689_v48 = vrot.slane %v1684_v5, 4 }
 0x23e   : > { %1700 = vst.msk [vmem:[%s4072_s16 + $0xe] sm:$0x1] %vm404_vm6, %v1684_v5  ;;  %v1690_v49 = vrot.slane %v1684_v5, 5  ;;  %v1691_v51 = vrot.slane %v1684_v5, 6  ;;  %v1692_v25 = vrot.slane %v1684_v5, 7 }
 0x23f   : > { %1701 = vst.msk [vmem:[%s4072_s16 + $0x2e] sm:$0x1] %vm404_vm6, %v1686_v44 }
 0x240   : > { %1702 = vst.msk [vmem:[%s4072_s16 + $0x4e] sm:$0x1] %vm404_vm6, %v1687_v45  ;;  %v1728_v52 = vpop.f32.mrf.mxu0  ;;  %v1866_v53 = vpop.f32.mrf.mxu1 }
 0x241   : > { %1703 = vst.msk [vmem:[%s4072_s16 + $0x6e] sm:$0x1] %vm404_vm6, %v1688_v47  ;;  %v1752_v54 = vadd.f32 %v1751_v42, %v1728_v52 }
 0x242   : > { %1704 = vst.msk [vmem:[%s4072_s16 + $0x8e] sm:$0x1] %vm404_vm6, %v1689_v48 }
 0x243   : > { %1705 = vst.msk [vmem:[%s4072_s16 + $0xae] sm:$0x1] %vm404_vm6, %v1690_v49  ;;  %v1754_v55 = vadd.f32 %v1752_v54, %v4063_v8  ;;  %3515 = vmatmul.msk.f32.vlgmr.msra.gmra.mxu0 %vm336_vm5, %v3115_v50 }
 0x244   : > { %1706 = vst.msk [vmem:[%s4072_s16 + $0xce] sm:$0x1] %vm404_vm6, %v1691_v51 }
 0x245   : > { %1707 = vst.msk [vmem:[%s4072_s16 + $0xee] sm:$0x1] %vm404_vm6, %v1692_v25  ;;  %v1756_v26 = vrot.slane %v1754_v55, 1  ;;  %v1757_v57 = vrot.slane %v1754_v55, 2  ;;  %v1758_v58 = vrot.slane %v1754_v55, 3  ;;  %v1759_v59 = vrot.slane %v1754_v55, 4 }
 0x246   : > { %1770 = vst.msk [vmem:[%s4072_s16 + $0xf] sm:$0x1] %vm404_vm6, %v1754_v55  ;;  %v1760_v60 = vrot.slane %v1754_v55, 5  ;;  %v1761_v27 = vrot.slane %v1754_v55, 6  ;;  %v1762_v63 = vrot.slane %v1754_v55, 7 }
 0x247   : > { %1771 = vst.msk [vmem:[%s4072_s16 + $0x2f] sm:$0x1] %vm404_vm6, %v1756_v26 }
 0x248   : > { %1772 = vst.msk [vmem:[%s4072_s16 + $0x4f] sm:$0x1] %vm404_vm6, %v1757_v57  ;;  %v1843_v61 = vpop.f32.mrf.mxu0  ;;  %v1936_v62 = vpop.f32.mrf.mxu1 }
 0x249   : > { %1773 = vst.msk [vmem:[%s4072_s16 + $0x6f] sm:$0x1] %vm404_vm6, %v1758_v58  ;;  %v1867_v1 = vadd.f32 %v1866_v53, %v1843_v61 }
 0x24a   : > { %1774 = vst.msk [vmem:[%s4072_s16 + $0x8f] sm:$0x1] %vm404_vm6, %v1759_v59 }
 0x24b   : > { %1775 = vst.msk [vmem:[%s4072_s16 + $0xaf] sm:$0x1] %vm404_vm6, %v1760_v60  ;;  %v1869_v3 = vadd.f32 %v1867_v1, %v4063_v8 }
 0x24c   : > { %1776 = vst.msk [vmem:[%s4072_s16 + $0xcf] sm:$0x1] %vm404_vm6, %v1761_v27 }
 0x24d   : > { %1777 = vst.msk [vmem:[%s4072_s16 + $0xef] sm:$0x1] %vm404_vm6, %v1762_v63  ;;  %v1871_v4 = vrot.slane %v1869_v3, 1  ;;  %v1872_v2 = vrot.slane %v1869_v3, 2  ;;  %v1873_v6 = vrot.slane %v1869_v3, 3  ;;  %v1874_v7 = vrot.slane %v1869_v3, 4 }
 0x24e   : > { %1885 = vst.msk [vmem:[%s4072_s16 + $0x10] sm:$0x1] %vm404_vm6, %v1869_v3  ;;  %v1875_v9 = vrot.slane %v1869_v3, 5  ;;  %v1876_v10 = vrot.slane %v1869_v3, 6  ;;  %v1877_v13 = vrot.slane %v1869_v3, 7 }
 0x24f   : > { %1886 = vst.msk [vmem:[%s4072_s16 + $0x30] sm:$0x1] %vm404_vm6, %v1871_v4 }
 0x250   : > { %1887 = vst.msk [vmem:[%s4072_s16 + $0x50] sm:$0x1] %vm404_vm6, %v1872_v2  ;;  %v1913_v11 = vpop.f32.mrf.mxu0  ;;  %v2051_v12 = vpop.f32.mrf.mxu1 }
 0x251   : > { %1888 = vst.msk [vmem:[%s4072_s16 + $0x70] sm:$0x1] %vm404_vm6, %v1873_v6  ;;  %v1937_v15 = vadd.f32 %v1936_v62, %v1913_v11 }
 0x252   : > { %1889 = vst.msk [vmem:[%s4072_s16 + $0x90] sm:$0x1] %vm404_vm6, %v1874_v7 }
 0x253   : > { %1890 = vst.msk [vmem:[%s4072_s16 + $0xb0] sm:$0x1] %vm404_vm6, %v1875_v9  ;;  %v1939_v14 = vadd.f32 %v1937_v15, %v4063_v8 }
 0x254   : > { %1891 = vst.msk [vmem:[%s4072_s16 + $0xd0] sm:$0x1] %vm404_vm6, %v1876_v10 }
 0x255   : > { %1892 = vst.msk [vmem:[%s4072_s16 + $0xf0] sm:$0x1] %vm404_vm6, %v1877_v13  ;;  %v1941_v16 = vrot.slane %v1939_v14, 1  ;;  %v1942_v22 = vrot.slane %v1939_v14, 2  ;;  %v1943_v23 = vrot.slane %v1939_v14, 3  ;;  %v1944_v18 = vrot.slane %v1939_v14, 4 }
 0x256   : > { %1955 = vst.msk [vmem:[%s4072_s16 + $0x11] sm:$0x1] %vm404_vm6, %v1939_v14  ;;  %v1945_v24 = vrot.slane %v1939_v14, 5  ;;  %v1946_v19 = vrot.slane %v1939_v14, 6  ;;  %v1947_v28 = vrot.slane %v1939_v14, 7 }
 0x257   : > { %1956 = vst.msk [vmem:[%s4072_s16 + $0x31] sm:$0x1] %vm404_vm6, %v1941_v16 }
 0x258   : > { %1957 = vst.msk [vmem:[%s4072_s16 + $0x51] sm:$0x1] %vm404_vm6, %v1942_v22  ;;  %v2028_v20 = vpop.f32.mrf.mxu0  ;;  %v2121_v21 = vpop.f32.mrf.mxu1 }
 0x259   : > { %1958 = vst.msk [vmem:[%s4072_s16 + $0x71] sm:$0x1] %vm404_vm6, %v1943_v23  ;;  %v2052_v29 = vadd.f32 %v2051_v12, %v2028_v20 }
 0x25a   : > { %1959 = vst.msk [vmem:[%s4072_s16 + $0x91] sm:$0x1] %vm404_vm6, %v1944_v18 }
 0x25b   : > { %1960 = vst.msk [vmem:[%s4072_s16 + $0xb1] sm:$0x1] %vm404_vm6, %v1945_v24  ;;  %v2054_v46 = vadd.f32 %v2052_v29, %v4063_v8 }
 0x25c   : > { %1961 = vst.msk [vmem:[%s4072_s16 + $0xd1] sm:$0x1] %vm404_vm6, %v1946_v19 }
 0x25d   : > { %1962 = vst.msk [vmem:[%s4072_s16 + $0xf1] sm:$0x1] %vm404_vm6, %v1947_v28  ;;  %v2056_v30 = vrot.slane %v2054_v46, 1  ;;  %v2057_v31 = vrot.slane %v2054_v46, 2  ;;  %v2058_v32 = vrot.slane %v2054_v46, 3  ;;  %v2059_v33 = vrot.slane %v2054_v46, 4 }
 0x25e   : > { %2070 = vst.msk [vmem:[%s4072_s16 + $0x12] sm:$0x1] %vm404_vm6, %v2054_v46  ;;  %v2060_v34 = vrot.slane %v2054_v46, 5  ;;  %v2061_v56 = vrot.slane %v2054_v46, 6  ;;  %v2062_v37 = vrot.slane %v2054_v46, 7 }
 0x25f   : > { %2071 = vst.msk [vmem:[%s4072_s16 + $0x32] sm:$0x1] %vm404_vm6, %v2056_v30 }
 0x260   : > { %2072 = vst.msk [vmem:[%s4072_s16 + $0x52] sm:$0x1] %vm404_vm6, %v2057_v31  ;;  %v2098_v35 = vpop.f32.mrf.mxu0  ;;  %v2236_v36 = vpop.f32.mrf.mxu1 }
 0x261   : > { %2073 = vst.msk [vmem:[%s4072_s16 + $0x72] sm:$0x1] %vm404_vm6, %v2058_v32  ;;  %v2122_v38 = vadd.f32 %v2121_v21, %v2098_v35 }
 0x262   : > { %2074 = vst.msk [vmem:[%s4072_s16 + $0x92] sm:$0x1] %vm404_vm6, %v2059_v33 }
 0x263   : > { %2075 = vst.msk [vmem:[%s4072_s16 + $0xb2] sm:$0x1] %vm404_vm6, %v2060_v34  ;;  %v2124_v39 = vadd.f32 %v2122_v38, %v4063_v8 }
 0x264   : > { %2076 = vst.msk [vmem:[%s4072_s16 + $0xd2] sm:$0x1] %vm404_vm6, %v2061_v56 }
 0x265   : > { %2077 = vst.msk [vmem:[%s4072_s16 + $0xf2] sm:$0x1] %vm404_vm6, %v2062_v37  ;;  %v2126_v40 = vrot.slane %v2124_v39, 1  ;;  %v2127_v0 = vrot.slane %v2124_v39, 2  ;;  %v2128_v41 = vrot.slane %v2124_v39, 3  ;;  %v2129_v42 = vrot.slane %v2124_v39, 4 }
 0x266   : > { %2140 = vst.msk [vmem:[%s4072_s16 + $0x13] sm:$0x1] %vm404_vm6, %v2124_v39  ;;  %v2130_v43 = vrot.slane %v2124_v39, 5  ;;  %v2131_v17 = vrot.slane %v2124_v39, 6  ;;  %v2132_v45 = vrot.slane %v2124_v39, 7 }
 0x267   : > { %2141 = vst.msk [vmem:[%s4072_s16 + $0x33] sm:$0x1] %vm404_vm6, %v2126_v40 }
 0x268   : > { %2142 = vst.msk [vmem:[%s4072_s16 + $0x53] sm:$0x1] %vm404_vm6, %v2127_v0  ;;  %v2213_v5 = vpop.f32.mrf.mxu0  ;;  %v2306_v44 = vpop.f32.mrf.mxu1 }
 0x269   : > { %2143 = vst.msk [vmem:[%s4072_s16 + $0x73] sm:$0x1] %vm404_vm6, %v2128_v41  ;;  %v2237_v47 = vadd.f32 %v2236_v36, %v2213_v5 }
 0x26a   : > { %2144 = vst.msk [vmem:[%s4072_s16 + $0x93] sm:$0x1] %vm404_vm6, %v2129_v42 }
 0x26b   : > { %2145 = vst.msk [vmem:[%s4072_s16 + $0xb3] sm:$0x1] %vm404_vm6, %v2130_v43  ;;  %v2239_v48 = vadd.f32 %v2237_v47, %v4063_v8 }
 0x26c   : > { %2146 = vst.msk [vmem:[%s4072_s16 + $0xd3] sm:$0x1] %vm404_vm6, %v2131_v17 }
 0x26d   : > { %2147 = vst.msk [vmem:[%s4072_s16 + $0xf3] sm:$0x1] %vm404_vm6, %v2132_v45  ;;  %v2241_v49 = vrot.slane %v2239_v48, 1  ;;  %v2242_v50 = vrot.slane %v2239_v48, 2  ;;  %v2243_v51 = vrot.slane %v2239_v48, 3  ;;  %v2244_v52 = vrot.slane %v2239_v48, 4 }
 0x26e   : > { %2255 = vst.msk [vmem:[%s4072_s16 + $0x14] sm:$0x1] %vm404_vm6, %v2239_v48  ;;  %v2245_v53 = vrot.slane %v2239_v48, 5  ;;  %v2246_v25 = vrot.slane %v2239_v48, 6  ;;  %v2247_v26 = vrot.slane %v2239_v48, 7 }
 0x26f   : > { %2256 = vst.msk [vmem:[%s4072_s16 + $0x34] sm:$0x1] %vm404_vm6, %v2241_v49 }
 0x270   : > { %2257 = vst.msk [vmem:[%s4072_s16 + $0x54] sm:$0x1] %vm404_vm6, %v2242_v50  ;;  %v2283_v54 = vpop.f32.mrf.mxu0  ;;  %v2421_v55 = vpop.f32.mrf.mxu1 }
 0x271   : > { %2258 = vst.msk [vmem:[%s4072_s16 + $0x74] sm:$0x1] %vm404_vm6, %v2243_v51  ;;  %v2307_v57 = vadd.f32 %v2306_v44, %v2283_v54 }
 0x272   : > { %2259 = vst.msk [vmem:[%s4072_s16 + $0x94] sm:$0x1] %vm404_vm6, %v2244_v52 }
 0x273   : > { %2260 = vst.msk [vmem:[%s4072_s16 + $0xb4] sm:$0x1] %vm404_vm6, %v2245_v53  ;;  %v2309_v58 = vadd.f32 %v2307_v57, %v4063_v8 }
 0x274   : > { %2261 = vst.msk [vmem:[%s4072_s16 + $0xd4] sm:$0x1] %vm404_vm6, %v2246_v25 }
 0x275   : > { %2262 = vst.msk [vmem:[%s4072_s16 + $0xf4] sm:$0x1] %vm404_vm6, %v2247_v26  ;;  %v2311_v59 = vrot.slane %v2309_v58, 1  ;;  %v2312_v60 = vrot.slane %v2309_v58, 2  ;;  %v2313_v27 = vrot.slane %v2309_v58, 3  ;;  %v2314_v61 = vrot.slane %v2309_v58, 4 }
 0x276   : > { %2325 = vst.msk [vmem:[%s4072_s16 + $0x15] sm:$0x1] %vm404_vm6, %v2309_v58  ;;  %v2315_v62 = vrot.slane %v2309_v58, 5  ;;  %v2316_v63 = vrot.slane %v2309_v58, 6  ;;  %v2317_v4 = vrot.slane %v2309_v58, 7 }
 0x277   : > { %2326 = vst.msk [vmem:[%s4072_s16 + $0x35] sm:$0x1] %vm404_vm6, %v2311_v59 }
 0x278   : > { %2327 = vst.msk [vmem:[%s4072_s16 + $0x55] sm:$0x1] %vm404_vm6, %v2312_v60  ;;  %v2398_v1 = vpop.f32.mrf.mxu0  ;;  %v2491_v3 = vpop.f32.mrf.mxu1 }
 0x279   : > { %2328 = vst.msk [vmem:[%s4072_s16 + $0x75] sm:$0x1] %vm404_vm6, %v2313_v27  ;;  %v2422_v2 = vadd.f32 %v2421_v55, %v2398_v1 }
 0x27a   : > { %2329 = vst.msk [vmem:[%s4072_s16 + $0x95] sm:$0x1] %vm404_vm6, %v2314_v61 }
 0x27b   : > { %2330 = vst.msk [vmem:[%s4072_s16 + $0xb5] sm:$0x1] %vm404_vm6, %v2315_v62  ;;  %v2424_v6 = vadd.f32 %v2422_v2, %v4063_v8 }
 0x27c   : > { %2331 = vst.msk [vmem:[%s4072_s16 + $0xd5] sm:$0x1] %vm404_vm6, %v2316_v63 }
 0x27d   : > { %2332 = vst.msk [vmem:[%s4072_s16 + $0xf5] sm:$0x1] %vm404_vm6, %v2317_v4  ;;  %v2426_v7 = vrot.slane %v2424_v6, 1  ;;  %v2427_v9 = vrot.slane %v2424_v6, 2  ;;  %v2428_v10 = vrot.slane %v2424_v6, 3  ;;  %v2429_v11 = vrot.slane %v2424_v6, 4 }
 0x27e   : > { %2440 = vst.msk [vmem:[%s4072_s16 + $0x16] sm:$0x1] %vm404_vm6, %v2424_v6  ;;  %v2430_v12 = vrot.slane %v2424_v6, 5  ;;  %v2431_v13 = vrot.slane %v2424_v6, 6  ;;  %v2432_v16 = vrot.slane %v2424_v6, 7 }
 0x27f   : > { %2441 = vst.msk [vmem:[%s4072_s16 + $0x36] sm:$0x1] %vm404_vm6, %v2426_v7 }
 0x280   : > { %2442 = vst.msk [vmem:[%s4072_s16 + $0x56] sm:$0x1] %vm404_vm6, %v2427_v9  ;;  %v2468_v15 = vpop.f32.mrf.mxu0  ;;  %v2606_v14 = vpop.f32.mrf.mxu1 }
 0x281   : > { %2443 = vst.msk [vmem:[%s4072_s16 + $0x76] sm:$0x1] %vm404_vm6, %v2428_v10  ;;  %v2492_v22 = vadd.f32 %v2491_v3, %v2468_v15 }
 0x282   : > { %2444 = vst.msk [vmem:[%s4072_s16 + $0x96] sm:$0x1] %vm404_vm6, %v2429_v11 }
 0x283   : > { %2445 = vst.msk [vmem:[%s4072_s16 + $0xb6] sm:$0x1] %vm404_vm6, %v2430_v12  ;;  %v2494_v23 = vadd.f32 %v2492_v22, %v4063_v8 }
 0x284   : > { %2446 = vst.msk [vmem:[%s4072_s16 + $0xd6] sm:$0x1] %vm404_vm6, %v2431_v13 }
 0x285   : > { %2447 = vst.msk [vmem:[%s4072_s16 + $0xf6] sm:$0x1] %vm404_vm6, %v2432_v16  ;;  %v2496_v18 = vrot.slane %v2494_v23, 1  ;;  %v2497_v24 = vrot.slane %v2494_v23, 2  ;;  %v2498_v19 = vrot.slane %v2494_v23, 3  ;;  %v2499_v20 = vrot.slane %v2494_v23, 4 }
 0x286   : > { %2510 = vst.msk [vmem:[%s4072_s16 + $0x17] sm:$0x1] %vm404_vm6, %v2494_v23  ;;  %v2500_v21 = vrot.slane %v2494_v23, 5  ;;  %v2501_v28 = vrot.slane %v2494_v23, 6  ;;  %v2502_v30 = vrot.slane %v2494_v23, 7 }
 0x287   : > { %2511 = vst.msk [vmem:[%s4072_s16 + $0x37] sm:$0x1] %vm404_vm6, %v2496_v18 }
 0x288   : > { %2512 = vst.msk [vmem:[%s4072_s16 + $0x57] sm:$0x1] %vm404_vm6, %v2497_v24  ;;  %v2583_v29 = vpop.f32.mrf.mxu0  ;;  %v2676_v46 = vpop.f32.mrf.mxu1 }
 0x289   : > { %2513 = vst.msk [vmem:[%s4072_s16 + $0x77] sm:$0x1] %vm404_vm6, %v2498_v19  ;;  %v2607_v31 = vadd.f32 %v2606_v14, %v2583_v29 }
 0x28a   : > { %2514 = vst.msk [vmem:[%s4072_s16 + $0x97] sm:$0x1] %vm404_vm6, %v2499_v20 }
 0x28b   : > { %2515 = vst.msk [vmem:[%s4072_s16 + $0xb7] sm:$0x1] %vm404_vm6, %v2500_v21  ;;  %v2609_v32 = vadd.f32 %v2607_v31, %v4063_v8 }
 0x28c   : > { %2516 = vst.msk [vmem:[%s4072_s16 + $0xd7] sm:$0x1] %vm404_vm6, %v2501_v28 }
 0x28d   : > { %2517 = vst.msk [vmem:[%s4072_s16 + $0xf7] sm:$0x1] %vm404_vm6, %v2502_v30  ;;  %v2611_v33 = vrot.slane %v2609_v32, 1  ;;  %v2612_v34 = vrot.slane %v2609_v32, 2  ;;  %v2613_v56 = vrot.slane %v2609_v32, 3  ;;  %v2614_v35 = vrot.slane %v2609_v32, 4 }
 0x28e   : > { %2625 = vst.msk [vmem:[%s4072_s16 + $0x18] sm:$0x1] %vm404_vm6, %v2609_v32  ;;  %v2615_v36 = vrot.slane %v2609_v32, 5  ;;  %v2616_v37 = vrot.slane %v2609_v32, 6  ;;  %v2617_v40 = vrot.slane %v2609_v32, 7 }
 0x28f   : > { %2626 = vst.msk [vmem:[%s4072_s16 + $0x38] sm:$0x1] %vm404_vm6, %v2611_v33 }
 0x290   : > { %2627 = vst.msk [vmem:[%s4072_s16 + $0x58] sm:$0x1] %vm404_vm6, %v2612_v34  ;;  %v2653_v38 = vpop.f32.mrf.mxu0  ;;  %v2791_v39 = vpop.f32.mrf.mxu1 }
 0x291   : > { %2628 = vst.msk [vmem:[%s4072_s16 + $0x78] sm:$0x1] %vm404_vm6, %v2613_v56  ;;  %v2677_v0 = vadd.f32 %v2676_v46, %v2653_v38 }
 0x292   : > { %2629 = vst.msk [vmem:[%s4072_s16 + $0x98] sm:$0x1] %vm404_vm6, %v2614_v35 }
 0x293   : > { %2630 = vst.msk [vmem:[%s4072_s16 + $0xb8] sm:$0x1] %vm404_vm6, %v2615_v36  ;;  %v2679_v41 = vadd.f32 %v2677_v0, %v4063_v8 }
 0x294   : > { %2631 = vst.msk [vmem:[%s4072_s16 + $0xd8] sm:$0x1] %vm404_vm6, %v2616_v37 }
 0x295   : > { %2632 = vst.msk [vmem:[%s4072_s16 + $0xf8] sm:$0x1] %vm404_vm6, %v2617_v40  ;;  %v2681_v42 = vrot.slane %v2679_v41, 1  ;;  %v2682_v43 = vrot.slane %v2679_v41, 2  ;;  %v2683_v17 = vrot.slane %v2679_v41, 3  ;;  %v2684_v5 = vrot.slane %v2679_v41, 4 }
 0x296   : > { %2695 = vst.msk [vmem:[%s4072_s16 + $0x19] sm:$0x1] %vm404_vm6, %v2679_v41  ;;  %v2685_v44 = vrot.slane %v2679_v41, 5  ;;  %v2686_v45 = vrot.slane %v2679_v41, 6  ;;  %v2687_v49 = vrot.slane %v2679_v41, 7 }
 0x297   : > { %2696 = vst.msk [vmem:[%s4072_s16 + $0x39] sm:$0x1] %vm404_vm6, %v2681_v42 }
 0x298   : > { %2697 = vst.msk [vmem:[%s4072_s16 + $0x59] sm:$0x1] %vm404_vm6, %v2682_v43  ;;  %v2768_v47 = vpop.f32.mrf.mxu0  ;;  %v2861_v48 = vpop.f32.mrf.mxu1 }
 0x299   : > { %2698 = vst.msk [vmem:[%s4072_s16 + $0x79] sm:$0x1] %vm404_vm6, %v2683_v17  ;;  %v2792_v50 = vadd.f32 %v2791_v39, %v2768_v47 }
 0x29a   : > { %2699 = vst.msk [vmem:[%s4072_s16 + $0x99] sm:$0x1] %vm404_vm6, %v2684_v5 }
 0x29b   : > { %2700 = vst.msk [vmem:[%s4072_s16 + $0xb9] sm:$0x1] %vm404_vm6, %v2685_v44  ;;  %v2794_v51 = vadd.f32 %v2792_v50, %v4063_v8 }
 0x29c   : > { %2701 = vst.msk [vmem:[%s4072_s16 + $0xd9] sm:$0x1] %vm404_vm6, %v2686_v45 }
 0x29d   : > { %2702 = vst.msk [vmem:[%s4072_s16 + $0xf9] sm:$0x1] %vm404_vm6, %v2687_v49  ;;  %v2796_v52 = vrot.slane %v2794_v51, 1  ;;  %v2797_v53 = vrot.slane %v2794_v51, 2  ;;  %v2798_v25 = vrot.slane %v2794_v51, 3  ;;  %v2799_v54 = vrot.slane %v2794_v51, 4 }
 0x29e   : > { %2810 = vst.msk [vmem:[%s4072_s16 + $0x1a] sm:$0x1] %vm404_vm6, %v2794_v51  ;;  %v2800_v55 = vrot.slane %v2794_v51, 5  ;;  %v2801_v26 = vrot.slane %v2794_v51, 6  ;;  %v2802_v58 = vrot.slane %v2794_v51, 7 }
 0x29f   : > { %2811 = vst.msk [vmem:[%s4072_s16 + $0x3a] sm:$0x1] %vm404_vm6, %v2796_v52 }
 0x2a0   : > { %2812 = vst.msk [vmem:[%s4072_s16 + $0x5a] sm:$0x1] %vm404_vm6, %v2797_v53  ;;  %v2838_v57 = vpop.f32.mrf.mxu0  ;;  %v2976_v60 = vpop.f32.mrf.mxu1 }
 0x2a1   : > { %2813 = vst.msk [vmem:[%s4072_s16 + $0x7a] sm:$0x1] %vm404_vm6, %v2798_v25  ;;  %v2862_v59 = vadd.f32 %v2861_v48, %v2838_v57 }
 0x2a2   : > { %2814 = vst.msk [vmem:[%s4072_s16 + $0x9a] sm:$0x1] %vm404_vm6, %v2799_v54 }
 0x2a3   : > { %2815 = vst.msk [vmem:[%s4072_s16 + $0xba] sm:$0x1] %vm404_vm6, %v2800_v55  ;;  %v2864_v27 = vadd.f32 %v2862_v59, %v4063_v8 }
 0x2a4   : > { %2816 = vst.msk [vmem:[%s4072_s16 + $0xda] sm:$0x1] %vm404_vm6, %v2801_v26 }
 0x2a5   : > { %2817 = vst.msk [vmem:[%s4072_s16 + $0xfa] sm:$0x1] %vm404_vm6, %v2802_v58  ;;  %v2866_v61 = vrot.slane %v2864_v27, 1  ;;  %v2867_v62 = vrot.slane %v2864_v27, 2  ;;  %v2868_v63 = vrot.slane %v2864_v27, 3  ;;  %v2869_v1 = vrot.slane %v2864_v27, 4 }
 0x2a6   : > { %2880 = vst.msk [vmem:[%s4072_s16 + $0x1b] sm:$0x1] %vm404_vm6, %v2864_v27  ;;  %v2870_v3 = vrot.slane %v2864_v27, 5  ;;  %v2871_v4 = vrot.slane %v2864_v27, 6  ;;  %v2872_v6 = vrot.slane %v2864_v27, 7 }
 0x2a7   : > { %2881 = vst.msk [vmem:[%s4072_s16 + $0x3b] sm:$0x1] %vm404_vm6, %v2866_v61 }
 0x2a8   : > { %2882 = vst.msk [vmem:[%s4072_s16 + $0x5b] sm:$0x1] %vm404_vm6, %v2867_v62  ;;  %v2953_v2 = vpop.f32.mrf.mxu0  ;;  %v3046_v10 = vpop.f32.mrf.mxu1 }
 0x2a9   : > { %2883 = vst.msk [vmem:[%s4072_s16 + $0x7b] sm:$0x1] %vm404_vm6, %v2868_v63  ;;  %v2977_v7 = vadd.f32 %v2976_v60, %v2953_v2 }
 0x2aa   : > { %2884 = vst.msk [vmem:[%s4072_s16 + $0x9b] sm:$0x1] %vm404_vm6, %v2869_v1 }
 0x2ab   : > { %2885 = vst.msk [vmem:[%s4072_s16 + $0xbb] sm:$0x1] %vm404_vm6, %v2870_v3  ;;  %v2979_v9 = vadd.f32 %v2977_v7, %v4063_v8 }
 0x2ac   : > { %2886 = vst.msk [vmem:[%s4072_s16 + $0xdb] sm:$0x1] %vm404_vm6, %v2871_v4 }
 0x2ad   : > { %2887 = vst.msk [vmem:[%s4072_s16 + $0xfb] sm:$0x1] %vm404_vm6, %v2872_v6  ;;  %v2981_v11 = vrot.slane %v2979_v9, 1  ;;  %v2982_v12 = vrot.slane %v2979_v9, 2  ;;  %v2983_v13 = vrot.slane %v2979_v9, 3  ;;  %v2984_v15 = vrot.slane %v2979_v9, 4 }
 0x2ae   : > { %2995 = vst.msk [vmem:[%s4072_s16 + $0x1c] sm:$0x1] %vm404_vm6, %v2979_v9  ;;  %v2985_v14 = vrot.slane %v2979_v9, 5  ;;  %v2986_v16 = vrot.slane %v2979_v9, 6  ;;  %v2987_v23 = vrot.slane %v2979_v9, 7 }
 0x2af   : > { %2996 = vst.msk [vmem:[%s4072_s16 + $0x3c] sm:$0x1] %vm404_vm6, %v2981_v11 }
 0x2b0   : > { %2997 = vst.msk [vmem:[%s4072_s16 + $0x5c] sm:$0x1] %vm404_vm6, %v2982_v12  ;;  %v3023_v22 = vpop.f32.mrf.mxu0  ;;  %v3161_v29 = vpop.f32.mrf.mxu1 }
 0x2b1   : > { %2998 = vst.msk [vmem:[%s4072_s16 + $0x7c] sm:$0x1] %vm404_vm6, %v2983_v13  ;;  %v3047_v18 = vadd.f32 %v3046_v10, %v3023_v22 }
 0x2b2   : > { %2999 = vst.msk [vmem:[%s4072_s16 + $0x9c] sm:$0x1] %vm404_vm6, %v2984_v15 }
 0x2b3   : > { %3000 = vst.msk [vmem:[%s4072_s16 + $0xbc] sm:$0x1] %vm404_vm6, %v2985_v14  ;;  %v3049_v24 = vadd.f32 %v3047_v18, %v4063_v8 }
 0x2b4   : > { %3001 = vst.msk [vmem:[%s4072_s16 + $0xdc] sm:$0x1] %vm404_vm6, %v2986_v16 }
 0x2b5   : > { %3002 = vst.msk [vmem:[%s4072_s16 + $0xfc] sm:$0x1] %vm404_vm6, %v2987_v23  ;;  %v3051_v19 = vrot.slane %v3049_v24, 1  ;;  %v3052_v20 = vrot.slane %v3049_v24, 2  ;;  %v3053_v21 = vrot.slane %v3049_v24, 3  ;;  %v3054_v28 = vrot.slane %v3049_v24, 4 }
 0x2b6   : > { %3065 = vst.msk [vmem:[%s4072_s16 + $0x1d] sm:$0x1] %vm404_vm6, %v3049_v24  ;;  %v3055_v46 = vrot.slane %v3049_v24, 5  ;;  %v3056_v30 = vrot.slane %v3049_v24, 6  ;;  %v3057_v32 = vrot.slane %v3049_v24, 7 }
 0x2b7   : > { %3066 = vst.msk [vmem:[%s4072_s16 + $0x3d] sm:$0x1] %vm404_vm6, %v3051_v19 }
 0x2b8   : > { %3067 = vst.msk [vmem:[%s4072_s16 + $0x5d] sm:$0x1] %vm404_vm6, %v3052_v20  ;;  %v3138_v31 = vpop.f32.mrf.mxu0  ;;  %v3231_v40 = vpop.f32.mrf.mxu1 }
 0x2b9   : > { %3068 = vst.msk [vmem:[%s4072_s16 + $0x7d] sm:$0x1] %vm404_vm6, %v3053_v21  ;;  %v3162_v33 = vadd.f32 %v3161_v29, %v3138_v31 }
 0x2ba   : > { %3069 = vst.msk [vmem:[%s4072_s16 + $0x9d] sm:$0x1] %vm404_vm6, %v3054_v28 }
 0x2bb   : > { %3070 = vst.msk [vmem:[%s4072_s16 + $0xbd] sm:$0x1] %vm404_vm6, %v3055_v46  ;;  %v3164_v34 = vadd.f32 %v3162_v33, %v4063_v8 }
 0x2bc   : > { %3071 = vst.msk [vmem:[%s4072_s16 + $0xdd] sm:$0x1] %vm404_vm6, %v3056_v30 }
 0x2bd   : > { %3072 = vst.msk [vmem:[%s4072_s16 + $0xfd] sm:$0x1] %vm404_vm6, %v3057_v32  ;;  %v3166_v56 = vrot.slane %v3164_v34, 1  ;;  %v3167_v35 = vrot.slane %v3164_v34, 2  ;;  %v3168_v36 = vrot.slane %v3164_v34, 3  ;;  %v3169_v37 = vrot.slane %v3164_v34, 4 }
 0x2be   : > { %3180 = vst.msk [vmem:[%s4072_s16 + $0x1e] sm:$0x1] %vm404_vm6, %v3164_v34  ;;  %v3170_v38 = vrot.slane %v3164_v34, 5  ;;  %v3171_v39 = vrot.slane %v3164_v34, 6  ;;  %v3172_v41 = vrot.slane %v3164_v34, 7 }
 0x2bf   : > { %3181 = vst.msk [vmem:[%s4072_s16 + $0x3e] sm:$0x1] %vm404_vm6, %v3166_v56 }
 0x2c0   : > { %3182 = vst.msk [vmem:[%s4072_s16 + $0x5e] sm:$0x1] %vm404_vm6, %v3167_v35  ;;  %v3208_v0 = vpop.f32.mrf.mxu0 }
 0x2c1   : > { %3183 = vst.msk [vmem:[%s4072_s16 + $0x7e] sm:$0x1] %vm404_vm6, %v3168_v36  ;;  %v3232_v42 = vadd.f32 %v3231_v40, %v3208_v0 }
 0x2c2   : > { %3184 = vst.msk [vmem:[%s4072_s16 + $0x9e] sm:$0x1] %vm404_vm6, %v3169_v37 }
 0x2c3   : > { %3185 = vst.msk [vmem:[%s4072_s16 + $0xbe] sm:$0x1] %vm404_vm6, %v3170_v38  ;;  %v3234_v43 = vadd.f32 %v3232_v42, %v4063_v8 }
 0x2c4   : > { %3186 = vst.msk [vmem:[%s4072_s16 + $0xde] sm:$0x1] %vm404_vm6, %v3171_v39 }
 0x2c5   : > { %3187 = vst.msk [vmem:[%s4072_s16 + $0xfe] sm:$0x1] %vm404_vm6, %v3172_v41  ;;  %v3236_v17 = vrot.slane %v3234_v43, 1  ;;  %v3237_v5 = vrot.slane %v3234_v43, 2  ;;  %v3238_v44 = vrot.slane %v3234_v43, 3  ;;  %v3239_v45 = vrot.slane %v3234_v43, 4 }
 0x2c6   : > { %3250 = vst.msk [vmem:[%s4072_s16 + $0x1f] sm:$0x1] %vm404_vm6, %v3234_v43  ;;  %v3240_v8 = vrot.slane %v3234_v43, 5  ;;  %v3241_v47 = vrot.slane %v3234_v43, 6  ;;  %v3242_v48 = vrot.slane %v3234_v43, 7 }
 0x2c7   : > { %3251 = vst.msk [vmem:[%s4072_s16 + $0x3f] sm:$0x1] %vm404_vm6, %v3236_v17 }
 0x2c8   : > { %3252 = vst.msk [vmem:[%s4072_s16 + $0x5f] sm:$0x1] %vm404_vm6, %v3237_v5 }
 0x2c9   : > { %3253 = vst.msk [vmem:[%s4072_s16 + $0x7f] sm:$0x1] %vm404_vm6, %v3238_v44 }
 0x2ca   : > { %3254 = vst.msk [vmem:[%s4072_s16 + $0x9f] sm:$0x1] %vm404_vm6, %v3239_v45 }
 0x2cb   : > { %3255 = vst.msk [vmem:[%s4072_s16 + $0xbf] sm:$0x1] %vm404_vm6, %v3240_v8 }
 0x2cc   : > { %3256 = vst.msk [vmem:[%s4072_s16 + $0xdf] sm:$0x1] %vm404_vm6, %v3241_v47 }
 0x2cd   : > { %3257 = vst.msk [vmem:[%s4072_s16 + $0xff] sm:$0x1] %vm404_vm6, %v3242_v48 }
 0x2ce   : > { %3653 = shalt.err (!%p3650_p13)
}
 0x2cf   : > { %s3713_s29 = smov 128   ;;  %s3714_s16 = smov 8  }
 0x2d0   : > { %3526 = dma.vmem_to_hbm [thread:$0]  (%p3796_p9), %s3274_s21, 4096, %s3276_s15, %s3259_s12, %s3713_s29, %s3713_s29, %s3714_s16  }
 0x2d1 PF: > { %s3290_s30 = sand.u32 1, %s3688_s18   ;;  %p3533_p0 = pnand %p3366_p12, %p3803_p11 }
 0x2d2   : > { %s3291_s9 = scalar_lea.sflag [#allocation4], %s3290_s30 }
 0x2d3   : > { %p3534_p1 = pneg %p3533_p0 }
 0x2d5   : > { %3683 = dma.done.wait (%p3534_p1), %s3291_s9, 4096  }
 0x2d6   : > { %3685 = vsyncadd (%p3534_p1), %s3291_s9, 4294963200  ;;  %s21_s23 = sadd.s32 1, %s3708_s23   ;;  %s4953_s18 = smov %s3692_s19 }
 0x2d7   : > { %p18_p2 = scmp.ge.s32.totalorder %s21_s23, 4   ;;  %s4954_s19 = smov %s3696_s20 }
 0x2d8   : > { %s4955_s20 = smov %s3801_s7  ;;  %s4956_s21 = smov %s3704_s22 }
 0x2d9   : > { %s4957_s22 = smov %s4959_s26  ;;  %20 = sbr.rel (!%p18_p2) target bundleno = 6 (0x6), region = 85 }
 0x2de   :  { %3297 = vsyncpa [#allocation3], 1 }
 0x2df   :  { %3299 = vsyncpa [#allocation3 + $0x1], 1 }
 0x2e0   :  { %3300 = vsyncpa [#allocation4], 1 }
 0x2e1   :  { %3302 = vsyncpa [#allocation4 + $0x1], 1 }

</bundles_post_ra>
